<compile_context>
chip_gen: v5e
topology: v5e:2x2
jax: 0.10.0
libtpu: 0.0.40
codegen_flags: <defaults>
</compile_context>

<pallas_src>
import math
from functools import partial

import numpy as np
import jax
import jax.numpy as jnp
from jax.experimental import pallas as pl
from jax.experimental.pallas import tpu as pltpu

# ----------------------------- config (small, forward-consistent) -------------
N_LABELS = 5
LAT_SIZE = 32
IMAGE_SIZE = 8
DS_SIZE = 2            # unused by forward (kept for parity with the module)
CHANNELS = 4
N_FILTER = 8
N_LAYERS = int(math.log2(IMAGE_SIZE)) - 1      # = 2
LRELU_SLOPE = 0.2

_SOBEL_X2D = np.array([[-1., 0., 1.], [-2., 0., 2.], [-1., 0., 1.]], np.float32)
_SOBEL_X = _SOBEL_X2D.reshape(9)
_SOBEL_Y = _SOBEL_X2D.T.reshape(9)


# ----------------------------- host-side (batch-independent) spatial consts ----
def _tap_masks(h, w):
    """(9, h*w) 0/1 masks: mask[k, y*w+x] = 1 iff the 3x3 tap k=(dy*3+dx) neighbour
    (y+dy-1, x+dx-1) is inside the image (zero padding elsewhere)."""
    m = np.zeros((9, h * w), np.float32)
    for dy in range(3):
        for dx in range(3):
            k = dy * 3 + dx
            for y in range(h):
                for x in range(w):
                    yy, xx = y + dy - 1, x + dx - 1
                    if 0 <= yy < h and 0 <= xx < w:
                        m[k, y * w + x] = 1.0
    return m


def _smooth_pool_t(h, w):
    """Per-sample folded GaussianSmoothing(3x3, zero pad) + bilinear 0.5x
    (== exact 2x2 mean pool for align_corners=False, even h/w): shape (h*w, h*w/4)."""
    hw = h * w
    g1 = np.array([math.exp(-0.5), 1.0, math.exp(-0.5)], np.float32)
    gauss = np.outer(g1, g1)
    gauss = gauss / gauss.sum()
    gm = np.zeros((hw, hw), np.float32)
    for y in range(h):
        for x in range(w):
            for dy in range(3):
                for dx in range(3):
                    yy, xx = y + dy - 1, x + dx - 1
                    if 0 <= yy < h and 0 <= xx < w:
                        gm[y * w + x, yy * w + xx] += gauss[dy, dx]
    ho, wo = h // 2, w // 2
    pool = np.zeros((ho * wo, hw), np.float32)
    for yo in range(ho):
        for xo in range(wo):
            for dy in range(2):
                for dx in range(2):
                    pool[yo * wo + xo, (2 * yo + dy) * w + (2 * xo + dx)] = 0.25
    return np.ascontiguousarray((pool @ gm).T)


def make_spatial_consts():
    """Batch-independent per-resolution consts (review fix: no np.kron(eye(batch), ...))."""
    consts = []
    side = IMAGE_SIZE
    for _ in range(N_LAYERS):
        consts.append({"mask": jnp.asarray(_tap_masks(side, side)),
                       "dt": jnp.asarray(_smooth_pool_t(side, side))})
        side //= 2
    return consts


# ----------------------------- in-kernel helpers (VMEM-resident values) --------
def _lrelu(x):
    return jnp.where(x > 0, x, LRELU_SLOPE * x)


def _taps(x, mask, width):
    """9 shifted+masked copies of the resident (C, HW) tile.  Pure lane shifts + a (1, HW)
    boundary-mask multiply -- no MXU work, no HBM im2col, no dense shift operators."""
    taps = []
    for dy in range(3):
        for dx in range(3):
            k = dy * 3 + dx
            off = (dy - 1) * width + (dx - 1)
            if off == 0:
                taps.append(x)
            else:
                taps.append(jnp.roll(x, -off, axis=-1) * mask[k:k + 1, :])
    return taps


def _conv3x3(x, mask, width, wt, b):
    """3x3 / pad-1 conv on a resident (Cin, HW) tile: in-register im2col (9*Cin, HW) then
    ONE MXU matmul against the host-packed (Cout, 9*Cin) weight (K = 9*Cin)."""
    im2col = jnp.concatenate(_taps(x, mask, width), axis=0)
    return jnp.dot(wt, im2col, preferred_element_type=jnp.float32) + b


def _sobel_sin(taps):
    """Depthwise Sobel-x/-y from shared taps (VPU weighted sums), then sin()."""
    gx = None
    gy = None
    for k in range(9):
        cx = float(_SOBEL_X[k])
        cy = float(_SOBEL_Y[k])
        if cx != 0.0:
            tx = cx * taps[k]
            gx = tx if gx is None else gx + tx
        if cy != 0.0:
            ty = cy * taps[k]
            gy = ty if gy is None else gy + ty
    return jnp.sin(gx), jnp.sin(gy)


# ----------------------------- the fused Pallas kernel -------------------------
def _encoder_kernel(*refs, widths):
    """Whole forward (latent proj + conv_img + all stages + out_to_lat head) for ONE sample;
    the grid axis is batch, marked "parallel".  Everything stays VMEM-resident."""
    n_layers = len(widths)
    n_in = 6 + 10 * n_layers + 6
    it = iter(refs[:n_in])
    x_ref, ye_ref, wimg, bimg, wlat, blat = (next(it) for _ in range(6))
    layers = [tuple(next(it) for _ in range(10)) for _ in range(n_layers)]
    head = tuple(next(it) for _ in range(6))

    ot = iter(refs[n_in:])
    emb0_ref = next(ot)
    stage_refs = [(next(ot), next(ot)) for _ in range(n_layers)]
    lat_ref = next(ot)

    # TODO(synk): LabsEncoder source not provided; implemented as label embedding (gathered
    # in the wrapper) followed by a yembed_to_lat linear (lr_mul pre-folded on the host).
    yl = jnp.dot(wlat[...], ye_ref[0], preferred_element_type=jnp.float32) + blat[...]

    mask0 = layers[0][0][...]
    out = _conv3x3(x_ref[0], mask0, widths[0], wimg[...], bimg[...])
    emb0_ref[0] = out.astype(emb0_ref.dtype)

    for l in range(n_layers):
        mask_r, dt_r, w0, b0, wf, bf, w1, b1, ws, bs = layers[l]
        width = widths[l]
        mask = mask_r[...]
        raw_ref, emb_ref = stage_refs[l]

        # TODO(synk): SinSobel source not provided; interpreted as depthwise Sobel-x/-y
        # followed by sin(), concatenated with the input -> 3*C channels.
        gx, gy = _sobel_sin(_taps(out, mask, width))
        raw = jnp.concatenate([out, gx, gy], axis=0)            # (3C, HW)
        raw_ref[0] = raw.astype(raw_ref.dtype)

        # instance_norm (affine=False, biased variance, eps=1e-5): pure lane reductions.
        mu = jnp.mean(raw, axis=-1, keepdims=True)
        xc = raw - mu
        var = jnp.mean(xc * xc, axis=-1, keepdims=True)
        xn = xc * jax.lax.rsqrt(var + 1e-5)

        # TODO(synk): MixResidualBlock source not provided; implemented as a latent-FiLM
        # modulated residual block: conv_s(x) + 0.1 * conv1(lrelu(film(lrelu(conv0(x)), lat))).
        x_s = jnp.dot(ws[...], xn, preferred_element_type=jnp.float32) + bs[...]
        h = _lrelu(_conv3x3(xn, mask, width, w0[...], b0[...]))

        film = jnp.dot(wf[...], yl, preferred_element_type=jnp.float32) + bf[...]
        chid = h.shape[0]
        h = _lrelu(h * (1.0 + film[:chid]) + film[chid:])

        res = x_s + 0.1 * _conv3x3(h, mask, width, w1[...], b1[...])

        # GaussianSmoothing + bilinear 0.5x folded into one per-sample (HW, HW/4) operator.
        out = jnp.dot(res, dt_r[...], preferred_element_type=jnp.float32)
        emb_ref[0] = out.astype(emb_ref.dtype)

    # TODO(synk): LinearResidualBlock source not provided; implemented as
    # fc_s(x) + 0.1 * fc_1(lrelu(fc_0(x))).  The NCHW flatten permutation is folded into the
    # head weight row order on the host, so the head runs on the resident final embedding.
    ws_h, bs_h, w0_h, b0_h, w1_h, b1_h = head
    flat = jnp.concatenate([out[:, q:q + 1] for q in range(out.shape[-1])], axis=0)  # (C*Q, 1)
    skip = jnp.dot(ws_h[...], flat, preferred_element_type=jnp.float32) + bs_h[...]
    hid = _lrelu(jnp.dot(w0_h[...], flat, preferred_element_type=jnp.float32) + b0_h[...])
    lat = skip + 0.1 * (jnp.dot(w1_h[...], hid, preferred_element_type=jnp.float32) + b1_h[...])
    lat_ref[0] = lat.astype(lat_ref.dtype)


# ----------------------------- parameters --------------------------------------
def init_params(key):
    keys = iter(jax.random.split(key, 64))

    def dense(shape):
        return jax.random.normal(next(keys), shape, jnp.float32) / math.sqrt(shape[0])

    def conv(cin, cout):
        return jax.random.normal(next(keys), (9, cin, cout), jnp.float32) / math.sqrt(9 * cin)

    p = {"conv_img_w": conv(CHANNELS, N_FILTER),
         "conv_img_b": jnp.zeros((N_FILTER,), jnp.float32),
         "mix": []}
    for l in range(N_LAYERS):
        fin = N_FILTER * (l + 1) * 3
        fhid = N_FILTER * (l + 1)
        fout = N_FILTER * (l + 2)
        p["mix"].append({
            "w0": conv(fin, fhid), "b0": jnp.zeros((fhid,), jnp.float32),
            "wl": dense((LAT_SIZE, 2 * fhid)), "bl": jnp.zeros((2 * fhid,), jnp.float32),
            "w1": conv(fhid, fout), "b1": jnp.zeros((fout,), jnp.float32),
            "ws": dense((fin, fout)), "bs": jnp.zeros((fout,), jnp.float32),
        })
    fin = N_FILTER * (N_LAYERS + 1) * 4
    fhid = min(fin, LAT_SIZE)
    p["out_to_lat"] = {
        "w0": dense((fin, fhid)), "b0": jnp.zeros((fhid,), jnp.float32),
        "w1": dense((fhid, LAT_SIZE)), "b1": jnp.zeros((LAT_SIZE,), jnp.float32),
        "ws": dense((fin, LAT_SIZE)), "bs": jnp.zeros((LAT_SIZE,), jnp.float32),
    }
    p["labs"] = {
        "embed": jax.random.normal(next(keys), (N_LABELS, LAT_SIZE), jnp.float32),
        "embed_b": jnp.zeros((LAT_SIZE,), jnp.float32),
        "w": dense((LAT_SIZE, LAT_SIZE)), "b": jnp.zeros((LAT_SIZE,), jnp.float32),
        "lr_mul": jnp.float32(1.0),
    }
    return p


def prepare_params(p):
    """Fold lr_mul, transpose to the lane-dense kernel layout, pack conv weights to
    (Cout, 9*Cin), keep the FiLM projection unsplit, and fold the NCHW flatten permutation
    into the head weights -- all once, outside the hot path."""
    def col(b):
        return jnp.asarray(b, jnp.float32).reshape(-1, 1)

    def pack_conv(w):                        # (9, Cin, Cout) -> (Cout, 9*Cin), rows [k, ci]
        k, cin, cout = w.shape
        return jnp.transpose(w, (2, 0, 1)).reshape(cout, k * cin)

    kp = {
        "w_img": pack_conv(p["conv_img_w"]), "b_img": col(p["conv_img_b"]),
        "embed": p["labs"]["embed"], "embed_b": p["labs"]["embed_b"],
        "w_lat": (p["labs"]["lr_mul"] * p["labs"]["w"]).T,
        "b_lat": col(p["labs"]["lr_mul"] * p["labs"]["b"]),
        "mix": [],
    }
    for m in p["mix"]:
        kp["mix"].append({
            "w0": pack_conv(m["w0"]), "b0": col(m["b0"]),
            "wf": m["wl"].T, "bf": col(m["bl"]),             # FiLM kept unsplit
            "w1": pack_conv(m["w1"]), "b1": col(m["b1"]),
            "ws": m["ws"].T, "bs": col(m["bs"]),
        })
    # Head: PyTorch flattens NCHW -> row index c*Q + q; the kernel builds the flat column in
    # q*Cf + c order, so permute the weight rows to match (flatten folded into the weights).
    cf = N_FILTER * (N_LAYERS + 1)
    q = (IMAGE_SIZE // (2 ** N_LAYERS)) ** 2                 # = 4

    def perm_rows(w):
        return jnp.transpose(w.reshape(cf, q, w.shape[-1]), (1, 0, 2)).reshape(cf * q,
                                                                               w.shape[-1])
    h = p["out_to_lat"]
    kp["head"] = {
        "ws": perm_rows(h["ws"]).T, "bs": col(h["bs"]),
        "w0": perm_rows(h["w0"]).T, "b0": col(h["b0"]),
        "w1": h["w1"].T, "b1": col(h["b1"]),
    }
    return kp


# ----------------------------- full forward ------------------------------------
def labs_injected_encoder_forward(kparams, consts, x_nchw, labels):
    bsz = x_nchw.shape[0]
    hw0 = IMAGE_SIZE * IMAGE_SIZE
    widths = tuple(IMAGE_SIZE // (2 ** l) for l in range(N_LAYERS))

    # lane-dense kernel layout: (B, C, H*W) -- channels on sublanes, spatial on lanes.
    x_lanes = x_nchw.astype(jnp.float32).reshape(bsz, CHANNELS, hw0)
    # label embedding lookup: row gather (cheap XLA glue), passed as a (B, LAT, 1) column.
    yembed = jnp.take(kparams["embed"], labels, axis=0) + kparams["embed_b"]
    yembed = yembed.astype(jnp.float32).reshape(bsz, LAT_SIZE, 1)

    inputs = [x_lanes, yembed,
              kparams["w_img"], kparams["b_img"], kparams["w_lat"], kparams["b_lat"]]
    for l in range(N_LAYERS):
        m = kparams["mix"][l]
        inputs += [consts[l]["mask"], consts[l]["dt"],
                   m["w0"], m["b0"], m["wf"], m["bf"], m["w1"], m["b1"], m["ws"], m["bs"]]
    hd = kparams["head"]
    inputs += [hd["ws"], hd["bs"], hd["w0"], hd["b0"], hd["w1"], hd["b1"]]

    def batch_spec(arr):
        return pl.BlockSpec((1,) + arr.shape[1:], lambda b: (b, 0, 0))

    def const_spec(arr):
        zeros = (0,) * arr.ndim
        return pl.BlockSpec(arr.shape, lambda b, _z=zeros: _z)

    in_specs = [batch_spec(x_lanes), batch_spec(yembed)] + [const_spec(a) for a in inputs[2:]]

    out_shapes = [jax.ShapeDtypeStruct((bsz, N_FILTER, hw0), jnp.float32)]
    out_specs = [pl.BlockSpec((1, N_FILTER, hw0), lambda b: (b, 0, 0))]
    for l in range(N_LAYERS):
        hw = widths[l] ** 2
        craw = 3 * N_FILTER * (l + 1)
        cout = N_FILTER * (l + 2)
        out_shapes.append(jax.ShapeDtypeStruct((bsz, craw, hw), jnp.float32))
        out_specs.append(pl.BlockSpec((1, craw, hw), lambda b: (b, 0, 0)))
        out_shapes.append(jax.ShapeDtypeStruct((bsz, cout, hw // 4), jnp.float32))
        out_specs.append(pl.BlockSpec((1, cout, hw // 4), lambda b: (b, 0, 0)))
    out_shapes.append(jax.ShapeDtypeStruct((bsz, LAT_SIZE, 1), jnp.float32))
    out_specs.append(pl.BlockSpec((1, LAT_SIZE, 1), lambda b: (b, 0, 0)))

    outs = pl.pallas_call(
        partial(_encoder_kernel, widths=widths),
        grid=(bsz,),
        in_specs=in_specs,
        out_specs=tuple(out_specs),
        out_shape=tuple(out_shapes),
        compiler_params=pltpu.CompilerParams(
            dimension_semantics=("parallel",),      # shards batch across TCs on v7x
            vmem_limit_bytes=16 * 1024 * 1024),     # real footprint << 1 MiB; ample headroom
    )(*inputs)

    # reassemble the PyTorch-layout (NCHW) outputs
    emb0 = outs[0].reshape(bsz, N_FILTER, IMAGE_SIZE, IMAGE_SIZE)
    out_embs = [emb0]
    out_embs_raw = []
    idx = 1
    for l in range(N_LAYERS):
        side = widths[l]
        craw = 3 * N_FILTER * (l + 1)
        cout = N_FILTER * (l + 2)
        out_embs_raw.append(outs[idx].reshape(bsz, craw, side, side))
        out_embs.append(outs[idx + 1].reshape(bsz, cout, side // 2, side // 2))
        idx += 2
    out_embs_raw.append(out_embs[-1])
    lat = outs[idx].reshape(bsz, LAT_SIZE)
    return lat, out_embs, out_embs_raw


if __name__ == "__main__":
    key = jax.random.PRNGKey(0)
    kx, kl, kp = jax.random.split(key, 3)
    x = jax.random.normal(kx, (2, CHANNELS, IMAGE_SIZE, IMAGE_SIZE), jnp.float32)  # NCHW
    labels = jax.random.randint(kl, (2,), 0, N_LABELS)

    params = init_params(kp)
    kparams = prepare_params(params)          # lr_mul / layout / flatten-perm folded once
    consts = make_spatial_consts()            # batch-independent masks + smooth/pool ops

    fwd = jax.jit(labs_injected_encoder_forward)
    lat, out_embs, out_embs_raw = fwd(kparams, consts, x, labels)
    jax.block_until_ready((lat, out_embs, out_embs_raw))

    assert lat.shape == (2, LAT_SIZE)
    assert bool(jnp.all(jnp.isfinite(lat)))
    assert len(out_embs) == N_LAYERS + 1 and len(out_embs_raw) == N_LAYERS + 1
    assert out_embs[0].shape == (2, N_FILTER, IMAGE_SIZE, IMAGE_SIZE)
    assert out_embs[-1].shape == (2, N_FILTER * (N_LAYERS + 1), 2, 2)
    assert out_embs_raw[0].shape == (2, 3 * N_FILTER, IMAGE_SIZE, IMAGE_SIZE)
    print("KERNEL_OK")
</pallas_src>

<mosaic_0001>
module attributes {stable_mosaic.version = 11 : i64} {
  func.func @_encoder_kernel(%arg0: i32, %arg1: memref<1x4x64xf32, #tpu.memory_space<vmem>>, %arg2: memref<1x32x1xf32, #tpu.memory_space<vmem>>, %arg3: memref<8x36xf32, #tpu.memory_space<vmem>>, %arg4: memref<8x1xf32, #tpu.memory_space<vmem>>, %arg5: memref<32x32xf32, #tpu.memory_space<vmem>>, %arg6: memref<32x1xf32, #tpu.memory_space<vmem>>, %arg7: memref<9x64xf32, #tpu.memory_space<vmem>>, %arg8: memref<64x16xf32, #tpu.memory_space<vmem>>, %arg9: memref<8x216xf32, #tpu.memory_space<vmem>>, %arg10: memref<8x1xf32, #tpu.memory_space<vmem>>, %arg11: memref<16x32xf32, #tpu.memory_space<vmem>>, %arg12: memref<16x1xf32, #tpu.memory_space<vmem>>, %arg13: memref<16x72xf32, #tpu.memory_space<vmem>>, %arg14: memref<16x1xf32, #tpu.memory_space<vmem>>, %arg15: memref<16x24xf32, #tpu.memory_space<vmem>>, %arg16: memref<16x1xf32, #tpu.memory_space<vmem>>, %arg17: memref<9x16xf32, #tpu.memory_space<vmem>>, %arg18: memref<16x4xf32, #tpu.memory_space<vmem>>, %arg19: memref<16x432xf32, #tpu.memory_space<vmem>>, %arg20: memref<16x1xf32, #tpu.memory_space<vmem>>, %arg21: memref<32x32xf32, #tpu.memory_space<vmem>>, %arg22: memref<32x1xf32, #tpu.memory_space<vmem>>, %arg23: memref<24x144xf32, #tpu.memory_space<vmem>>, %arg24: memref<24x1xf32, #tpu.memory_space<vmem>>, %arg25: memref<24x48xf32, #tpu.memory_space<vmem>>, %arg26: memref<24x1xf32, #tpu.memory_space<vmem>>, %arg27: memref<32x96xf32, #tpu.memory_space<vmem>>, %arg28: memref<32x1xf32, #tpu.memory_space<vmem>>, %arg29: memref<32x96xf32, #tpu.memory_space<vmem>>, %arg30: memref<32x1xf32, #tpu.memory_space<vmem>>, %arg31: memref<32x32xf32, #tpu.memory_space<vmem>>, %arg32: memref<32x1xf32, #tpu.memory_space<vmem>>, %arg33: memref<1x8x64xf32, #tpu.memory_space<vmem>>, %arg34: memref<1x24x64xf32, #tpu.memory_space<vmem>>, %arg35: memref<1x16x16xf32, #tpu.memory_space<vmem>>, %arg36: memref<1x48x16xf32, #tpu.memory_space<vmem>>, %arg37: memref<1x24x4xf32, #tpu.memory_space<vmem>>, %arg38: memref<1x32x1xf32, #tpu.memory_space<vmem>>) attributes {dimension_semantics = [#tpu.dimension_semantics<parallel>], iteration_bounds = array<i64: 2>, scalar_prefetch = 0 : i64, scratch_operands = 0 : i64, tpu.core_type = #tpu.core_type<tc>, window_params = [{transform_indices = @transform_0, window_bounds = array<i64: 1, 4, 64>}, {transform_indices = @transform_1, window_bounds = array<i64: 1, 32, 1>}, {pipeline_mode = #tpu.pipeline_mode<synchronous>, transform_indices = @transform_2, window_bounds = array<i64: 8, 36>}, {pipeline_mode = #tpu.pipeline_mode<synchronous>, transform_indices = @transform_3, window_bounds = array<i64: 8, 1>}, {pipeline_mode = #tpu.pipeline_mode<synchronous>, transform_indices = @transform_4, window_bounds = array<i64: 32, 32>}, {pipeline_mode = #tpu.pipeline_mode<synchronous>, transform_indices = @transform_5, window_bounds = array<i64: 32, 1>}, {pipeline_mode = #tpu.pipeline_mode<synchronous>, transform_indices = @transform_6, window_bounds = array<i64: 9, 64>}, {pipeline_mode = #tpu.pipeline_mode<synchronous>, transform_indices = @transform_7, window_bounds = array<i64: 64, 16>}, {pipeline_mode = #tpu.pipeline_mode<synchronous>, transform_indices = @transform_8, window_bounds = array<i64: 8, 216>}, {pipeline_mode = #tpu.pipeline_mode<synchronous>, transform_indices = @transform_9, window_bounds = array<i64: 8, 1>}, {pipeline_mode = #tpu.pipeline_mode<synchronous>, transform_indices = @transform_10, window_bounds = array<i64: 16, 32>}, {pipeline_mode = #tpu.pipeline_mode<synchronous>, transform_indices = @transform_11, window_bounds = array<i64: 16, 1>}, {pipeline_mode = #tpu.pipeline_mode<synchronous>, transform_indices = @transform_12, window_bounds = array<i64: 16, 72>}, {pipeline_mode = #tpu.pipeline_mode<synchronous>, transform_indices = @transform_13, window_bounds = array<i64: 16, 1>}, {pipeline_mode = #tpu.pipeline_mode<synchronous>, transform_indices = @transform_14, window_bounds = array<i64: 16, 24>}, {pipeline_mode = #tpu.pipeline_mode<synchronous>, transform_indices = @transform_15, window_bounds = array<i64: 16, 1>}, {pipeline_mode = #tpu.pipeline_mode<synchronous>, transform_indices = @transform_16, window_bounds = array<i64: 9, 16>}, {pipeline_mode = #tpu.pipeline_mode<synchronous>, transform_indices = @transform_17, window_bounds = array<i64: 16, 4>}, {pipeline_mode = #tpu.pipeline_mode<synchronous>, transform_indices = @transform_18, window_bounds = array<i64: 16, 432>}, {pipeline_mode = #tpu.pipeline_mode<synchronous>, transform_indices = @transform_19, window_bounds = array<i64: 16, 1>}, {pipeline_mode = #tpu.pipeline_mode<synchronous>, transform_indices = @transform_20, window_bounds = array<i64: 32, 32>}, {pipeline_mode = #tpu.pipeline_mode<synchronous>, transform_indices = @transform_21, window_bounds = array<i64: 32, 1>}, {pipeline_mode = #tpu.pipeline_mode<synchronous>, transform_indices = @transform_22, window_bounds = array<i64: 24, 144>}, {pipeline_mode = #tpu.pipeline_mode<synchronous>, transform_indices = @transform_23, window_bounds = array<i64: 24, 1>}, {pipeline_mode = #tpu.pipeline_mode<synchronous>, transform_indices = @transform_24, window_bounds = array<i64: 24, 48>}, {pipeline_mode = #tpu.pipeline_mode<synchronous>, transform_indices = @transform_25, window_bounds = array<i64: 24, 1>}, {pipeline_mode = #tpu.pipeline_mode<synchronous>, transform_indices = @transform_26, window_bounds = array<i64: 32, 96>}, {pipeline_mode = #tpu.pipeline_mode<synchronous>, transform_indices = @transform_27, window_bounds = array<i64: 32, 1>}, {pipeline_mode = #tpu.pipeline_mode<synchronous>, transform_indices = @transform_28, window_bounds = array<i64: 32, 96>}, {pipeline_mode = #tpu.pipeline_mode<synchronous>, transform_indices = @transform_29, window_bounds = array<i64: 32, 1>}, {pipeline_mode = #tpu.pipeline_mode<synchronous>, transform_indices = @transform_30, window_bounds = array<i64: 32, 32>}, {pipeline_mode = #tpu.pipeline_mode<synchronous>, transform_indices = @transform_31, window_bounds = array<i64: 32, 1>}, {transform_indices = @transform_32, window_bounds = array<i64: 1, 8, 64>}, {transform_indices = @transform_33, window_bounds = array<i64: 1, 24, 64>}, {transform_indices = @transform_34, window_bounds = array<i64: 1, 16, 16>}, {transform_indices = @transform_35, window_bounds = array<i64: 1, 48, 16>}, {transform_indices = @transform_36, window_bounds = array<i64: 1, 24, 4>}, {transform_indices = @transform_37, window_bounds = array<i64: 1, 32, 1>}]} {
    %c0 = arith.constant 0 : index
    %c0_0 = arith.constant 0 : index
    %0 = vector.load %arg5[%c0, %c0_0] : memref<32x32xf32, #tpu.memory_space<vmem>>, vector<32x32xf32>
    %c0_1 = arith.constant 0 : index
    %c0_2 = arith.constant 0 : index
    %c0_3 = arith.constant 0 : index
    %1 = vector.load %arg2[%c0_1, %c0_2, %c0_3] : memref<1x32x1xf32, #tpu.memory_space<vmem>>, vector<1x32x1xf32>
    %2 = vector.shape_cast %1 : vector<1x32x1xf32> to vector<32x1xf32>
    %cst = arith.constant dense<0.000000e+00> : vector<32x1xf32>
    %3 = tpu.matmul %0, %2, %cst {dimension_numbers = #tpu.dot_dimension_numbers<[1], [0], [0], [1], [0, 0, 1, 1], [], []>} : vector<32x32xf32>, vector<32x1xf32>, vector<32x1xf32> -> vector<32x1xf32>
    %c0_4 = arith.constant 0 : index
    %c0_5 = arith.constant 0 : index
    %4 = vector.load %arg6[%c0_4, %c0_5] : memref<32x1xf32, #tpu.memory_space<vmem>>, vector<32x1xf32>
    %5 = arith.addf %3, %4 : vector<32x1xf32>
    %c0_6 = arith.constant 0 : index
    %c0_7 = arith.constant 0 : index
    %6 = vector.load %arg7[%c0_6, %c0_7] : memref<9x64xf32, #tpu.memory_space<vmem>>, vector<9x64xf32>
    %c0_8 = arith.constant 0 : index
    %c0_9 = arith.constant 0 : index
    %c0_10 = arith.constant 0 : index
    %7 = vector.load %arg1[%c0_8, %c0_9, %c0_10] : memref<1x4x64xf32, #tpu.memory_space<vmem>>, vector<1x4x64xf32>
    %8 = vector.shape_cast %7 : vector<1x4x64xf32> to vector<4x64xf32>
    %c0_11 = arith.constant 0 : index
    %c0_12 = arith.constant 0 : index
    %9 = vector.load %arg3[%c0_11, %c0_12] : memref<8x36xf32, #tpu.memory_space<vmem>>, vector<8x36xf32>
    %c0_13 = arith.constant 0 : index
    %c0_14 = arith.constant 0 : index
    %10 = vector.load %arg4[%c0_13, %c0_14] : memref<8x1xf32, #tpu.memory_space<vmem>>, vector<8x1xf32>
    %11 = vector.extract_strided_slice %8 {offsets = [0, 55], sizes = [4, 9], strides = [1, 1]} : vector<4x64xf32> to vector<4x9xf32>
    %12 = vector.extract_strided_slice %8 {offsets = [0, 0], sizes = [4, 55], strides = [1, 1]} : vector<4x64xf32> to vector<4x55xf32>
    %13 = tpu.concatenate %11, %12 in 1 : vector<4x9xf32>, vector<4x55xf32> -> vector<4x64xf32>
    %14 = vector.extract_strided_slice %6 {offsets = [0, 0], sizes = [1, 64], strides = [1, 1]} : vector<9x64xf32> to vector<1x64xf32>
    %15 = vector.broadcast %14 : vector<1x64xf32> to vector<4x64xf32>
    %16 = arith.mulf %13, %15 : vector<4x64xf32>
    %17 = vector.extract_strided_slice %8 {offsets = [0, 56], sizes = [4, 8], strides = [1, 1]} : vector<4x64xf32> to vector<4x8xf32>
    %18 = vector.extract_strided_slice %8 {offsets = [0, 0], sizes = [4, 56], strides = [1, 1]} : vector<4x64xf32> to vector<4x56xf32>
    %19 = tpu.concatenate %17, %18 in 1 : vector<4x8xf32>, vector<4x56xf32> -> vector<4x64xf32>
    %20 = vector.extract_strided_slice %6 {offsets = [1, 0], sizes = [1, 64], strides = [1, 1]} : vector<9x64xf32> to vector<1x64xf32>
    %21 = vector.broadcast %20 : vector<1x64xf32> to vector<4x64xf32>
    %22 = arith.mulf %19, %21 : vector<4x64xf32>
    %23 = vector.extract_strided_slice %8 {offsets = [0, 57], sizes = [4, 7], strides = [1, 1]} : vector<4x64xf32> to vector<4x7xf32>
    %24 = vector.extract_strided_slice %8 {offsets = [0, 0], sizes = [4, 57], strides = [1, 1]} : vector<4x64xf32> to vector<4x57xf32>
    %25 = tpu.concatenate %23, %24 in 1 : vector<4x7xf32>, vector<4x57xf32> -> vector<4x64xf32>
    %26 = vector.extract_strided_slice %6 {offsets = [2, 0], sizes = [1, 64], strides = [1, 1]} : vector<9x64xf32> to vector<1x64xf32>
    %27 = vector.broadcast %26 : vector<1x64xf32> to vector<4x64xf32>
    %28 = arith.mulf %25, %27 : vector<4x64xf32>
    %29 = vector.extract_strided_slice %8 {offsets = [0, 63], sizes = [4, 1], strides = [1, 1]} : vector<4x64xf32> to vector<4x1xf32>
    %30 = vector.extract_strided_slice %8 {offsets = [0, 0], sizes = [4, 63], strides = [1, 1]} : vector<4x64xf32> to vector<4x63xf32>
    %31 = tpu.concatenate %29, %30 in 1 : vector<4x1xf32>, vector<4x63xf32> -> vector<4x64xf32>
    %32 = vector.extract_strided_slice %6 {offsets = [3, 0], sizes = [1, 64], strides = [1, 1]} : vector<9x64xf32> to vector<1x64xf32>
    %33 = vector.broadcast %32 : vector<1x64xf32> to vector<4x64xf32>
    %34 = arith.mulf %31, %33 : vector<4x64xf32>
    %35 = vector.extract_strided_slice %8 {offsets = [0, 1], sizes = [4, 63], strides = [1, 1]} : vector<4x64xf32> to vector<4x63xf32>
    %36 = vector.extract_strided_slice %8 {offsets = [0, 0], sizes = [4, 1], strides = [1, 1]} : vector<4x64xf32> to vector<4x1xf32>
    %37 = tpu.concatenate %35, %36 in 1 : vector<4x63xf32>, vector<4x1xf32> -> vector<4x64xf32>
    %38 = vector.extract_strided_slice %6 {offsets = [5, 0], sizes = [1, 64], strides = [1, 1]} : vector<9x64xf32> to vector<1x64xf32>
    %39 = vector.broadcast %38 : vector<1x64xf32> to vector<4x64xf32>
    %40 = arith.mulf %37, %39 : vector<4x64xf32>
    %41 = vector.extract_strided_slice %8 {offsets = [0, 7], sizes = [4, 57], strides = [1, 1]} : vector<4x64xf32> to vector<4x57xf32>
    %42 = vector.extract_strided_slice %8 {offsets = [0, 0], sizes = [4, 7], strides = [1, 1]} : vector<4x64xf32> to vector<4x7xf32>
    %43 = tpu.concatenate %41, %42 in 1 : vector<4x57xf32>, vector<4x7xf32> -> vector<4x64xf32>
    %44 = vector.extract_strided_slice %6 {offsets = [6, 0], sizes = [1, 64], strides = [1, 1]} : vector<9x64xf32> to vector<1x64xf32>
    %45 = vector.broadcast %44 : vector<1x64xf32> to vector<4x64xf32>
    %46 = arith.mulf %43, %45 : vector<4x64xf32>
    %47 = vector.extract_strided_slice %8 {offsets = [0, 8], sizes = [4, 56], strides = [1, 1]} : vector<4x64xf32> to vector<4x56xf32>
    %48 = vector.extract_strided_slice %8 {offsets = [0, 0], sizes = [4, 8], strides = [1, 1]} : vector<4x64xf32> to vector<4x8xf32>
    %49 = tpu.concatenate %47, %48 in 1 : vector<4x56xf32>, vector<4x8xf32> -> vector<4x64xf32>
    %50 = vector.extract_strided_slice %6 {offsets = [7, 0], sizes = [1, 64], strides = [1, 1]} : vector<9x64xf32> to vector<1x64xf32>
    %51 = vector.broadcast %50 : vector<1x64xf32> to vector<4x64xf32>
    %52 = arith.mulf %49, %51 : vector<4x64xf32>
    %53 = vector.extract_strided_slice %8 {offsets = [0, 9], sizes = [4, 55], strides = [1, 1]} : vector<4x64xf32> to vector<4x55xf32>
    %54 = vector.extract_strided_slice %8 {offsets = [0, 0], sizes = [4, 9], strides = [1, 1]} : vector<4x64xf32> to vector<4x9xf32>
    %55 = tpu.concatenate %53, %54 in 1 : vector<4x55xf32>, vector<4x9xf32> -> vector<4x64xf32>
    %56 = vector.extract_strided_slice %6 {offsets = [8, 0], sizes = [1, 64], strides = [1, 1]} : vector<9x64xf32> to vector<1x64xf32>
    %57 = vector.broadcast %56 : vector<1x64xf32> to vector<4x64xf32>
    %58 = arith.mulf %55, %57 : vector<4x64xf32>
    %59 = tpu.concatenate %16, %22, %28, %34, %8, %40, %46, %52, %58 in 0 : vector<4x64xf32>, vector<4x64xf32>, vector<4x64xf32>, vector<4x64xf32>, vector<4x64xf32>, vector<4x64xf32>, vector<4x64xf32>, vector<4x64xf32>, vector<4x64xf32> -> vector<36x64xf32>
    %cst_15 = arith.constant dense<0.000000e+00> : vector<8x64xf32>
    %60 = tpu.matmul %9, %59, %cst_15 {dimension_numbers = #tpu.dot_dimension_numbers<[1], [0], [0], [1], [0, 0, 1, 1], [], []>} : vector<8x36xf32>, vector<36x64xf32>, vector<8x64xf32> -> vector<8x64xf32>
    %61 = vector.broadcast %10 : vector<8x1xf32> to vector<8x64xf32>
    %62 = arith.addf %60, %61 : vector<8x64xf32>
    %c0_16 = arith.constant 0 : index
    %c0_17 = arith.constant 0 : index
    %c0_18 = arith.constant 0 : index
    %63 = vector.load %arg33[%c0_16, %c0_17, %c0_18] : memref<1x8x64xf32, #tpu.memory_space<vmem>>, vector<1x8x64xf32>
    %64 = vector.shape_cast %63 : vector<1x8x64xf32> to vector<8x64xf32>
    %65 = vector.shape_cast %62 : vector<8x64xf32> to vector<1x8x64xf32>
    tpu.vector_store %arg33[%c0_16, %c0_17, %c0_18], %65 {strides = array<i32>} : memref<1x8x64xf32, #tpu.memory_space<vmem>>, vector<1x8x64xf32>,
    %c0_19 = arith.constant 0 : index
    %c0_20 = arith.constant 0 : index
    %66 = vector.load %arg7[%c0_19, %c0_20] : memref<9x64xf32, #tpu.memory_space<vmem>>, vector<9x64xf32>
    %67 = vector.extract_strided_slice %62 {offsets = [0, 55], sizes = [8, 9], strides = [1, 1]} : vector<8x64xf32> to vector<8x9xf32>
    %68 = vector.extract_strided_slice %62 {offsets = [0, 0], sizes = [8, 55], strides = [1, 1]} : vector<8x64xf32> to vector<8x55xf32>
    %69 = tpu.concatenate %67, %68 in 1 : vector<8x9xf32>, vector<8x55xf32> -> vector<8x64xf32>
    %70 = vector.extract_strided_slice %66 {offsets = [0, 0], sizes = [1, 64], strides = [1, 1]} : vector<9x64xf32> to vector<1x64xf32>
    %71 = vector.broadcast %70 : vector<1x64xf32> to vector<8x64xf32>
    %72 = arith.mulf %69, %71 : vector<8x64xf32>
    %73 = vector.extract_strided_slice %62 {offsets = [0, 56], sizes = [8, 8], strides = [1, 1]} : vector<8x64xf32> to vector<8x8xf32>
    %74 = vector.extract_strided_slice %62 {offsets = [0, 0], sizes = [8, 56], strides = [1, 1]} : vector<8x64xf32> to vector<8x56xf32>
    %75 = tpu.concatenate %73, %74 in 1 : vector<8x8xf32>, vector<8x56xf32> -> vector<8x64xf32>
    %76 = vector.extract_strided_slice %66 {offsets = [1, 0], sizes = [1, 64], strides = [1, 1]} : vector<9x64xf32> to vector<1x64xf32>
    %77 = vector.broadcast %76 : vector<1x64xf32> to vector<8x64xf32>
    %78 = arith.mulf %75, %77 : vector<8x64xf32>
    %79 = vector.extract_strided_slice %62 {offsets = [0, 57], sizes = [8, 7], strides = [1, 1]} : vector<8x64xf32> to vector<8x7xf32>
    %80 = vector.extract_strided_slice %62 {offsets = [0, 0], sizes = [8, 57], strides = [1, 1]} : vector<8x64xf32> to vector<8x57xf32>
    %81 = tpu.concatenate %79, %80 in 1 : vector<8x7xf32>, vector<8x57xf32> -> vector<8x64xf32>
    %82 = vector.extract_strided_slice %66 {offsets = [2, 0], sizes = [1, 64], strides = [1, 1]} : vector<9x64xf32> to vector<1x64xf32>
    %83 = vector.broadcast %82 : vector<1x64xf32> to vector<8x64xf32>
    %84 = arith.mulf %81, %83 : vector<8x64xf32>
    %85 = vector.extract_strided_slice %62 {offsets = [0, 63], sizes = [8, 1], strides = [1, 1]} : vector<8x64xf32> to vector<8x1xf32>
    %86 = vector.extract_strided_slice %62 {offsets = [0, 0], sizes = [8, 63], strides = [1, 1]} : vector<8x64xf32> to vector<8x63xf32>
    %87 = tpu.concatenate %85, %86 in 1 : vector<8x1xf32>, vector<8x63xf32> -> vector<8x64xf32>
    %88 = vector.extract_strided_slice %66 {offsets = [3, 0], sizes = [1, 64], strides = [1, 1]} : vector<9x64xf32> to vector<1x64xf32>
    %89 = vector.broadcast %88 : vector<1x64xf32> to vector<8x64xf32>
    %90 = arith.mulf %87, %89 : vector<8x64xf32>
    %91 = vector.extract_strided_slice %62 {offsets = [0, 1], sizes = [8, 63], strides = [1, 1]} : vector<8x64xf32> to vector<8x63xf32>
    %92 = vector.extract_strided_slice %62 {offsets = [0, 0], sizes = [8, 1], strides = [1, 1]} : vector<8x64xf32> to vector<8x1xf32>
    %93 = tpu.concatenate %91, %92 in 1 : vector<8x63xf32>, vector<8x1xf32> -> vector<8x64xf32>
    %94 = vector.extract_strided_slice %66 {offsets = [5, 0], sizes = [1, 64], strides = [1, 1]} : vector<9x64xf32> to vector<1x64xf32>
    %95 = vector.broadcast %94 : vector<1x64xf32> to vector<8x64xf32>
    %96 = arith.mulf %93, %95 : vector<8x64xf32>
    %97 = vector.extract_strided_slice %62 {offsets = [0, 7], sizes = [8, 57], strides = [1, 1]} : vector<8x64xf32> to vector<8x57xf32>
    %98 = vector.extract_strided_slice %62 {offsets = [0, 0], sizes = [8, 7], strides = [1, 1]} : vector<8x64xf32> to vector<8x7xf32>
    %99 = tpu.concatenate %97, %98 in 1 : vector<8x57xf32>, vector<8x7xf32> -> vector<8x64xf32>
    %100 = vector.extract_strided_slice %66 {offsets = [6, 0], sizes = [1, 64], strides = [1, 1]} : vector<9x64xf32> to vector<1x64xf32>
    %101 = vector.broadcast %100 : vector<1x64xf32> to vector<8x64xf32>
    %102 = arith.mulf %99, %101 : vector<8x64xf32>
    %103 = vector.extract_strided_slice %62 {offsets = [0, 8], sizes = [8, 56], strides = [1, 1]} : vector<8x64xf32> to vector<8x56xf32>
    %104 = vector.extract_strided_slice %62 {offsets = [0, 0], sizes = [8, 8], strides = [1, 1]} : vector<8x64xf32> to vector<8x8xf32>
    %105 = tpu.concatenate %103, %104 in 1 : vector<8x56xf32>, vector<8x8xf32> -> vector<8x64xf32>
    %106 = vector.extract_strided_slice %66 {offsets = [7, 0], sizes = [1, 64], strides = [1, 1]} : vector<9x64xf32> to vector<1x64xf32>
    %107 = vector.broadcast %106 : vector<1x64xf32> to vector<8x64xf32>
    %108 = arith.mulf %105, %107 : vector<8x64xf32>
    %109 = vector.extract_strided_slice %62 {offsets = [0, 9], sizes = [8, 55], strides = [1, 1]} : vector<8x64xf32> to vector<8x55xf32>
    %110 = vector.extract_strided_slice %62 {offsets = [0, 0], sizes = [8, 9], strides = [1, 1]} : vector<8x64xf32> to vector<8x9xf32>
    %111 = tpu.concatenate %109, %110 in 1 : vector<8x55xf32>, vector<8x9xf32> -> vector<8x64xf32>
    %112 = vector.extract_strided_slice %66 {offsets = [8, 0], sizes = [1, 64], strides = [1, 1]} : vector<9x64xf32> to vector<1x64xf32>
    %113 = vector.broadcast %112 : vector<1x64xf32> to vector<8x64xf32>
    %114 = arith.mulf %111, %113 : vector<8x64xf32>
    %cst_21 = arith.constant -1.000000e+00 : f32
    %115 = vector.broadcast %cst_21 : f32 to vector<8x64xf32>
    %116 = arith.mulf %115, %72 : vector<8x64xf32>
    %cst_22 = arith.constant -1.000000e+00 : f32
    %117 = vector.broadcast %cst_22 : f32 to vector<8x64xf32>
    %118 = arith.mulf %117, %72 : vector<8x64xf32>
    %cst_23 = arith.constant -2.000000e+00 : f32
    %119 = vector.broadcast %cst_23 : f32 to vector<8x64xf32>
    %120 = arith.mulf %119, %78 : vector<8x64xf32>
    %121 = arith.addf %118, %120 : vector<8x64xf32>
    %cst_24 = arith.constant 1.000000e+00 : f32
    %122 = vector.broadcast %cst_24 : f32 to vector<8x64xf32>
    %123 = arith.mulf %122, %84 : vector<8x64xf32>
    %124 = arith.addf %116, %123 : vector<8x64xf32>
    %cst_25 = arith.constant -1.000000e+00 : f32
    %125 = vector.broadcast %cst_25 : f32 to vector<8x64xf32>
    %126 = arith.mulf %125, %84 : vector<8x64xf32>
    %127 = arith.addf %121, %126 : vector<8x64xf32>
    %cst_26 = arith.constant -2.000000e+00 : f32
    %128 = vector.broadcast %cst_26 : f32 to vector<8x64xf32>
    %129 = arith.mulf %128, %90 : vector<8x64xf32>
    %130 = arith.addf %124, %129 : vector<8x64xf32>
    %cst_27 = arith.constant 2.000000e+00 : f32
    %131 = vector.broadcast %cst_27 : f32 to vector<8x64xf32>
    %132 = arith.mulf %131, %96 : vector<8x64xf32>
    %133 = arith.addf %130, %132 : vector<8x64xf32>
    %cst_28 = arith.constant -1.000000e+00 : f32
    %134 = vector.broadcast %cst_28 : f32 to vector<8x64xf32>
    %135 = arith.mulf %134, %102 : vector<8x64xf32>
    %136 = arith.addf %133, %135 : vector<8x64xf32>
    %cst_29 = arith.constant 1.000000e+00 : f32
    %137 = vector.broadcast %cst_29 : f32 to vector<8x64xf32>
    %138 = arith.mulf %137, %102 : vector<8x64xf32>
    %139 = arith.addf %127, %138 : vector<8x64xf32>
    %cst_30 = arith.constant 2.000000e+00 : f32
    %140 = vector.broadcast %cst_30 : f32 to vector<8x64xf32>
    %141 = arith.mulf %140, %108 : vector<8x64xf32>
    %142 = arith.addf %139, %141 : vector<8x64xf32>
    %cst_31 = arith.constant 1.000000e+00 : f32
    %143 = vector.broadcast %cst_31 : f32 to vector<8x64xf32>
    %144 = arith.mulf %143, %114 : vector<8x64xf32>
    %145 = arith.addf %136, %144 : vector<8x64xf32>
    %cst_32 = arith.constant 1.000000e+00 : f32
    %146 = vector.broadcast %cst_32 : f32 to vector<8x64xf32>
    %147 = arith.mulf %146, %114 : vector<8x64xf32>
    %148 = arith.addf %142, %147 : vector<8x64xf32>
    %149 = math.sin %145 : vector<8x64xf32>
    %150 = math.sin %148 : vector<8x64xf32>
    %151 = tpu.concatenate %62, %149, %150 in 0 : vector<8x64xf32>, vector<8x64xf32>, vector<8x64xf32> -> vector<24x64xf32>
    %c0_33 = arith.constant 0 : index
    %c0_34 = arith.constant 0 : index
    %c0_35 = arith.constant 0 : index
    %152 = vector.load %arg34[%c0_33, %c0_34, %c0_35] : memref<1x24x64xf32, #tpu.memory_space<vmem>>, vector<1x24x64xf32>
    %153 = vector.shape_cast %152 : vector<1x24x64xf32> to vector<24x64xf32>
    %154 = vector.shape_cast %151 : vector<24x64xf32> to vector<1x24x64xf32>
    tpu.vector_store %arg34[%c0_33, %c0_34, %c0_35], %154 {strides = array<i32>} : memref<1x24x64xf32, #tpu.memory_space<vmem>>, vector<1x24x64xf32>,
    %cst_36 = arith.constant dense<0.000000e+00> : vector<24xf32>
    %155 = vector.multi_reduction <add>, %151, %cst_36 [1] : vector<24x64xf32> to vector<24xf32>
    %156 = vector.shape_cast %155 : vector<24xf32> to vector<24x1xf32>
    %cst_37 = arith.constant 6.400000e+01 : f32
    %157 = vector.broadcast %cst_37 : f32 to vector<24x1xf32>
    %158 = arith.divf %156, %157 : vector<24x1xf32>
    %159 = vector.broadcast %158 : vector<24x1xf32> to vector<24x64xf32>
    %160 = arith.subf %151, %159 : vector<24x64xf32>
    %161 = arith.mulf %160, %160 : vector<24x64xf32>
    %cst_38 = arith.constant dense<0.000000e+00> : vector<24xf32>
    %162 = vector.multi_reduction <add>, %161, %cst_38 [1] : vector<24x64xf32> to vector<24xf32>
    %163 = vector.shape_cast %162 : vector<24xf32> to vector<24x1xf32>
    %cst_39 = arith.constant 6.400000e+01 : f32
    %164 = vector.broadcast %cst_39 : f32 to vector<24x1xf32>
    %165 = arith.divf %163, %164 : vector<24x1xf32>
    %cst_40 = arith.constant 9.99999974E-6 : f32
    %166 = vector.broadcast %cst_40 : f32 to vector<24x1xf32>
    %167 = arith.addf %165, %166 : vector<24x1xf32>
    %168 = math.rsqrt %167 : vector<24x1xf32>
    %169 = vector.broadcast %168 : vector<24x1xf32> to vector<24x64xf32>
    %170 = arith.mulf %160, %169 : vector<24x64xf32>
    %c0_41 = arith.constant 0 : index
    %c0_42 = arith.constant 0 : index
    %171 = vector.load %arg15[%c0_41, %c0_42] : memref<16x24xf32, #tpu.memory_space<vmem>>, vector<16x24xf32>
    %cst_43 = arith.constant dense<0.000000e+00> : vector<16x64xf32>
    %172 = tpu.matmul %171, %170, %cst_43 {dimension_numbers = #tpu.dot_dimension_numbers<[1], [0], [0], [1], [0, 0, 1, 1], [], []>} : vector<16x24xf32>, vector<24x64xf32>, vector<16x64xf32> -> vector<16x64xf32>
    %c0_44 = arith.constant 0 : index
    %c0_45 = arith.constant 0 : index
    %173 = vector.load %arg16[%c0_44, %c0_45] : memref<16x1xf32, #tpu.memory_space<vmem>>, vector<16x1xf32>
    %174 = vector.broadcast %173 : vector<16x1xf32> to vector<16x64xf32>
    %175 = arith.addf %172, %174 : vector<16x64xf32>
    %c0_46 = arith.constant 0 : index
    %c0_47 = arith.constant 0 : index
    %176 = vector.load %arg9[%c0_46, %c0_47] : memref<8x216xf32, #tpu.memory_space<vmem>>, vector<8x216xf32>
    %c0_48 = arith.constant 0 : index
    %c0_49 = arith.constant 0 : index
    %177 = vector.load %arg10[%c0_48, %c0_49] : memref<8x1xf32, #tpu.memory_space<vmem>>, vector<8x1xf32>
    %178 = vector.extract_strided_slice %170 {offsets = [0, 55], sizes = [24, 9], strides = [1, 1]} : vector<24x64xf32> to vector<24x9xf32>
    %179 = vector.extract_strided_slice %170 {offsets = [0, 0], sizes = [24, 55], strides = [1, 1]} : vector<24x64xf32> to vector<24x55xf32>
    %180 = tpu.concatenate %178, %179 in 1 : vector<24x9xf32>, vector<24x55xf32> -> vector<24x64xf32>
    %181 = vector.extract_strided_slice %66 {offsets = [0, 0], sizes = [1, 64], strides = [1, 1]} : vector<9x64xf32> to vector<1x64xf32>
    %182 = vector.broadcast %181 : vector<1x64xf32> to vector<24x64xf32>
    %183 = arith.mulf %180, %182 : vector<24x64xf32>
    %184 = vector.extract_strided_slice %170 {offsets = [0, 56], sizes = [24, 8], strides = [1, 1]} : vector<24x64xf32> to vector<24x8xf32>
    %185 = vector.extract_strided_slice %170 {offsets = [0, 0], sizes = [24, 56], strides = [1, 1]} : vector<24x64xf32> to vector<24x56xf32>
    %186 = tpu.concatenate %184, %185 in 1 : vector<24x8xf32>, vector<24x56xf32> -> vector<24x64xf32>
    %187 = vector.extract_strided_slice %66 {offsets = [1, 0], sizes = [1, 64], strides = [1, 1]} : vector<9x64xf32> to vector<1x64xf32>
    %188 = vector.broadcast %187 : vector<1x64xf32> to vector<24x64xf32>
    %189 = arith.mulf %186, %188 : vector<24x64xf32>
    %190 = vector.extract_strided_slice %170 {offsets = [0, 57], sizes = [24, 7], strides = [1, 1]} : vector<24x64xf32> to vector<24x7xf32>
    %191 = vector.extract_strided_slice %170 {offsets = [0, 0], sizes = [24, 57], strides = [1, 1]} : vector<24x64xf32> to vector<24x57xf32>
    %192 = tpu.concatenate %190, %191 in 1 : vector<24x7xf32>, vector<24x57xf32> -> vector<24x64xf32>
    %193 = vector.extract_strided_slice %66 {offsets = [2, 0], sizes = [1, 64], strides = [1, 1]} : vector<9x64xf32> to vector<1x64xf32>
    %194 = vector.broadcast %193 : vector<1x64xf32> to vector<24x64xf32>
    %195 = arith.mulf %192, %194 : vector<24x64xf32>
    %196 = vector.extract_strided_slice %170 {offsets = [0, 63], sizes = [24, 1], strides = [1, 1]} : vector<24x64xf32> to vector<24x1xf32>
    %197 = vector.extract_strided_slice %170 {offsets = [0, 0], sizes = [24, 63], strides = [1, 1]} : vector<24x64xf32> to vector<24x63xf32>
    %198 = tpu.concatenate %196, %197 in 1 : vector<24x1xf32>, vector<24x63xf32> -> vector<24x64xf32>
    %199 = vector.extract_strided_slice %66 {offsets = [3, 0], sizes = [1, 64], strides = [1, 1]} : vector<9x64xf32> to vector<1x64xf32>
    %200 = vector.broadcast %199 : vector<1x64xf32> to vector<24x64xf32>
    %201 = arith.mulf %198, %200 : vector<24x64xf32>
    %202 = vector.extract_strided_slice %170 {offsets = [0, 1], sizes = [24, 63], strides = [1, 1]} : vector<24x64xf32> to vector<24x63xf32>
    %203 = vector.extract_strided_slice %170 {offsets = [0, 0], sizes = [24, 1], strides = [1, 1]} : vector<24x64xf32> to vector<24x1xf32>
    %204 = tpu.concatenate %202, %203 in 1 : vector<24x63xf32>, vector<24x1xf32> -> vector<24x64xf32>
    %205 = vector.extract_strided_slice %66 {offsets = [5, 0], sizes = [1, 64], strides = [1, 1]} : vector<9x64xf32> to vector<1x64xf32>
    %206 = vector.broadcast %205 : vector<1x64xf32> to vector<24x64xf32>
    %207 = arith.mulf %204, %206 : vector<24x64xf32>
    %208 = vector.extract_strided_slice %170 {offsets = [0, 7], sizes = [24, 57], strides = [1, 1]} : vector<24x64xf32> to vector<24x57xf32>
    %209 = vector.extract_strided_slice %170 {offsets = [0, 0], sizes = [24, 7], strides = [1, 1]} : vector<24x64xf32> to vector<24x7xf32>
    %210 = tpu.concatenate %208, %209 in 1 : vector<24x57xf32>, vector<24x7xf32> -> vector<24x64xf32>
    %211 = vector.extract_strided_slice %66 {offsets = [6, 0], sizes = [1, 64], strides = [1, 1]} : vector<9x64xf32> to vector<1x64xf32>
    %212 = vector.broadcast %211 : vector<1x64xf32> to vector<24x64xf32>
    %213 = arith.mulf %210, %212 : vector<24x64xf32>
    %214 = vector.extract_strided_slice %170 {offsets = [0, 8], sizes = [24, 56], strides = [1, 1]} : vector<24x64xf32> to vector<24x56xf32>
    %215 = vector.extract_strided_slice %170 {offsets = [0, 0], sizes = [24, 8], strides = [1, 1]} : vector<24x64xf32> to vector<24x8xf32>
    %216 = tpu.concatenate %214, %215 in 1 : vector<24x56xf32>, vector<24x8xf32> -> vector<24x64xf32>
    %217 = vector.extract_strided_slice %66 {offsets = [7, 0], sizes = [1, 64], strides = [1, 1]} : vector<9x64xf32> to vector<1x64xf32>
    %218 = vector.broadcast %217 : vector<1x64xf32> to vector<24x64xf32>
    %219 = arith.mulf %216, %218 : vector<24x64xf32>
    %220 = vector.extract_strided_slice %170 {offsets = [0, 9], sizes = [24, 55], strides = [1, 1]} : vector<24x64xf32> to vector<24x55xf32>
    %221 = vector.extract_strided_slice %170 {offsets = [0, 0], sizes = [24, 9], strides = [1, 1]} : vector<24x64xf32> to vector<24x9xf32>
    %222 = tpu.concatenate %220, %221 in 1 : vector<24x55xf32>, vector<24x9xf32> -> vector<24x64xf32>
    %223 = vector.extract_strided_slice %66 {offsets = [8, 0], sizes = [1, 64], strides = [1, 1]} : vector<9x64xf32> to vector<1x64xf32>
    %224 = vector.broadcast %223 : vector<1x64xf32> to vector<24x64xf32>
    %225 = arith.mulf %222, %224 : vector<24x64xf32>
    %226 = tpu.concatenate %183, %189, %195, %201, %170, %207, %213, %219, %225 in 0 : vector<24x64xf32>, vector<24x64xf32>, vector<24x64xf32>, vector<24x64xf32>, vector<24x64xf32>, vector<24x64xf32>, vector<24x64xf32>, vector<24x64xf32>, vector<24x64xf32> -> vector<216x64xf32>
    %cst_50 = arith.constant dense<0.000000e+00> : vector<8x64xf32>
    %227 = tpu.matmul %176, %226, %cst_50 {dimension_numbers = #tpu.dot_dimension_numbers<[1], [0], [0], [1], [0, 0, 1, 1], [], []>} : vector<8x216xf32>, vector<216x64xf32>, vector<8x64xf32> -> vector<8x64xf32>
    %228 = vector.broadcast %177 : vector<8x1xf32> to vector<8x64xf32>
    %229 = arith.addf %227, %228 : vector<8x64xf32>
    %cst_51 = arith.constant 0.000000e+00 : f32
    %230 = vector.broadcast %cst_51 : f32 to vector<8x64xf32>
    %231 = arith.cmpf ogt, %229, %230 : vector<8x64xf32>
    %cst_52 = arith.constant 2.000000e-01 : f32
    %232 = vector.broadcast %cst_52 : f32 to vector<8x64xf32>
    %233 = arith.mulf %232, %229 : vector<8x64xf32>
    %234 = arith.select %231, %229, %233 : vector<8x64xi1>, vector<8x64xf32>
    %c0_53 = arith.constant 0 : index
    %c0_54 = arith.constant 0 : index
    %235 = vector.load %arg11[%c0_53, %c0_54] : memref<16x32xf32, #tpu.memory_space<vmem>>, vector<16x32xf32>
    %cst_55 = arith.constant dense<0.000000e+00> : vector<16x1xf32>
    %236 = tpu.matmul %235, %5, %cst_55 {dimension_numbers = #tpu.dot_dimension_numbers<[1], [0], [0], [1], [0, 0, 1, 1], [], []>} : vector<16x32xf32>, vector<32x1xf32>, vector<16x1xf32> -> vector<16x1xf32>
    %c0_56 = arith.constant 0 : index
    %c0_57 = arith.constant 0 : index
    %237 = vector.load %arg12[%c0_56, %c0_57] : memref<16x1xf32, #tpu.memory_space<vmem>>, vector<16x1xf32>
    %238 = arith.addf %236, %237 : vector<16x1xf32>
    %239 = vector.extract_strided_slice %238 {offsets = [0, 0], sizes = [8, 1], strides = [1, 1]} : vector<16x1xf32> to vector<8x1xf32>
    %cst_58 = arith.constant 1.000000e+00 : f32
    %240 = vector.broadcast %cst_58 : f32 to vector<8x1xf32>
    %241 = arith.addf %240, %239 : vector<8x1xf32>
    %242 = vector.broadcast %241 : vector<8x1xf32> to vector<8x64xf32>
    %243 = arith.mulf %234, %242 : vector<8x64xf32>
    %244 = vector.extract_strided_slice %238 {offsets = [8, 0], sizes = [8, 1], strides = [1, 1]} : vector<16x1xf32> to vector<8x1xf32>
    %245 = vector.broadcast %244 : vector<8x1xf32> to vector<8x64xf32>
    %246 = arith.addf %243, %245 : vector<8x64xf32>
    %cst_59 = arith.constant 0.000000e+00 : f32
    %247 = vector.broadcast %cst_59 : f32 to vector<8x64xf32>
    %248 = arith.cmpf ogt, %246, %247 : vector<8x64xf32>
    %cst_60 = arith.constant 2.000000e-01 : f32
    %249 = vector.broadcast %cst_60 : f32 to vector<8x64xf32>
    %250 = arith.mulf %249, %246 : vector<8x64xf32>
    %251 = arith.select %248, %246, %250 : vector<8x64xi1>, vector<8x64xf32>
    %c0_61 = arith.constant 0 : index
    %c0_62 = arith.constant 0 : index
    %252 = vector.load %arg13[%c0_61, %c0_62] : memref<16x72xf32, #tpu.memory_space<vmem>>, vector<16x72xf32>
    %c0_63 = arith.constant 0 : index
    %c0_64 = arith.constant 0 : index
    %253 = vector.load %arg14[%c0_63, %c0_64] : memref<16x1xf32, #tpu.memory_space<vmem>>, vector<16x1xf32>
    %254 = vector.extract_strided_slice %251 {offsets = [0, 55], sizes = [8, 9], strides = [1, 1]} : vector<8x64xf32> to vector<8x9xf32>
    %255 = vector.extract_strided_slice %251 {offsets = [0, 0], sizes = [8, 55], strides = [1, 1]} : vector<8x64xf32> to vector<8x55xf32>
    %256 = tpu.concatenate %254, %255 in 1 : vector<8x9xf32>, vector<8x55xf32> -> vector<8x64xf32>
    %257 = vector.extract_strided_slice %66 {offsets = [0, 0], sizes = [1, 64], strides = [1, 1]} : vector<9x64xf32> to vector<1x64xf32>
    %258 = vector.broadcast %257 : vector<1x64xf32> to vector<8x64xf32>
    %259 = arith.mulf %256, %258 : vector<8x64xf32>
    %260 = vector.extract_strided_slice %251 {offsets = [0, 56], sizes = [8, 8], strides = [1, 1]} : vector<8x64xf32> to vector<8x8xf32>
    %261 = vector.extract_strided_slice %251 {offsets = [0, 0], sizes = [8, 56], strides = [1, 1]} : vector<8x64xf32> to vector<8x56xf32>
    %262 = tpu.concatenate %260, %261 in 1 : vector<8x8xf32>, vector<8x56xf32> -> vector<8x64xf32>
    %263 = vector.extract_strided_slice %66 {offsets = [1, 0], sizes = [1, 64], strides = [1, 1]} : vector<9x64xf32> to vector<1x64xf32>
    %264 = vector.broadcast %263 : vector<1x64xf32> to vector<8x64xf32>
    %265 = arith.mulf %262, %264 : vector<8x64xf32>
    %266 = vector.extract_strided_slice %251 {offsets = [0, 57], sizes = [8, 7], strides = [1, 1]} : vector<8x64xf32> to vector<8x7xf32>
    %267 = vector.extract_strided_slice %251 {offsets = [0, 0], sizes = [8, 57], strides = [1, 1]} : vector<8x64xf32> to vector<8x57xf32>
    %268 = tpu.concatenate %266, %267 in 1 : vector<8x7xf32>, vector<8x57xf32> -> vector<8x64xf32>
    %269 = vector.extract_strided_slice %66 {offsets = [2, 0], sizes = [1, 64], strides = [1, 1]} : vector<9x64xf32> to vector<1x64xf32>
    %270 = vector.broadcast %269 : vector<1x64xf32> to vector<8x64xf32>
    %271 = arith.mulf %268, %270 : vector<8x64xf32>
    %272 = vector.extract_strided_slice %251 {offsets = [0, 63], sizes = [8, 1], strides = [1, 1]} : vector<8x64xf32> to vector<8x1xf32>
    %273 = vector.extract_strided_slice %251 {offsets = [0, 0], sizes = [8, 63], strides = [1, 1]} : vector<8x64xf32> to vector<8x63xf32>
    %274 = tpu.concatenate %272, %273 in 1 : vector<8x1xf32>, vector<8x63xf32> -> vector<8x64xf32>
    %275 = vector.extract_strided_slice %66 {offsets = [3, 0], sizes = [1, 64], strides = [1, 1]} : vector<9x64xf32> to vector<1x64xf32>
    %276 = vector.broadcast %275 : vector<1x64xf32> to vector<8x64xf32>
    %277 = arith.mulf %274, %276 : vector<8x64xf32>
    %278 = vector.extract_strided_slice %251 {offsets = [0, 1], sizes = [8, 63], strides = [1, 1]} : vector<8x64xf32> to vector<8x63xf32>
    %279 = vector.extract_strided_slice %251 {offsets = [0, 0], sizes = [8, 1], strides = [1, 1]} : vector<8x64xf32> to vector<8x1xf32>
    %280 = tpu.concatenate %278, %279 in 1 : vector<8x63xf32>, vector<8x1xf32> -> vector<8x64xf32>
    %281 = vector.extract_strided_slice %66 {offsets = [5, 0], sizes = [1, 64], strides = [1, 1]} : vector<9x64xf32> to vector<1x64xf32>
    %282 = vector.broadcast %281 : vector<1x64xf32> to vector<8x64xf32>
    %283 = arith.mulf %280, %282 : vector<8x64xf32>
    %284 = vector.extract_strided_slice %251 {offsets = [0, 7], sizes = [8, 57], strides = [1, 1]} : vector<8x64xf32> to vector<8x57xf32>
    %285 = vector.extract_strided_slice %251 {offsets = [0, 0], sizes = [8, 7], strides = [1, 1]} : vector<8x64xf32> to vector<8x7xf32>
    %286 = tpu.concatenate %284, %285 in 1 : vector<8x57xf32>, vector<8x7xf32> -> vector<8x64xf32>
    %287 = vector.extract_strided_slice %66 {offsets = [6, 0], sizes = [1, 64], strides = [1, 1]} : vector<9x64xf32> to vector<1x64xf32>
    %288 = vector.broadcast %287 : vector<1x64xf32> to vector<8x64xf32>
    %289 = arith.mulf %286, %288 : vector<8x64xf32>
    %290 = vector.extract_strided_slice %251 {offsets = [0, 8], sizes = [8, 56], strides = [1, 1]} : vector<8x64xf32> to vector<8x56xf32>
    %291 = vector.extract_strided_slice %251 {offsets = [0, 0], sizes = [8, 8], strides = [1, 1]} : vector<8x64xf32> to vector<8x8xf32>
    %292 = tpu.concatenate %290, %291 in 1 : vector<8x56xf32>, vector<8x8xf32> -> vector<8x64xf32>
    %293 = vector.extract_strided_slice %66 {offsets = [7, 0], sizes = [1, 64], strides = [1, 1]} : vector<9x64xf32> to vector<1x64xf32>
    %294 = vector.broadcast %293 : vector<1x64xf32> to vector<8x64xf32>
    %295 = arith.mulf %292, %294 : vector<8x64xf32>
    %296 = vector.extract_strided_slice %251 {offsets = [0, 9], sizes = [8, 55], strides = [1, 1]} : vector<8x64xf32> to vector<8x55xf32>
    %297 = vector.extract_strided_slice %251 {offsets = [0, 0], sizes = [8, 9], strides = [1, 1]} : vector<8x64xf32> to vector<8x9xf32>
    %298 = tpu.concatenate %296, %297 in 1 : vector<8x55xf32>, vector<8x9xf32> -> vector<8x64xf32>
    %299 = vector.extract_strided_slice %66 {offsets = [8, 0], sizes = [1, 64], strides = [1, 1]} : vector<9x64xf32> to vector<1x64xf32>
    %300 = vector.broadcast %299 : vector<1x64xf32> to vector<8x64xf32>
    %301 = arith.mulf %298, %300 : vector<8x64xf32>
    %302 = tpu.concatenate %259, %265, %271, %277, %251, %283, %289, %295, %301 in 0 : vector<8x64xf32>, vector<8x64xf32>, vector<8x64xf32>, vector<8x64xf32>, vector<8x64xf32>, vector<8x64xf32>, vector<8x64xf32>, vector<8x64xf32>, vector<8x64xf32> -> vector<72x64xf32>
    %cst_65 = arith.constant dense<0.000000e+00> : vector<16x64xf32>
    %303 = tpu.matmul %252, %302, %cst_65 {dimension_numbers = #tpu.dot_dimension_numbers<[1], [0], [0], [1], [0, 0, 1, 1], [], []>} : vector<16x72xf32>, vector<72x64xf32>, vector<16x64xf32> -> vector<16x64xf32>
    %304 = vector.broadcast %253 : vector<16x1xf32> to vector<16x64xf32>
    %305 = arith.addf %303, %304 : vector<16x64xf32>
    %cst_66 = arith.constant 1.000000e-01 : f32
    %306 = vector.broadcast %cst_66 : f32 to vector<16x64xf32>
    %307 = arith.mulf %306, %305 : vector<16x64xf32>
    %308 = arith.addf %175, %307 : vector<16x64xf32>
    %c0_67 = arith.constant 0 : index
    %c0_68 = arith.constant 0 : index
    %309 = vector.load %arg8[%c0_67, %c0_68] : memref<64x16xf32, #tpu.memory_space<vmem>>, vector<64x16xf32>
    %cst_69 = arith.constant dense<0.000000e+00> : vector<16x16xf32>
    %310 = tpu.matmul %308, %309, %cst_69 {dimension_numbers = #tpu.dot_dimension_numbers<[1], [0], [0], [1], [0, 0, 1, 1], [], []>} : vector<16x64xf32>, vector<64x16xf32>, vector<16x16xf32> -> vector<16x16xf32>
    %c0_70 = arith.constant 0 : index
    %c0_71 = arith.constant 0 : index
    %c0_72 = arith.constant 0 : index
    %311 = vector.load %arg35[%c0_70, %c0_71, %c0_72] : memref<1x16x16xf32, #tpu.memory_space<vmem>>, vector<1x16x16xf32>
    %312 = vector.shape_cast %311 : vector<1x16x16xf32> to vector<16x16xf32>
    %313 = vector.shape_cast %310 : vector<16x16xf32> to vector<1x16x16xf32>
    tpu.vector_store %arg35[%c0_70, %c0_71, %c0_72], %313 {strides = array<i32>} : memref<1x16x16xf32, #tpu.memory_space<vmem>>, vector<1x16x16xf32>,
    %c0_73 = arith.constant 0 : index
    %c0_74 = arith.constant 0 : index
    %314 = vector.load %arg17[%c0_73, %c0_74] : memref<9x16xf32, #tpu.memory_space<vmem>>, vector<9x16xf32>
    %315 = vector.extract_strided_slice %310 {offsets = [0, 11], sizes = [16, 5], strides = [1, 1]} : vector<16x16xf32> to vector<16x5xf32>
    %316 = vector.extract_strided_slice %310 {offsets = [0, 0], sizes = [16, 11], strides = [1, 1]} : vector<16x16xf32> to vector<16x11xf32>
    %317 = tpu.concatenate %315, %316 in 1 : vector<16x5xf32>, vector<16x11xf32> -> vector<16x16xf32>
    %318 = vector.extract_strided_slice %314 {offsets = [0, 0], sizes = [1, 16], strides = [1, 1]} : vector<9x16xf32> to vector<1x16xf32>
    %319 = vector.broadcast %318 : vector<1x16xf32> to vector<16x16xf32>
    %320 = arith.mulf %317, %319 : vector<16x16xf32>
    %321 = vector.extract_strided_slice %310 {offsets = [0, 12], sizes = [16, 4], strides = [1, 1]} : vector<16x16xf32> to vector<16x4xf32>
    %322 = vector.extract_strided_slice %310 {offsets = [0, 0], sizes = [16, 12], strides = [1, 1]} : vector<16x16xf32> to vector<16x12xf32>
    %323 = tpu.concatenate %321, %322 in 1 : vector<16x4xf32>, vector<16x12xf32> -> vector<16x16xf32>
    %324 = vector.extract_strided_slice %314 {offsets = [1, 0], sizes = [1, 16], strides = [1, 1]} : vector<9x16xf32> to vector<1x16xf32>
    %325 = vector.broadcast %324 : vector<1x16xf32> to vector<16x16xf32>
    %326 = arith.mulf %323, %325 : vector<16x16xf32>
    %327 = vector.extract_strided_slice %310 {offsets = [0, 13], sizes = [16, 3], strides = [1, 1]} : vector<16x16xf32> to vector<16x3xf32>
    %328 = vector.extract_strided_slice %310 {offsets = [0, 0], sizes = [16, 13], strides = [1, 1]} : vector<16x16xf32> to vector<16x13xf32>
    %329 = tpu.concatenate %327, %328 in 1 : vector<16x3xf32>, vector<16x13xf32> -> vector<16x16xf32>
    %330 = vector.extract_strided_slice %314 {offsets = [2, 0], sizes = [1, 16], strides = [1, 1]} : vector<9x16xf32> to vector<1x16xf32>
    %331 = vector.broadcast %330 : vector<1x16xf32> to vector<16x16xf32>
    %332 = arith.mulf %329, %331 : vector<16x16xf32>
    %333 = vector.extract_strided_slice %310 {offsets = [0, 15], sizes = [16, 1], strides = [1, 1]} : vector<16x16xf32> to vector<16x1xf32>
    %334 = vector.extract_strided_slice %310 {offsets = [0, 0], sizes = [16, 15], strides = [1, 1]} : vector<16x16xf32> to vector<16x15xf32>
    %335 = tpu.concatenate %333, %334 in 1 : vector<16x1xf32>, vector<16x15xf32> -> vector<16x16xf32>
    %336 = vector.extract_strided_slice %314 {offsets = [3, 0], sizes = [1, 16], strides = [1, 1]} : vector<9x16xf32> to vector<1x16xf32>
    %337 = vector.broadcast %336 : vector<1x16xf32> to vector<16x16xf32>
    %338 = arith.mulf %335, %337 : vector<16x16xf32>
    %339 = vector.extract_strided_slice %310 {offsets = [0, 1], sizes = [16, 15], strides = [1, 1]} : vector<16x16xf32> to vector<16x15xf32>
    %340 = vector.extract_strided_slice %310 {offsets = [0, 0], sizes = [16, 1], strides = [1, 1]} : vector<16x16xf32> to vector<16x1xf32>
    %341 = tpu.concatenate %339, %340 in 1 : vector<16x15xf32>, vector<16x1xf32> -> vector<16x16xf32>
    %342 = vector.extract_strided_slice %314 {offsets = [5, 0], sizes = [1, 16], strides = [1, 1]} : vector<9x16xf32> to vector<1x16xf32>
    %343 = vector.broadcast %342 : vector<1x16xf32> to vector<16x16xf32>
    %344 = arith.mulf %341, %343 : vector<16x16xf32>
    %345 = vector.extract_strided_slice %310 {offsets = [0, 3], sizes = [16, 13], strides = [1, 1]} : vector<16x16xf32> to vector<16x13xf32>
    %346 = vector.extract_strided_slice %310 {offsets = [0, 0], sizes = [16, 3], strides = [1, 1]} : vector<16x16xf32> to vector<16x3xf32>
    %347 = tpu.concatenate %345, %346 in 1 : vector<16x13xf32>, vector<16x3xf32> -> vector<16x16xf32>
    %348 = vector.extract_strided_slice %314 {offsets = [6, 0], sizes = [1, 16], strides = [1, 1]} : vector<9x16xf32> to vector<1x16xf32>
    %349 = vector.broadcast %348 : vector<1x16xf32> to vector<16x16xf32>
    %350 = arith.mulf %347, %349 : vector<16x16xf32>
    %351 = vector.extract_strided_slice %310 {offsets = [0, 4], sizes = [16, 12], strides = [1, 1]} : vector<16x16xf32> to vector<16x12xf32>
    %352 = vector.extract_strided_slice %310 {offsets = [0, 0], sizes = [16, 4], strides = [1, 1]} : vector<16x16xf32> to vector<16x4xf32>
    %353 = tpu.concatenate %351, %352 in 1 : vector<16x12xf32>, vector<16x4xf32> -> vector<16x16xf32>
    %354 = vector.extract_strided_slice %314 {offsets = [7, 0], sizes = [1, 16], strides = [1, 1]} : vector<9x16xf32> to vector<1x16xf32>
    %355 = vector.broadcast %354 : vector<1x16xf32> to vector<16x16xf32>
    %356 = arith.mulf %353, %355 : vector<16x16xf32>
    %357 = vector.extract_strided_slice %310 {offsets = [0, 5], sizes = [16, 11], strides = [1, 1]} : vector<16x16xf32> to vector<16x11xf32>
    %358 = vector.extract_strided_slice %310 {offsets = [0, 0], sizes = [16, 5], strides = [1, 1]} : vector<16x16xf32> to vector<16x5xf32>
    %359 = tpu.concatenate %357, %358 in 1 : vector<16x11xf32>, vector<16x5xf32> -> vector<16x16xf32>
    %360 = vector.extract_strided_slice %314 {offsets = [8, 0], sizes = [1, 16], strides = [1, 1]} : vector<9x16xf32> to vector<1x16xf32>
    %361 = vector.broadcast %360 : vector<1x16xf32> to vector<16x16xf32>
    %362 = arith.mulf %359, %361 : vector<16x16xf32>
    %cst_75 = arith.constant -1.000000e+00 : f32
    %363 = vector.broadcast %cst_75 : f32 to vector<16x16xf32>
    %364 = arith.mulf %363, %320 : vector<16x16xf32>
    %cst_76 = arith.constant -1.000000e+00 : f32
    %365 = vector.broadcast %cst_76 : f32 to vector<16x16xf32>
    %366 = arith.mulf %365, %320 : vector<16x16xf32>
    %cst_77 = arith.constant -2.000000e+00 : f32
    %367 = vector.broadcast %cst_77 : f32 to vector<16x16xf32>
    %368 = arith.mulf %367, %326 : vector<16x16xf32>
    %369 = arith.addf %366, %368 : vector<16x16xf32>
    %cst_78 = arith.constant 1.000000e+00 : f32
    %370 = vector.broadcast %cst_78 : f32 to vector<16x16xf32>
    %371 = arith.mulf %370, %332 : vector<16x16xf32>
    %372 = arith.addf %364, %371 : vector<16x16xf32>
    %cst_79 = arith.constant -1.000000e+00 : f32
    %373 = vector.broadcast %cst_79 : f32 to vector<16x16xf32>
    %374 = arith.mulf %373, %332 : vector<16x16xf32>
    %375 = arith.addf %369, %374 : vector<16x16xf32>
    %cst_80 = arith.constant -2.000000e+00 : f32
    %376 = vector.broadcast %cst_80 : f32 to vector<16x16xf32>
    %377 = arith.mulf %376, %338 : vector<16x16xf32>
    %378 = arith.addf %372, %377 : vector<16x16xf32>
    %cst_81 = arith.constant 2.000000e+00 : f32
    %379 = vector.broadcast %cst_81 : f32 to vector<16x16xf32>
    %380 = arith.mulf %379, %344 : vector<16x16xf32>
    %381 = arith.addf %378, %380 : vector<16x16xf32>
    %cst_82 = arith.constant -1.000000e+00 : f32
    %382 = vector.broadcast %cst_82 : f32 to vector<16x16xf32>
    %383 = arith.mulf %382, %350 : vector<16x16xf32>
    %384 = arith.addf %381, %383 : vector<16x16xf32>
    %cst_83 = arith.constant 1.000000e+00 : f32
    %385 = vector.broadcast %cst_83 : f32 to vector<16x16xf32>
    %386 = arith.mulf %385, %350 : vector<16x16xf32>
    %387 = arith.addf %375, %386 : vector<16x16xf32>
    %cst_84 = arith.constant 2.000000e+00 : f32
    %388 = vector.broadcast %cst_84 : f32 to vector<16x16xf32>
    %389 = arith.mulf %388, %356 : vector<16x16xf32>
    %390 = arith.addf %387, %389 : vector<16x16xf32>
    %cst_85 = arith.constant 1.000000e+00 : f32
    %391 = vector.broadcast %cst_85 : f32 to vector<16x16xf32>
    %392 = arith.mulf %391, %362 : vector<16x16xf32>
    %393 = arith.addf %384, %392 : vector<16x16xf32>
    %cst_86 = arith.constant 1.000000e+00 : f32
    %394 = vector.broadcast %cst_86 : f32 to vector<16x16xf32>
    %395 = arith.mulf %394, %362 : vector<16x16xf32>
    %396 = arith.addf %390, %395 : vector<16x16xf32>
    %397 = math.sin %393 : vector<16x16xf32>
    %398 = math.sin %396 : vector<16x16xf32>
    %399 = tpu.concatenate %310, %397, %398 in 0 : vector<16x16xf32>, vector<16x16xf32>, vector<16x16xf32> -> vector<48x16xf32>
    %c0_87 = arith.constant 0 : index
    %c0_88 = arith.constant 0 : index
    %c0_89 = arith.constant 0 : index
    %400 = vector.load %arg36[%c0_87, %c0_88, %c0_89] : memref<1x48x16xf32, #tpu.memory_space<vmem>>, vector<1x48x16xf32>
    %401 = vector.shape_cast %400 : vector<1x48x16xf32> to vector<48x16xf32>
    %402 = vector.shape_cast %399 : vector<48x16xf32> to vector<1x48x16xf32>
    tpu.vector_store %arg36[%c0_87, %c0_88, %c0_89], %402 {strides = array<i32>} : memref<1x48x16xf32, #tpu.memory_space<vmem>>, vector<1x48x16xf32>,
    %cst_90 = arith.constant dense<0.000000e+00> : vector<48xf32>
    %403 = vector.multi_reduction <add>, %399, %cst_90 [1] : vector<48x16xf32> to vector<48xf32>
    %404 = vector.shape_cast %403 : vector<48xf32> to vector<48x1xf32>
    %cst_91 = arith.constant 1.600000e+01 : f32
    %405 = vector.broadcast %cst_91 : f32 to vector<48x1xf32>
    %406 = arith.divf %404, %405 : vector<48x1xf32>
    %407 = vector.broadcast %406 : vector<48x1xf32> to vector<48x16xf32>
    %408 = arith.subf %399, %407 : vector<48x16xf32>
    %409 = arith.mulf %408, %408 : vector<48x16xf32>
    %cst_92 = arith.constant dense<0.000000e+00> : vector<48xf32>
    %410 = vector.multi_reduction <add>, %409, %cst_92 [1] : vector<48x16xf32> to vector<48xf32>
    %411 = vector.shape_cast %410 : vector<48xf32> to vector<48x1xf32>
    %cst_93 = arith.constant 1.600000e+01 : f32
    %412 = vector.broadcast %cst_93 : f32 to vector<48x1xf32>
    %413 = arith.divf %411, %412 : vector<48x1xf32>
    %cst_94 = arith.constant 9.99999974E-6 : f32
    %414 = vector.broadcast %cst_94 : f32 to vector<48x1xf32>
    %415 = arith.addf %413, %414 : vector<48x1xf32>
    %416 = math.rsqrt %415 : vector<48x1xf32>
    %417 = vector.broadcast %416 : vector<48x1xf32> to vector<48x16xf32>
    %418 = arith.mulf %408, %417 : vector<48x16xf32>
    %c0_95 = arith.constant 0 : index
    %c0_96 = arith.constant 0 : index
    %419 = vector.load %arg25[%c0_95, %c0_96] : memref<24x48xf32, #tpu.memory_space<vmem>>, vector<24x48xf32>
    %cst_97 = arith.constant dense<0.000000e+00> : vector<24x16xf32>
    %420 = tpu.matmul %419, %418, %cst_97 {dimension_numbers = #tpu.dot_dimension_numbers<[1], [0], [0], [1], [0, 0, 1, 1], [], []>} : vector<24x48xf32>, vector<48x16xf32>, vector<24x16xf32> -> vector<24x16xf32>
    %c0_98 = arith.constant 0 : index
    %c0_99 = arith.constant 0 : index
    %421 = vector.load %arg26[%c0_98, %c0_99] : memref<24x1xf32, #tpu.memory_space<vmem>>, vector<24x1xf32>
    %422 = vector.broadcast %421 : vector<24x1xf32> to vector<24x16xf32>
    %423 = arith.addf %420, %422 : vector<24x16xf32>
    %c0_100 = arith.constant 0 : index
    %c0_101 = arith.constant 0 : index
    %424 = vector.load %arg19[%c0_100, %c0_101] : memref<16x432xf32, #tpu.memory_space<vmem>>, vector<16x432xf32>
    %c0_102 = arith.constant 0 : index
    %c0_103 = arith.constant 0 : index
    %425 = vector.load %arg20[%c0_102, %c0_103] : memref<16x1xf32, #tpu.memory_space<vmem>>, vector<16x1xf32>
    %426 = vector.extract_strided_slice %418 {offsets = [0, 11], sizes = [48, 5], strides = [1, 1]} : vector<48x16xf32> to vector<48x5xf32>
    %427 = vector.extract_strided_slice %418 {offsets = [0, 0], sizes = [48, 11], strides = [1, 1]} : vector<48x16xf32> to vector<48x11xf32>
    %428 = tpu.concatenate %426, %427 in 1 : vector<48x5xf32>, vector<48x11xf32> -> vector<48x16xf32>
    %429 = vector.extract_strided_slice %314 {offsets = [0, 0], sizes = [1, 16], strides = [1, 1]} : vector<9x16xf32> to vector<1x16xf32>
    %430 = vector.broadcast %429 : vector<1x16xf32> to vector<48x16xf32>
    %431 = arith.mulf %428, %430 : vector<48x16xf32>
    %432 = vector.extract_strided_slice %418 {offsets = [0, 12], sizes = [48, 4], strides = [1, 1]} : vector<48x16xf32> to vector<48x4xf32>
    %433 = vector.extract_strided_slice %418 {offsets = [0, 0], sizes = [48, 12], strides = [1, 1]} : vector<48x16xf32> to vector<48x12xf32>
    %434 = tpu.concatenate %432, %433 in 1 : vector<48x4xf32>, vector<48x12xf32> -> vector<48x16xf32>
    %435 = vector.extract_strided_slice %314 {offsets = [1, 0], sizes = [1, 16], strides = [1, 1]} : vector<9x16xf32> to vector<1x16xf32>
    %436 = vector.broadcast %435 : vector<1x16xf32> to vector<48x16xf32>
    %437 = arith.mulf %434, %436 : vector<48x16xf32>
    %438 = vector.extract_strided_slice %418 {offsets = [0, 13], sizes = [48, 3], strides = [1, 1]} : vector<48x16xf32> to vector<48x3xf32>
    %439 = vector.extract_strided_slice %418 {offsets = [0, 0], sizes = [48, 13], strides = [1, 1]} : vector<48x16xf32> to vector<48x13xf32>
    %440 = tpu.concatenate %438, %439 in 1 : vector<48x3xf32>, vector<48x13xf32> -> vector<48x16xf32>
    %441 = vector.extract_strided_slice %314 {offsets = [2, 0], sizes = [1, 16], strides = [1, 1]} : vector<9x16xf32> to vector<1x16xf32>
    %442 = vector.broadcast %441 : vector<1x16xf32> to vector<48x16xf32>
    %443 = arith.mulf %440, %442 : vector<48x16xf32>
    %444 = vector.extract_strided_slice %418 {offsets = [0, 15], sizes = [48, 1], strides = [1, 1]} : vector<48x16xf32> to vector<48x1xf32>
    %445 = vector.extract_strided_slice %418 {offsets = [0, 0], sizes = [48, 15], strides = [1, 1]} : vector<48x16xf32> to vector<48x15xf32>
    %446 = tpu.concatenate %444, %445 in 1 : vector<48x1xf32>, vector<48x15xf32> -> vector<48x16xf32>
    %447 = vector.extract_strided_slice %314 {offsets = [3, 0], sizes = [1, 16], strides = [1, 1]} : vector<9x16xf32> to vector<1x16xf32>
    %448 = vector.broadcast %447 : vector<1x16xf32> to vector<48x16xf32>
    %449 = arith.mulf %446, %448 : vector<48x16xf32>
    %450 = vector.extract_strided_slice %418 {offsets = [0, 1], sizes = [48, 15], strides = [1, 1]} : vector<48x16xf32> to vector<48x15xf32>
    %451 = vector.extract_strided_slice %418 {offsets = [0, 0], sizes = [48, 1], strides = [1, 1]} : vector<48x16xf32> to vector<48x1xf32>
    %452 = tpu.concatenate %450, %451 in 1 : vector<48x15xf32>, vector<48x1xf32> -> vector<48x16xf32>
    %453 = vector.extract_strided_slice %314 {offsets = [5, 0], sizes = [1, 16], strides = [1, 1]} : vector<9x16xf32> to vector<1x16xf32>
    %454 = vector.broadcast %453 : vector<1x16xf32> to vector<48x16xf32>
    %455 = arith.mulf %452, %454 : vector<48x16xf32>
    %456 = vector.extract_strided_slice %418 {offsets = [0, 3], sizes = [48, 13], strides = [1, 1]} : vector<48x16xf32> to vector<48x13xf32>
    %457 = vector.extract_strided_slice %418 {offsets = [0, 0], sizes = [48, 3], strides = [1, 1]} : vector<48x16xf32> to vector<48x3xf32>
    %458 = tpu.concatenate %456, %457 in 1 : vector<48x13xf32>, vector<48x3xf32> -> vector<48x16xf32>
    %459 = vector.extract_strided_slice %314 {offsets = [6, 0], sizes = [1, 16], strides = [1, 1]} : vector<9x16xf32> to vector<1x16xf32>
    %460 = vector.broadcast %459 : vector<1x16xf32> to vector<48x16xf32>
    %461 = arith.mulf %458, %460 : vector<48x16xf32>
    %462 = vector.extract_strided_slice %418 {offsets = [0, 4], sizes = [48, 12], strides = [1, 1]} : vector<48x16xf32> to vector<48x12xf32>
    %463 = vector.extract_strided_slice %418 {offsets = [0, 0], sizes = [48, 4], strides = [1, 1]} : vector<48x16xf32> to vector<48x4xf32>
    %464 = tpu.concatenate %462, %463 in 1 : vector<48x12xf32>, vector<48x4xf32> -> vector<48x16xf32>
    %465 = vector.extract_strided_slice %314 {offsets = [7, 0], sizes = [1, 16], strides = [1, 1]} : vector<9x16xf32> to vector<1x16xf32>
    %466 = vector.broadcast %465 : vector<1x16xf32> to vector<48x16xf32>
    %467 = arith.mulf %464, %466 : vector<48x16xf32>
    %468 = vector.extract_strided_slice %418 {offsets = [0, 5], sizes = [48, 11], strides = [1, 1]} : vector<48x16xf32> to vector<48x11xf32>
    %469 = vector.extract_strided_slice %418 {offsets = [0, 0], sizes = [48, 5], strides = [1, 1]} : vector<48x16xf32> to vector<48x5xf32>
    %470 = tpu.concatenate %468, %469 in 1 : vector<48x11xf32>, vector<48x5xf32> -> vector<48x16xf32>
    %471 = vector.extract_strided_slice %314 {offsets = [8, 0], sizes = [1, 16], strides = [1, 1]} : vector<9x16xf32> to vector<1x16xf32>
    %472 = vector.broadcast %471 : vector<1x16xf32> to vector<48x16xf32>
    %473 = arith.mulf %470, %472 : vector<48x16xf32>
    %474 = tpu.concatenate %431, %437, %443, %449, %418, %455, %461, %467, %473 in 0 : vector<48x16xf32>, vector<48x16xf32>, vector<48x16xf32>, vector<48x16xf32>, vector<48x16xf32>, vector<48x16xf32>, vector<48x16xf32>, vector<48x16xf32>, vector<48x16xf32> -> vector<432x16xf32>
    %cst_104 = arith.constant dense<0.000000e+00> : vector<16x16xf32>
    %475 = tpu.matmul %424, %474, %cst_104 {dimension_numbers = #tpu.dot_dimension_numbers<[1], [0], [0], [1], [0, 0, 1, 1], [], []>} : vector<16x432xf32>, vector<432x16xf32>, vector<16x16xf32> -> vector<16x16xf32>
    %476 = vector.broadcast %425 : vector<16x1xf32> to vector<16x16xf32>
    %477 = arith.addf %475, %476 : vector<16x16xf32>
    %cst_105 = arith.constant 0.000000e+00 : f32
    %478 = vector.broadcast %cst_105 : f32 to vector<16x16xf32>
    %479 = arith.cmpf ogt, %477, %478 : vector<16x16xf32>
    %cst_106 = arith.constant 2.000000e-01 : f32
    %480 = vector.broadcast %cst_106 : f32 to vector<16x16xf32>
    %481 = arith.mulf %480, %477 : vector<16x16xf32>
    %482 = arith.select %479, %477, %481 : vector<16x16xi1>, vector<16x16xf32>
    %c0_107 = arith.constant 0 : index
    %c0_108 = arith.constant 0 : index
    %483 = vector.load %arg21[%c0_107, %c0_108] : memref<32x32xf32, #tpu.memory_space<vmem>>, vector<32x32xf32>
    %cst_109 = arith.constant dense<0.000000e+00> : vector<32x1xf32>
    %484 = tpu.matmul %483, %5, %cst_109 {dimension_numbers = #tpu.dot_dimension_numbers<[1], [0], [0], [1], [0, 0, 1, 1], [], []>} : vector<32x32xf32>, vector<32x1xf32>, vector<32x1xf32> -> vector<32x1xf32>
    %c0_110 = arith.constant 0 : index
    %c0_111 = arith.constant 0 : index
    %485 = vector.load %arg22[%c0_110, %c0_111] : memref<32x1xf32, #tpu.memory_space<vmem>>, vector<32x1xf32>
    %486 = arith.addf %484, %485 : vector<32x1xf32>
    %487 = vector.extract_strided_slice %486 {offsets = [0, 0], sizes = [16, 1], strides = [1, 1]} : vector<32x1xf32> to vector<16x1xf32>
    %cst_112 = arith.constant 1.000000e+00 : f32
    %488 = vector.broadcast %cst_112 : f32 to vector<16x1xf32>
    %489 = arith.addf %488, %487 : vector<16x1xf32>
    %490 = vector.broadcast %489 : vector<16x1xf32> to vector<16x16xf32>
    %491 = arith.mulf %482, %490 : vector<16x16xf32>
    %492 = vector.extract_strided_slice %486 {offsets = [16, 0], sizes = [16, 1], strides = [1, 1]} : vector<32x1xf32> to vector<16x1xf32>
    %493 = vector.broadcast %492 : vector<16x1xf32> to vector<16x16xf32>
    %494 = arith.addf %491, %493 : vector<16x16xf32>
    %cst_113 = arith.constant 0.000000e+00 : f32
    %495 = vector.broadcast %cst_113 : f32 to vector<16x16xf32>
    %496 = arith.cmpf ogt, %494, %495 : vector<16x16xf32>
    %cst_114 = arith.constant 2.000000e-01 : f32
    %497 = vector.broadcast %cst_114 : f32 to vector<16x16xf32>
    %498 = arith.mulf %497, %494 : vector<16x16xf32>
    %499 = arith.select %496, %494, %498 : vector<16x16xi1>, vector<16x16xf32>
    %c0_115 = arith.constant 0 : index
    %c0_116 = arith.constant 0 : index
    %500 = vector.load %arg23[%c0_115, %c0_116] : memref<24x144xf32, #tpu.memory_space<vmem>>, vector<24x144xf32>
    %c0_117 = arith.constant 0 : index
    %c0_118 = arith.constant 0 : index
    %501 = vector.load %arg24[%c0_117, %c0_118] : memref<24x1xf32, #tpu.memory_space<vmem>>, vector<24x1xf32>
    %502 = vector.extract_strided_slice %499 {offsets = [0, 11], sizes = [16, 5], strides = [1, 1]} : vector<16x16xf32> to vector<16x5xf32>
    %503 = vector.extract_strided_slice %499 {offsets = [0, 0], sizes = [16, 11], strides = [1, 1]} : vector<16x16xf32> to vector<16x11xf32>
    %504 = tpu.concatenate %502, %503 in 1 : vector<16x5xf32>, vector<16x11xf32> -> vector<16x16xf32>
    %505 = vector.extract_strided_slice %314 {offsets = [0, 0], sizes = [1, 16], strides = [1, 1]} : vector<9x16xf32> to vector<1x16xf32>
    %506 = vector.broadcast %505 : vector<1x16xf32> to vector<16x16xf32>
    %507 = arith.mulf %504, %506 : vector<16x16xf32>
    %508 = vector.extract_strided_slice %499 {offsets = [0, 12], sizes = [16, 4], strides = [1, 1]} : vector<16x16xf32> to vector<16x4xf32>
    %509 = vector.extract_strided_slice %499 {offsets = [0, 0], sizes = [16, 12], strides = [1, 1]} : vector<16x16xf32> to vector<16x12xf32>
    %510 = tpu.concatenate %508, %509 in 1 : vector<16x4xf32>, vector<16x12xf32> -> vector<16x16xf32>
    %511 = vector.extract_strided_slice %314 {offsets = [1, 0], sizes = [1, 16], strides = [1, 1]} : vector<9x16xf32> to vector<1x16xf32>
    %512 = vector.broadcast %511 : vector<1x16xf32> to vector<16x16xf32>
    %513 = arith.mulf %510, %512 : vector<16x16xf32>
    %514 = vector.extract_strided_slice %499 {offsets = [0, 13], sizes = [16, 3], strides = [1, 1]} : vector<16x16xf32> to vector<16x3xf32>
    %515 = vector.extract_strided_slice %499 {offsets = [0, 0], sizes = [16, 13], strides = [1, 1]} : vector<16x16xf32> to vector<16x13xf32>
    %516 = tpu.concatenate %514, %515 in 1 : vector<16x3xf32>, vector<16x13xf32> -> vector<16x16xf32>
    %517 = vector.extract_strided_slice %314 {offsets = [2, 0], sizes = [1, 16], strides = [1, 1]} : vector<9x16xf32> to vector<1x16xf32>
    %518 = vector.broadcast %517 : vector<1x16xf32> to vector<16x16xf32>
    %519 = arith.mulf %516, %518 : vector<16x16xf32>
    %520 = vector.extract_strided_slice %499 {offsets = [0, 15], sizes = [16, 1], strides = [1, 1]} : vector<16x16xf32> to vector<16x1xf32>
    %521 = vector.extract_strided_slice %499 {offsets = [0, 0], sizes = [16, 15], strides = [1, 1]} : vector<16x16xf32> to vector<16x15xf32>
    %522 = tpu.concatenate %520, %521 in 1 : vector<16x1xf32>, vector<16x15xf32> -> vector<16x16xf32>
    %523 = vector.extract_strided_slice %314 {offsets = [3, 0], sizes = [1, 16], strides = [1, 1]} : vector<9x16xf32> to vector<1x16xf32>
    %524 = vector.broadcast %523 : vector<1x16xf32> to vector<16x16xf32>
    %525 = arith.mulf %522, %524 : vector<16x16xf32>
    %526 = vector.extract_strided_slice %499 {offsets = [0, 1], sizes = [16, 15], strides = [1, 1]} : vector<16x16xf32> to vector<16x15xf32>
    %527 = vector.extract_strided_slice %499 {offsets = [0, 0], sizes = [16, 1], strides = [1, 1]} : vector<16x16xf32> to vector<16x1xf32>
    %528 = tpu.concatenate %526, %527 in 1 : vector<16x15xf32>, vector<16x1xf32> -> vector<16x16xf32>
    %529 = vector.extract_strided_slice %314 {offsets = [5, 0], sizes = [1, 16], strides = [1, 1]} : vector<9x16xf32> to vector<1x16xf32>
    %530 = vector.broadcast %529 : vector<1x16xf32> to vector<16x16xf32>
    %531 = arith.mulf %528, %530 : vector<16x16xf32>
    %532 = vector.extract_strided_slice %499 {offsets = [0, 3], sizes = [16, 13], strides = [1, 1]} : vector<16x16xf32> to vector<16x13xf32>
    %533 = vector.extract_strided_slice %499 {offsets = [0, 0], sizes = [16, 3], strides = [1, 1]} : vector<16x16xf32> to vector<16x3xf32>
    %534 = tpu.concatenate %532, %533 in 1 : vector<16x13xf32>, vector<16x3xf32> -> vector<16x16xf32>
    %535 = vector.extract_strided_slice %314 {offsets = [6, 0], sizes = [1, 16], strides = [1, 1]} : vector<9x16xf32> to vector<1x16xf32>
    %536 = vector.broadcast %535 : vector<1x16xf32> to vector<16x16xf32>
    %537 = arith.mulf %534, %536 : vector<16x16xf32>
    %538 = vector.extract_strided_slice %499 {offsets = [0, 4], sizes = [16, 12], strides = [1, 1]} : vector<16x16xf32> to vector<16x12xf32>
    %539 = vector.extract_strided_slice %499 {offsets = [0, 0], sizes = [16, 4], strides = [1, 1]} : vector<16x16xf32> to vector<16x4xf32>
    %540 = tpu.concatenate %538, %539 in 1 : vector<16x12xf32>, vector<16x4xf32> -> vector<16x16xf32>
    %541 = vector.extract_strided_slice %314 {offsets = [7, 0], sizes = [1, 16], strides = [1, 1]} : vector<9x16xf32> to vector<1x16xf32>
    %542 = vector.broadcast %541 : vector<1x16xf32> to vector<16x16xf32>
    %543 = arith.mulf %540, %542 : vector<16x16xf32>
    %544 = vector.extract_strided_slice %499 {offsets = [0, 5], sizes = [16, 11], strides = [1, 1]} : vector<16x16xf32> to vector<16x11xf32>
    %545 = vector.extract_strided_slice %499 {offsets = [0, 0], sizes = [16, 5], strides = [1, 1]} : vector<16x16xf32> to vector<16x5xf32>
    %546 = tpu.concatenate %544, %545 in 1 : vector<16x11xf32>, vector<16x5xf32> -> vector<16x16xf32>
    %547 = vector.extract_strided_slice %314 {offsets = [8, 0], sizes = [1, 16], strides = [1, 1]} : vector<9x16xf32> to vector<1x16xf32>
    %548 = vector.broadcast %547 : vector<1x16xf32> to vector<16x16xf32>
    %549 = arith.mulf %546, %548 : vector<16x16xf32>
    %550 = tpu.concatenate %507, %513, %519, %525, %499, %531, %537, %543, %549 in 0 : vector<16x16xf32>, vector<16x16xf32>, vector<16x16xf32>, vector<16x16xf32>, vector<16x16xf32>, vector<16x16xf32>, vector<16x16xf32>, vector<16x16xf32>, vector<16x16xf32> -> vector<144x16xf32>
    %cst_119 = arith.constant dense<0.000000e+00> : vector<24x16xf32>
    %551 = tpu.matmul %500, %550, %cst_119 {dimension_numbers = #tpu.dot_dimension_numbers<[1], [0], [0], [1], [0, 0, 1, 1], [], []>} : vector<24x144xf32>, vector<144x16xf32>, vector<24x16xf32> -> vector<24x16xf32>
    %552 = vector.broadcast %501 : vector<24x1xf32> to vector<24x16xf32>
    %553 = arith.addf %551, %552 : vector<24x16xf32>
    %cst_120 = arith.constant 1.000000e-01 : f32
    %554 = vector.broadcast %cst_120 : f32 to vector<24x16xf32>
    %555 = arith.mulf %554, %553 : vector<24x16xf32>
    %556 = arith.addf %423, %555 : vector<24x16xf32>
    %c0_121 = arith.constant 0 : index
    %c0_122 = arith.constant 0 : index
    %557 = vector.load %arg18[%c0_121, %c0_122] : memref<16x4xf32, #tpu.memory_space<vmem>>, vector<16x4xf32>
    %cst_123 = arith.constant dense<0.000000e+00> : vector<24x4xf32>
    %558 = tpu.matmul %556, %557, %cst_123 {dimension_numbers = #tpu.dot_dimension_numbers<[1], [0], [0], [1], [0, 0, 1, 1], [], []>} : vector<24x16xf32>, vector<16x4xf32>, vector<24x4xf32> -> vector<24x4xf32>
    %c0_124 = arith.constant 0 : index
    %c0_125 = arith.constant 0 : index
    %c0_126 = arith.constant 0 : index
    %559 = vector.load %arg37[%c0_124, %c0_125, %c0_126] : memref<1x24x4xf32, #tpu.memory_space<vmem>>, vector<1x24x4xf32>
    %560 = vector.shape_cast %559 : vector<1x24x4xf32> to vector<24x4xf32>
    %561 = vector.shape_cast %558 : vector<24x4xf32> to vector<1x24x4xf32>
    tpu.vector_store %arg37[%c0_124, %c0_125, %c0_126], %561 {strides = array<i32>} : memref<1x24x4xf32, #tpu.memory_space<vmem>>, vector<1x24x4xf32>,
    %562 = vector.extract_strided_slice %558 {offsets = [0, 0], sizes = [24, 1], strides = [1, 1]} : vector<24x4xf32> to vector<24x1xf32>
    %563 = vector.extract_strided_slice %558 {offsets = [0, 1], sizes = [24, 1], strides = [1, 1]} : vector<24x4xf32> to vector<24x1xf32>
    %564 = vector.extract_strided_slice %558 {offsets = [0, 2], sizes = [24, 1], strides = [1, 1]} : vector<24x4xf32> to vector<24x1xf32>
    %565 = vector.extract_strided_slice %558 {offsets = [0, 3], sizes = [24, 1], strides = [1, 1]} : vector<24x4xf32> to vector<24x1xf32>
    %566 = tpu.concatenate %562, %563, %564, %565 in 0 : vector<24x1xf32>, vector<24x1xf32>, vector<24x1xf32>, vector<24x1xf32> -> vector<96x1xf32>
    %c0_127 = arith.constant 0 : index
    %c0_128 = arith.constant 0 : index
    %567 = vector.load %arg27[%c0_127, %c0_128] : memref<32x96xf32, #tpu.memory_space<vmem>>, vector<32x96xf32>
    %cst_129 = arith.constant dense<0.000000e+00> : vector<32x1xf32>
    %568 = tpu.matmul %567, %566, %cst_129 {dimension_numbers = #tpu.dot_dimension_numbers<[1], [0], [0], [1], [0, 0, 1, 1], [], []>} : vector<32x96xf32>, vector<96x1xf32>, vector<32x1xf32> -> vector<32x1xf32>
    %c0_130 = arith.constant 0 : index
    %c0_131 = arith.constant 0 : index
    %569 = vector.load %arg28[%c0_130, %c0_131] : memref<32x1xf32, #tpu.memory_space<vmem>>, vector<32x1xf32>
    %570 = arith.addf %568, %569 : vector<32x1xf32>
    %c0_132 = arith.constant 0 : index
    %c0_133 = arith.constant 0 : index
    %571 = vector.load %arg29[%c0_132, %c0_133] : memref<32x96xf32, #tpu.memory_space<vmem>>, vector<32x96xf32>
    %cst_134 = arith.constant dense<0.000000e+00> : vector<32x1xf32>
    %572 = tpu.matmul %571, %566, %cst_134 {dimension_numbers = #tpu.dot_dimension_numbers<[1], [0], [0], [1], [0, 0, 1, 1], [], []>} : vector<32x96xf32>, vector<96x1xf32>, vector<32x1xf32> -> vector<32x1xf32>
    %c0_135 = arith.constant 0 : index
    %c0_136 = arith.constant 0 : index
    %573 = vector.load %arg30[%c0_135, %c0_136] : memref<32x1xf32, #tpu.memory_space<vmem>>, vector<32x1xf32>
    %574 = arith.addf %572, %573 : vector<32x1xf32>
    %cst_137 = arith.constant 0.000000e+00 : f32
    %575 = vector.broadcast %cst_137 : f32 to vector<32x1xf32>
    %576 = arith.cmpf ogt, %574, %575 : vector<32x1xf32>
    %cst_138 = arith.constant 2.000000e-01 : f32
    %577 = vector.broadcast %cst_138 : f32 to vector<32x1xf32>
    %578 = arith.mulf %577, %574 : vector<32x1xf32>
    %579 = arith.select %576, %574, %578 : vector<32x1xi1>, vector<32x1xf32>
    %c0_139 = arith.constant 0 : index
    %c0_140 = arith.constant 0 : index
    %580 = vector.load %arg31[%c0_139, %c0_140] : memref<32x32xf32, #tpu.memory_space<vmem>>, vector<32x32xf32>
    %cst_141 = arith.constant dense<0.000000e+00> : vector<32x1xf32>
    %581 = tpu.matmul %580, %579, %cst_141 {dimension_numbers = #tpu.dot_dimension_numbers<[1], [0], [0], [1], [0, 0, 1, 1], [], []>} : vector<32x32xf32>, vector<32x1xf32>, vector<32x1xf32> -> vector<32x1xf32>
    %c0_142 = arith.constant 0 : index
    %c0_143 = arith.constant 0 : index
    %582 = vector.load %arg32[%c0_142, %c0_143] : memref<32x1xf32, #tpu.memory_space<vmem>>, vector<32x1xf32>
    %583 = arith.addf %581, %582 : vector<32x1xf32>
    %cst_144 = arith.constant 1.000000e-01 : f32
    %584 = vector.broadcast %cst_144 : f32 to vector<32x1xf32>
    %585 = arith.mulf %584, %583 : vector<32x1xf32>
    %586 = arith.addf %570, %585 : vector<32x1xf32>
    %c0_145 = arith.constant 0 : index
    %c0_146 = arith.constant 0 : index
    %c0_147 = arith.constant 0 : index
    %587 = vector.load %arg38[%c0_145, %c0_146, %c0_147] : memref<1x32x1xf32, #tpu.memory_space<vmem>>, vector<1x32x1xf32>
    %588 = vector.shape_cast %587 : vector<1x32x1xf32> to vector<32x1xf32>
    %589 = vector.shape_cast %586 : vector<32x1xf32> to vector<1x32x1xf32>
    tpu.vector_store %arg38[%c0_145, %c0_146, %c0_147], %589 {strides = array<i32>} : memref<1x32x1xf32, #tpu.memory_space<vmem>>, vector<1x32x1xf32>,
    return
  }
  func.func @transform_0(%arg0: i32) -> (i32, i32, i32) {
    %c0_i32 = arith.constant 0 : i32
    %c0_i32_0 = arith.constant 0 : i32
    %c0_i32_1 = arith.constant 0 : i32
    return %arg0, %c0_i32, %c0_i32_0 : i32, i32, i32
  }
  func.func @transform_1(%arg0: i32) -> (i32, i32, i32) {
    %c0_i32 = arith.constant 0 : i32
    %c0_i32_0 = arith.constant 0 : i32
    %c0_i32_1 = arith.constant 0 : i32
    return %arg0, %c0_i32, %c0_i32_0 : i32, i32, i32
  }
  func.func @transform_2(%arg0: i32) -> (i32, i32) {
    %c0_i32 = arith.constant 0 : i32
    %c0_i32_0 = arith.constant 0 : i32
    %c0_i32_1 = arith.constant 0 : i32
    return %c0_i32, %c0_i32_0 : i32, i32
  }
  func.func @transform_3(%arg0: i32) -> (i32, i32) {
    %c0_i32 = arith.constant 0 : i32
    %c0_i32_0 = arith.constant 0 : i32
    %c0_i32_1 = arith.constant 0 : i32
    return %c0_i32, %c0_i32_0 : i32, i32
  }
  func.func @transform_4(%arg0: i32) -> (i32, i32) {
    %c0_i32 = arith.constant 0 : i32
    %c0_i32_0 = arith.constant 0 : i32
    %c0_i32_1 = arith.constant 0 : i32
    return %c0_i32, %c0_i32_0 : i32, i32
  }
  func.func @transform_5(%arg0: i32) -> (i32, i32) {
    %c0_i32 = arith.constant 0 : i32
    %c0_i32_0 = arith.constant 0 : i32
    %c0_i32_1 = arith.constant 0 : i32
    return %c0_i32, %c0_i32_0 : i32, i32
  }
  func.func @transform_6(%arg0: i32) -> (i32, i32) {
    %c0_i32 = arith.constant 0 : i32
    %c0_i32_0 = arith.constant 0 : i32
    %c0_i32_1 = arith.constant 0 : i32
    return %c0_i32, %c0_i32_0 : i32, i32
  }
  func.func @transform_7(%arg0: i32) -> (i32, i32) {
    %c0_i32 = arith.constant 0 : i32
    %c0_i32_0 = arith.constant 0 : i32
    %c0_i32_1 = arith.constant 0 : i32
    return %c0_i32, %c0_i32_0 : i32, i32
  }
  func.func @transform_8(%arg0: i32) -> (i32, i32) {
    %c0_i32 = arith.constant 0 : i32
    %c0_i32_0 = arith.constant 0 : i32
    %c0_i32_1 = arith.constant 0 : i32
    return %c0_i32, %c0_i32_0 : i32, i32
  }
  func.func @transform_9(%arg0: i32) -> (i32, i32) {
    %c0_i32 = arith.constant 0 : i32
    %c0_i32_0 = arith.constant 0 : i32
    %c0_i32_1 = arith.constant 0 : i32
    return %c0_i32, %c0_i32_0 : i32, i32
  }
  func.func @transform_10(%arg0: i32) -> (i32, i32) {
    %c0_i32 = arith.constant 0 : i32
    %c0_i32_0 = arith.constant 0 : i32
    %c0_i32_1 = arith.constant 0 : i32
    return %c0_i32, %c0_i32_0 : i32, i32
  }
  func.func @transform_11(%arg0: i32) -> (i32, i32) {
    %c0_i32 = arith.constant 0 : i32
    %c0_i32_0 = arith.constant 0 : i32
    %c0_i32_1 = arith.constant 0 : i32
    return %c0_i32, %c0_i32_0 : i32, i32
  }
  func.func @transform_12(%arg0: i32) -> (i32, i32) {
    %c0_i32 = arith.constant 0 : i32
    %c0_i32_0 = arith.constant 0 : i32
    %c0_i32_1 = arith.constant 0 : i32
    return %c0_i32, %c0_i32_0 : i32, i32
  }
  func.func @transform_13(%arg0: i32) -> (i32, i32) {
    %c0_i32 = arith.constant 0 : i32
    %c0_i32_0 = arith.constant 0 : i32
    %c0_i32_1 = arith.constant 0 : i32
    return %c0_i32, %c0_i32_0 : i32, i32
  }
  func.func @transform_14(%arg0: i32) -> (i32, i32) {
    %c0_i32 = arith.constant 0 : i32
    %c0_i32_0 = arith.constant 0 : i32
    %c0_i32_1 = arith.constant 0 : i32
    return %c0_i32, %c0_i32_0 : i32, i32
  }
  func.func @transform_15(%arg0: i32) -> (i32, i32) {
    %c0_i32 = arith.constant 0 : i32
    %c0_i32_0 = arith.constant 0 : i32
    %c0_i32_1 = arith.constant 0 : i32
    return %c0_i32, %c0_i32_0 : i32, i32
  }
  func.func @transform_16(%arg0: i32) -> (i32, i32) {
    %c0_i32 = arith.constant 0 : i32
    %c0_i32_0 = arith.constant 0 : i32
    %c0_i32_1 = arith.constant 0 : i32
    return %c0_i32, %c0_i32_0 : i32, i32
  }
  func.func @transform_17(%arg0: i32) -> (i32, i32) {
    %c0_i32 = arith.constant 0 : i32
    %c0_i32_0 = arith.constant 0 : i32
    %c0_i32_1 = arith.constant 0 : i32
    return %c0_i32, %c0_i32_0 : i32, i32
  }
  func.func @transform_18(%arg0: i32) -> (i32, i32) {
    %c0_i32 = arith.constant 0 : i32
    %c0_i32_0 = arith.constant 0 : i32
    %c0_i32_1 = arith.constant 0 : i32
    return %c0_i32, %c0_i32_0 : i32, i32
  }
  func.func @transform_19(%arg0: i32) -> (i32, i32) {
    %c0_i32 = arith.constant 0 : i32
    %c0_i32_0 = arith.constant 0 : i32
    %c0_i32_1 = arith.constant 0 : i32
    return %c0_i32, %c0_i32_0 : i32, i32
  }
  func.func @transform_20(%arg0: i32) -> (i32, i32) {
    %c0_i32 = arith.constant 0 : i32
    %c0_i32_0 = arith.constant 0 : i32
    %c0_i32_1 = arith.constant 0 : i32
    return %c0_i32, %c0_i32_0 : i32, i32
  }
  func.func @transform_21(%arg0: i32) -> (i32, i32) {
    %c0_i32 = arith.constant 0 : i32
    %c0_i32_0 = arith.constant 0 : i32
    %c0_i32_1 = arith.constant 0 : i32
    return %c0_i32, %c0_i32_0 : i32, i32
  }
  func.func @transform_22(%arg0: i32) -> (i32, i32) {
    %c0_i32 = arith.constant 0 : i32
    %c0_i32_0 = arith.constant 0 : i32
    %c0_i32_1 = arith.constant 0 : i32
    return %c0_i32, %c0_i32_0 : i32, i32
  }
  func.func @transform_23(%arg0: i32) -> (i32, i32) {
    %c0_i32 = arith.constant 0 : i32
    %c0_i32_0 = arith.constant 0 : i32
    %c0_i32_1 = arith.constant 0 : i32
    return %c0_i32, %c0_i32_0 : i32, i32
  }
  func.func @transform_24(%arg0: i32) -> (i32, i32) {
    %c0_i32 = arith.constant 0 : i32
    %c0_i32_0 = arith.constant 0 : i32
    %c0_i32_1 = arith.constant 0 : i32
    return %c0_i32, %c0_i32_0 : i32, i32
  }
  func.func @transform_25(%arg0: i32) -> (i32, i32) {
    %c0_i32 = arith.constant 0 : i32
    %c0_i32_0 = arith.constant 0 : i32
    %c0_i32_1 = arith.constant 0 : i32
    return %c0_i32, %c0_i32_0 : i32, i32
  }
  func.func @transform_26(%arg0: i32) -> (i32, i32) {
    %c0_i32 = arith.constant 0 : i32
    %c0_i32_0 = arith.constant 0 : i32
    %c0_i32_1 = arith.constant 0 : i32
    return %c0_i32, %c0_i32_0 : i32, i32
  }
  func.func @transform_27(%arg0: i32) -> (i32, i32) {
    %c0_i32 = arith.constant 0 : i32
    %c0_i32_0 = arith.constant 0 : i32
    %c0_i32_1 = arith.constant 0 : i32
    return %c0_i32, %c0_i32_0 : i32, i32
  }
  func.func @transform_28(%arg0: i32) -> (i32, i32) {
    %c0_i32 = arith.constant 0 : i32
    %c0_i32_0 = arith.constant 0 : i32
    %c0_i32_1 = arith.constant 0 : i32
    return %c0_i32, %c0_i32_0 : i32, i32
  }
  func.func @transform_29(%arg0: i32) -> (i32, i32) {
    %c0_i32 = arith.constant 0 : i32
    %c0_i32_0 = arith.constant 0 : i32
    %c0_i32_1 = arith.constant 0 : i32
    return %c0_i32, %c0_i32_0 : i32, i32
  }
  func.func @transform_30(%arg0: i32) -> (i32, i32) {
    %c0_i32 = arith.constant 0 : i32
    %c0_i32_0 = arith.constant 0 : i32
    %c0_i32_1 = arith.constant 0 : i32
    return %c0_i32, %c0_i32_0 : i32, i32
  }
  func.func @transform_31(%arg0: i32) -> (i32, i32) {
    %c0_i32 = arith.constant 0 : i32
    %c0_i32_0 = arith.constant 0 : i32
    %c0_i32_1 = arith.constant 0 : i32
    return %c0_i32, %c0_i32_0 : i32, i32
  }
  func.func @transform_32(%arg0: i32) -> (i32, i32, i32) {
    %c0_i32 = arith.constant 0 : i32
    %c0_i32_0 = arith.constant 0 : i32
    %c0_i32_1 = arith.constant 0 : i32
    return %arg0, %c0_i32, %c0_i32_0 : i32, i32, i32
  }
  func.func @transform_33(%arg0: i32) -> (i32, i32, i32) {
    %c0_i32 = arith.constant 0 : i32
    %c0_i32_0 = arith.constant 0 : i32
    %c0_i32_1 = arith.constant 0 : i32
    return %arg0, %c0_i32, %c0_i32_0 : i32, i32, i32
  }
  func.func @transform_34(%arg0: i32) -> (i32, i32, i32) {
    %c0_i32 = arith.constant 0 : i32
    %c0_i32_0 = arith.constant 0 : i32
    %c0_i32_1 = arith.constant 0 : i32
    return %arg0, %c0_i32, %c0_i32_0 : i32, i32, i32
  }
  func.func @transform_35(%arg0: i32) -> (i32, i32, i32) {
    %c0_i32 = arith.constant 0 : i32
    %c0_i32_0 = arith.constant 0 : i32
    %c0_i32_1 = arith.constant 0 : i32
    return %arg0, %c0_i32, %c0_i32_0 : i32, i32, i32
  }
  func.func @transform_36(%arg0: i32) -> (i32, i32, i32) {
    %c0_i32 = arith.constant 0 : i32
    %c0_i32_0 = arith.constant 0 : i32
    %c0_i32_1 = arith.constant 0 : i32
    return %arg0, %c0_i32, %c0_i32_0 : i32, i32, i32
  }
  func.func @transform_37(%arg0: i32) -> (i32, i32, i32) {
    %c0_i32 = arith.constant 0 : i32
    %c0_i32_0 = arith.constant 0 : i32
    %c0_i32_1 = arith.constant 0 : i32
    return %arg0, %c0_i32, %c0_i32_0 : i32, i32, i32
  }
}

</mosaic_0001>

<bundles_post_ra>
// kernel: labs_injected_encoder_forward.1
= control target key start
LH: loop header
LB: loop body
LE: loop exit
PB: predicated region body
PF: predicated region fallthrough
CT: control target
= control target key end

     0   :  { %s4917_s6 = smov 1   ;;  %s4918_s10 = smov 2   ;;  %s7074_s0 = inlined_call_operand.smem [shape: u32[38], index: -1, kind: input, shape index: {}] }
   0x1   :  { %s5002_s5 = sld [smem:[%s7074_s0]]   ;;  %s4919_s14 = smov 3  }
   0x2   :  { %s5007_s9 = sld [smem:[%s7074_s0 + %s4917_s6]]   ;;  %s4920_s18 = smov 4  }
   0x3   :  { %s5012_s13 = sld [smem:[%s7074_s0 + %s4918_s10]]   ;;  %s4921_s22 = smov 5  }
   0x4   :  { %s5017_s17 = sld [smem:[%s7074_s0 + %s4919_s14]]   ;;  %s4922_s26 = smov 6  }
   0x5   :  { %s5022_s21 = sld [smem:[%s7074_s0 + %s4920_s18]]   ;;  %s4923_s30 = smov 7  }
   0x6   :  { %s5027_s25 = sld [smem:[%s7074_s0 + %s4921_s22]]   ;;  %s4924_s4 = smov 8  }
   0x7   :  { %7179 = sst [smem:[#allocation2_spill]] %s5002_s5  ;;  %s4925_s10 = smov 9  }
   0x8   :  { %7180 = sst [smem:[#allocation3_spill]] %s5007_s9  ;;  %s4926_s15 = smov 10  }
   0x9   :  { %7181 = sst [smem:[#allocation4_spill]] %s5012_s13  ;;  %s4927_s20 = smov 11  }
   0xa   :  { %7182 = sst [smem:[#allocation5_spill]] %s5017_s17  ;;  %s4929_s1 = smov 13  }
   0xb   :  { %s5032_s29 = sld [smem:[%s7074_s0 + %s4922_s26]]   ;;  %s4928_s26 = smov 12  }
   0xc   :  { %s5037_s3 = sld [smem:[%s7074_s0 + %s4923_s30]]   ;;  %s4930_s7 = smov 14  }
   0xd   :  { %s5042_s8 = sld [smem:[%s7074_s0 + %s4924_s4]]   ;;  %s4932_s22 = smov 16  }
   0xe   :  { %s5047_s14 = sld [smem:[%s7074_s0 + %s4925_s10]]   ;;  %s4933_s28 = smov 17  }
   0xf   :  { %s5052_s19 = sld [smem:[%s7074_s0 + %s4926_s15]]   ;;  %s4931_s15 = smov 15  }
  0x10   :  { %s5057_s24 = sld [smem:[%s7074_s0 + %s4927_s20]]  }
  0x11   :  { %s5062_s30 = sld [smem:[%s7074_s0 + %s4928_s26]]  }
  0x12   :  { %7183 = sst [smem:[#allocation6_spill]] %s5037_s3 }
  0x13   :  { %7184 = sst [smem:[#allocation7_spill]] %s5042_s8 }
  0x14   :  { %s5067_s6 = sld [smem:[%s7074_s0 + %s4929_s1]]  }
  0x15   :  { %s5072_s12 = sld [smem:[%s7074_s0 + %s4930_s7]]   ;;  %s4934_s7 = smov 18  }
  0x16   :  { %s5077_s20 = sld [smem:[%s7074_s0 + %s4931_s15]]   ;;  %s4935_s15 = smov 19  }
  0x17   :  { %7185 = sst [smem:[#allocation8_spill]] %s5062_s30 }
  0x18   :  { %s5082_s27 = sld [smem:[%s7074_s0 + %s4932_s22]]   ;;  %s4936_s22 = smov 20  }
  0x19   :  { %s5087_s4 = sld [smem:[%s7074_s0 + %s4933_s28]]   ;;  %s4937_s28 = smov 21  }
  0x1a   :  { %7186 = sst [smem:[#allocation9_spill]] %s5067_s6 }
  0x1b   :  { %7187 = sst [smem:[#allocation10_spill]] %s5072_s12 }
  0x1c   :  { %7188 = sst [smem:[#allocation11_spill]] %s5077_s20 }
  0x1d   :  { %s5092_s30 = sld [smem:[%s7074_s0 + %s4934_s7]]   ;;  %s4938_s7 = smov 22  }
  0x1e   :  { %7189 = sst [smem:[#allocation12_spill]] %s5082_s27 }
  0x1f   :  { %7190 = sst [smem:[#allocation13_spill]] %s5087_s4 }
  0x20   :  { %s5097_s3 = sld [smem:[%s7074_s0 + %s4935_s15]]   ;;  %s4939_s15 = smov 23  }
  0x21   :  { %s5102_s27 = sld [smem:[%s7074_s0 + %s4936_s22]]   ;;  %s4940_s22 = smov 24  }
  0x22   :  { %s5107_s4 = sld [smem:[%s7074_s0 + %s4937_s28]]   ;;  %s4941_s28 = smov 25  }
  0x23   :  { %7191 = sst [smem:[#allocation14_spill]] %s5092_s30 }
  0x24   :  { %s5112_s30 = sld [smem:[%s7074_s0 + %s4938_s7]]   ;;  %s4942_s7 = smov 26  }
  0x26   :  { %7192 = sst [smem:[#allocation15_spill]] %s5097_s3 }
  0x27   :  { %7193 = sst [smem:[#allocation16_spill]] %s5102_s27 }
  0x28   :  { %7194 = sst [smem:[#allocation17_spill]] %s5107_s4 }
  0x29   :  { %s5117_s3 = sld [smem:[%s7074_s0 + %s4939_s15]]   ;;  %s4943_s15 = smov 27  }
  0x2a   :  { %7195 = sst [smem:[#allocation18_spill]] %s5112_s30 }
  0x2b   :  { %s5122_s27 = sld [smem:[%s7074_s0 + %s4940_s22]]   ;;  %s4944_s22 = smov 28  }
  0x2c   :  { %s5127_s4 = sld [smem:[%s7074_s0 + %s4941_s28]]   ;;  %s4945_s28 = smov 29  }
  0x2d   :  { %s5132_s30 = sld [smem:[%s7074_s0 + %s4942_s7]]   ;;  %s4946_s7 = smov 30  }
  0x2f   :  { %7196 = sst [smem:[#allocation19_spill]] %s5117_s3 }
  0x30   :  { %s5137_s3 = sld [smem:[%s7074_s0 + %s4943_s15]]   ;;  %s4947_s15 = smov 31  }
  0x31   :  { %7197 = sst [smem:[#allocation20_spill]] %s5122_s27 }
  0x32   :  { %7198 = sst [smem:[#allocation21_spill]] %s5127_s4 }
  0x33   :  { %7199 = sst [smem:[#allocation22_spill]] %s5132_s30 }
  0x34   :  { %s5142_s27 = sld [smem:[%s7074_s0 + %s4944_s22]]   ;;  %s4948_s22 = smov 32  }
  0x35   :  { %s5147_s4 = sld [smem:[%s7074_s0 + %s4945_s28]]   ;;  %s4949_s28 = smov 33  }
  0x36   :  { %7200 = sst [smem:[#allocation23_spill]] %s5137_s3 }
  0x37   :  { %s5152_s30 = sld [smem:[%s7074_s0 + %s4946_s7]]   ;;  %s4950_s7 = smov 34  }
  0x38   :  { %s5157_s3 = sld [smem:[%s7074_s0 + %s4947_s15]]   ;;  %s4951_s15 = smov 35  }
  0x3a   :  { %7201 = sst [smem:[#allocation24_spill]] %s5142_s27 }
  0x3b   :  { %7202 = sst [smem:[#allocation25_spill]] %s5147_s4 }
  0x3c   :  { %s5162_s27 = sld [smem:[%s7074_s0 + %s4948_s22]]   ;;  %s4952_s22 = smov 36  }
  0x3d   :  { %7203 = sst [smem:[#allocation26_spill]] %s5152_s30 }
  0x3e   :  { %7204 = sst [smem:[#allocation27_spill]] %s5157_s3 }
  0x3f   :  { %s5167_s4 = sld [smem:[%s7074_s0 + %s4949_s28]]   ;;  %s4953_s28 = smov 37  }
  0x40   :  { %s5172_s30 = sld [smem:[%s7074_s0 + %s4950_s7]]   ;;  %s5189_s7 = smov 0  }
  0x41   :  { %s5177_s3 = sld [smem:[%s7074_s0 + %s4951_s15]]  }
  0x42   :  { %s5182_s6 = sld [smem:[%s7074_s0 + %s4952_s22]]  }
  0x43   :  { %s5187_s20 = sld [smem:[%s7074_s0 + %s4953_s28]]  }
  0x45   :  { %7205 = sst [smem:[#allocation28_spill]] %s5167_s4 }
  0x47   :  { %7206 = sst [smem:[#allocation29_spill]] %s5177_s3 }
  0x48 LB: > { %s7207_s12 = sld [smem:[#allocation10_spill]]  ;;  %s4696_s10 = sadd.s32 4294967295, %s4915_s7   ;;  %s4915_s7 = sphi %s5189_s7, %s86_s7  }
  0x49   : > { %s7208_s8 = sld [smem:[#allocation7_spill]]  ;;  %p4700_p0 = scmp.ge.s32.totalorder %s4915_s7, 1 }
  0x4a   : > { %p1045_p1 = scmp.lt.s32.totalorder %s4915_s7, 3 }
  0x4c   : > { %p1046_p2 = pnand %p4700_p0, %p1045_p1 }
  0x4d   : > { %p1165_p3 = scmp.lt.s32.totalorder (!%p1046_p2), %s4696_s10, 1  ;;  %s7209_s5 = sld [smem:[#allocation2_spill]] (!%p1046_p2) }
  0x4e   : > { %1049 = sbr.rel (%p1046_p2) target bundleno = 3749 (0xea5), region = 148  ;;  %s7101_s15 = smov (!%p1046_p2), 119  }
  0x4f   : > { %s7097_s16 = smov (!%p1046_p2), 120   ;;  %s7127_s18 = smov (!%p1046_p2), 127  }
  0x50   : > { %s7095_s22 = smov (!%p1046_p2), 55   ;;  %s7099_s23 = smov (!%p1046_p2), 56  }
  0x51   : > { %s7103_s26 = smov (!%p1046_p2), 63   ;;  %s7107_s28 = smov (!%p1046_p2), 57  }
  0x52   : > { %s7105_s1 = smov (!%p1046_p2), 121   ;;  %s7109_s2 = smov (!%p1046_p2), 65  }
  0x53   : > { %s7309_s10 = smov (!%p1165_p3, %s4696_s10), 1  ;;  %vm1339_vm0 = vcmask 449536   ;;  %v4882_v4 = vld [vmem:[%s5032_s29 + $0x8] ss:$0 sm:$0xff]  ;;  %v1257_v5 = vld [vmem:[%s5032_s29] sm:$0xff]  ;;  %vm1309_vm1 = vcmask 515072  }
  0x54   : > { %s4701_s0 = sshll.u32 %s7309_s10, 2  ;;  %s7210_s17 = sld [smem:[#allocation5_spill]]  ;;  %vm1329_vm2 = vcmask 457728   ;;  %vm1355_vm3 = vcmask 1043456   ;;  %v5238_v10 = vperm.slane %v1257_v5, 5  ;;  %v5240_v11 = vperm.slane %v1257_v5, 7 }
  0x55   : > { %s1168_s11 = scalar_lea.vmem %s7209_s5, %s4701_s0  ;;  %s7122_s0 = smov 72   ;;  %vm1319_vm4 = vcmask 465920   ;;  %v5247_v17 = vperm.slane %v1257_v5, 6  ;;  %v4970_v19 = vmov 0   ;;  %vm1299_vm5 = vcmask 7168  }
  0x56   : > { %v5201_v0 = vld [vmem:[%s1168_s11] sm:$0xf]  ;;  %s7111_s11 = smov 1   ;;  %4864 = vset.pattern.permute.xlu1 %v4970_v19  ;;  %4865 = vset.pattern.permute.xlu0 %v4970_v19  ;;  %v5258_v31 = vperm.slane %v1257_v5, 3  ;;  %vm1289_vm6 = vcmask 56320   ;;  %v5262_v35 = vperm.slane %v1257_v5, 2 }
  0x57   : > { %1333 = vrot.lane.b32.xlu1 %v5201_v0, %s7101_s15  ;;  %1323 = vrot.lane.b32.xlu0 %v5201_v0, %s7097_s16  ;;  %s7118_s16 = smov 7   ;;  %s7116_s15 = smov 73   ;;  %vm1279_vm7 = vcmask 64512   ;;  %v5265_v40 = vperm.slane %v1257_v5, 1  ;;  %vm7126_vm8 = vcmask 72704   ;;  %v5271_v46 = vperm.slane %v1257_v5, 0 }
  0x58   : > { %1303 = vrot.lane.b32.xlu2 %v5201_v0, %s7127_s18  ;;  %s7211_s13 = sld [smem:[#allocation4_spill]]  ;;  %vm1365_vm9 = vcmask 293888   ;;  %vm1392_vm10 = vcmask 523264   ;;  %s7228_s5 = smov 7  }
  0x59   : > { %4866 = vset.pattern.permute.xlu2 %v4970_v19  ;;  %s7212_s4 = sld [smem:[#allocation28_spill]] }
  0x5a   : > { %v1261_v18 = vld [vmem:[%s7210_s17] sm:$0xff]  ;;  %s7224_s9 = sld [smem:[#allocation3_spill]]  ;;  %s7231_s17 = smov 9  }
  0x5b   : > { %s7240_s3 = sld [smem:[#allocation29_spill]] }
  0x5e   : > { %v1260_v51 = vld [vmem:[%s7211_s13] sm:$0xff]  ;;  %s7230_s13 = smov 8  }
  0x5f   : > { %1336 = vrot.lane.b32.xlu1 %v5201_v0, %s7095_s22  ;;  %1326 = vrot.lane.b32.xlu0 %v5201_v0, %s7099_s23  ;;  %s7120_s22 = smov 8   ;;  %s7124_s23 = smov 71  }
  0x60   : > { %1306 = vrot.lane.b32.xlu2 %v5201_v0, %s7103_s26  ;;  %s7114_s26 = smov 9  }
  0x67   : > { %1316 = vrot.lane.b32.xlu1 %v5201_v0, %s7107_s28  ;;  %1313 = vrot.lane.b32.xlu0 %v5201_v0, %s7105_s1  ;;  %s4704_s1 = sshll.u32 %s7309_s10, 3  ;;  %s7113_s28 = smul.u32 24, %s7309_s10 }
  0x68   : > { %1293 = vrot.lane.b32.xlu2 %v5201_v0, %s7109_s2  ;;  %s1177_s2 = scalar_lea.vmem %s5162_s27, %s4704_s1  ;;  %s7213_s1 = smov 1  }
  0x6f   : > { %1273 = vrot.lane.b32.xlu1 %v5201_v0, %s7122_s0  ;;  %1296 = vrot.lane.b32.xlu0 %v5201_v0, %s7111_s11  ;;  %s5285_s11 = scalar_lea.vmem %s7212_s4, %s7113_s28  ;;  %s7215_s28 = smov 57  }
  0x70   : > { %1276 = vrot.lane.b32.xlu2 %v5201_v0, %s7120_s22 }
  0x77   : > { %1286 = vrot.lane.b32.xlu1 %v5201_v0, %s7118_s16  ;;  %1283 = vrot.lane.b32.xlu0 %v5201_v0, %s7124_s23 }
  0x78   : > { %1263 = vrot.lane.b32.xlu2 %v5201_v0, %s7116_s15 }
  0x7f   : > { %1266 = vrot.lane.b32.xlu0 %v5201_v0, %s7114_s26  ;;  %1362 = vperm.xlu1 %4864, %v1261_v18  }
  0xb2   : > { %v1304_v1 = vpop.permute.xlu2 %1303 }
  0xba   : > { %v1307_v6 = vpop.permute.xlu2 %1306 }
  0xbb   : > { %v1310_v13 = vsel %vm1309_vm1, %v1304_v1, %v1307_v6 }
  0xbc   : > { %v1312_v15 = vmul.f32 %v5238_v10, %v1310_v13 }
  0xbe   : > { %v1350_v23 = vrot.slane %v1312_v15, 4 }
  0xc0   : > { %v1358_v28 = vsel %vm1355_vm3, %v5201_v0, %v1350_v23 }
  0xc2   : > { %v1294_v27 = vpop.permute.xlu2 %1293 }
  0xc9   : > { %v1334_v2 = vpop.permute.xlu1 %1333  ;;  %v1324_v3 = vpop.permute.xlu0 %1323 }
  0xca   : > { %v1277_v34 = vpop.permute.xlu2 %1276 }
  0xd1   : > { %v1337_v7 = vpop.permute.xlu1 %1336  ;;  %v1327_v8 = vpop.permute.xlu0 %1326 }
  0xd2   : > { %v1340_v9 = vsel %vm1339_vm0, %v1334_v2, %v1337_v7  ;;  %v1330_v14 = vsel %vm1329_vm2, %v1324_v3, %v1327_v8  ;;  %v1264_v45 = vpop.permute.xlu2 %1263 }
  0xd3   : > { %v1342_v12 = vmul.f32 %v4882_v4, %v1340_v9  ;;  %v1332_v16 = vmul.f32 %v5240_v11, %v1330_v14 }
  0xd5   : > { %4716 = vmatpush.msk.msra.mxu2 %vm1355_vm3, %v1342_v12  ;;  %v1353_v24 = vrot.slane %v1332_v16, 4 }
  0xd9   : > { %v1317_v20 = vpop.permute.xlu1 %1316  ;;  %v1314_v21 = vpop.permute.xlu0 %1313 }
  0xda   : > { %v1320_v22 = vsel %vm1319_vm4, %v1314_v21, %v1317_v20  ;;  %v4971_v21 = vmov 64.0  }
  0xdb   : > { %v1322_v25 = vmul.f32 %v5247_v17, %v1320_v22  ;;  %4885 = vrcp.f32 %v4971_v21 }
  0xdd   : > { %v1359_v26 = vsel %vm1355_vm3, %v1322_v25, %v1353_v24 }
  0xde   : > { %1384 = vmatpush.msra.mxu2 %v1359_v26 }
  0xe0   : > { %1385 = vmatpush.msra.mxu2 %v1358_v28 }
  0xe1   : > { %v1274_v29 = vpop.permute.xlu1 %1273  ;;  %v1297_v30 = vpop.permute.xlu0 %1296 }
  0xe2   : > { %v1300_v32 = vsel %vm1299_vm5, %v1294_v27, %v1297_v30  ;;  %v1280_v42 = vsel %vm1279_vm7, %v1274_v29, %v1277_v34  ;;  %v4886_v28 = vpop.eup %4885 }
  0xe3   : > { %v1302_v33 = vmul.f32 %v5258_v31, %v1300_v32  ;;  %v1282_v44 = vmul.f32 %v5265_v40, %v1280_v42  ;;  %vm1813_vm12 = vweird.f32 %v4886_v28 }
  0xe5   : > { %v1347_v39 = vrot.slane %v1302_v33, 4  ;;  %v1344_v49 = vrot.slane %v1282_v44, 4  ;;  %v4883_v33 = vld [vmem:[%s5032_s29 + $0x8] ss:$0 sm:$0xff] }
  0xe9   : > { %v1287_v36 = vpop.permute.xlu1 %1286  ;;  %v1284_v37 = vpop.permute.xlu0 %1283 }
  0xea   : > { %v1290_v38 = vsel %vm1289_vm6, %v1284_v37, %v1287_v36 }
  0xeb   : > { %v1292_v41 = vmul.f32 %v5262_v35, %v1290_v38 }
  0xed   : > { %v1357_v43 = vsel %vm1355_vm3, %v1292_v41, %v1347_v39 }
  0xee   : > { %1386 = vmatpush.msra.mxu2 %v1357_v43  ;;  %v1809_v43 = vmul.f32 64.0, %v4886_v28 }
  0xf1   : > { %v1267_v47 = vpop.permute.xlu0 %1266  ;;  %v1363_v53 = vpop.permute.xlu1 %1362 }
  0xf2   : > { %v1270_v48 = vsel %vm7126_vm8, %v1264_v45, %v1267_v47 }
  0xf3   : > { %v1272_v50 = vmul.f32 %v5271_v46, %v1270_v48 }
  0xf5   : > { %v1356_v52 = vsel %vm1355_vm3, %v1272_v50, %v1344_v49 }
  0xf6   : > { %1387 = vmatpush.msra.mxu2 %v1356_v52  ;;  %v1810_v52 = vsub.f32 1.0, %v1809_v43 }
  0xf7   : > { %4717 = vmatmul.msk.f32.vlgmr.msra.gmra.mxu2 %vm1365_vm9, %v1260_v51 }
 0x17a   : > { %v1389_v54 = vpop.f32.mrf.mxu2 }
 0x17b   : > { %v5280_v55 = vadd.f32 %v1389_v54, %v1363_v53 }
 0x17d   : > { %1406 = vrot.lane.b32.xlu1 %v5280_v55, %s7122_s0  ;;  %1400 = vrot.lane.b32.xlu0 %v5280_v55, %s7114_s26  ;;  %1393 = vst.msk [vmem:[%s1177_s2] sm:$0xff] %vm1392_vm10, %v5280_v55  ;;  %s7214_s2 = smov 65   ;;  %s7216_s26 = smov 121   ;;  %v1799_v56 = vsel %vm1392_vm10, %v5280_v55, 0.0 }
 0x17e   : > { %1397 = vrot.lane.b32.xlu2 %v5280_v55, %s7116_s15  ;;  %1796 = vst.msk [vmem:[%s5285_s11] sm:$0xff] %vm1392_vm10, %v5280_v55  ;;  %s7217_s15 = smov 63   ;;  %s7220_s0 = smov 120  }
 0x185   : > { %1418 = vrot.lane.b32.xlu1 %v5280_v55, %s7118_s16  ;;  %1415 = vrot.lane.b32.xlu0 %v5280_v55, %s7124_s23  ;;  %s7218_s16 = smov 119   ;;  %s7221_s23 = smov 55  }
 0x186   : > { %1409 = vrot.lane.b32.xlu2 %v5280_v55, %s7120_s22  ;;  %s7219_s22 = smov 56  }
 0x18d   : > { %1433 = vrot.lane.b32.xlu1 %v5280_v55, %s7127_s18  ;;  %1427 = vrot.lane.b32.xlu0 %v5280_v55, %s7213_s1  ;;  %s7129_s18 = sshll.u32 %s7309_s10, 5 }
 0x18e   : > { %1424 = vrot.lane.b32.xlu2 %v5280_v55, %s7214_s2  ;;  %s1173_s4 = scalar_lea.vmem %s7224_s9, %s7129_s18  ;;  %s7227_s18 = smov 72  }
 0x18f   : > { %s7229_s9 = smov 73  }
 0x195   : > { %1445 = vrot.lane.b32.xlu1 %v5280_v55, %s7215_s28  ;;  %1442 = vrot.lane.b32.xlu0 %v5280_v55, %s7216_s26 }
 0x196   : > { %1436 = vrot.lane.b32.xlu2 %v5280_v55, %s7217_s15 }
 0x19d   : > { %1460 = vrot.lane.b32.xlu1 %v5280_v55, %s7218_s16  ;;  %1454 = vrot.lane.b32.xlu0 %v5280_v55, %s7219_s22 }
 0x19e   : > { %1451 = vrot.lane.b32.xlu2 %v5280_v55, %s7220_s0 }
 0x1a6   : > { %1463 = vrot.lane.b32.xlu2 %v5280_v55, %s7221_s23 }
 0x1c7   : > { %1800 = vadd.xlane.f32.xlu0 %v1799_v56 }
 0x1d8   : > { %v1398_v57 = vpop.permute.xlu2 %1397 }
 0x1e0   : > { %v1410_v58 = vpop.permute.xlu2 %1409 }
 0x1e8   : > { %v1425_v61 = vpop.permute.xlu2 %1424 }
 0x1ef   : > { %v1407_v59 = vpop.permute.xlu1 %1406  ;;  %v1401_v60 = vpop.permute.xlu0 %1400 }
 0x1f0   : > { %v1437_v0 = vpop.permute.xlu2 %1436  ;;  %v1403_v3 = vsel %vm7126_vm8, %v1398_v57, %v1401_v60  ;;  %v1412_v8 = vsel %vm1279_vm7, %v1407_v59, %v1410_v58  ;;  %v1811_v59 = vmul.f32 %v4886_v28, %v1810_v52 }
 0x1f1   : > { %v1405_v6 = vmul.f32 %v1403_v3, %v5271_v46  ;;  %v1414_v14 = vmul.f32 %v1412_v8, %v5265_v40 }
 0x1f3   : > { %v1469_v15 = vmul.f32 -1.0, %v1405_v6  ;;  %v1470_v26 = vmul.f32 -2.0, %v1414_v14 }
 0x1f5   : > { %v1471_v36 = vadd.f32 %v1470_v26, %v1469_v15  ;;  %v4975_v26 = vmov 2102212464  }
 0x1f7   : > { %v1419_v62 = vpop.permute.xlu1 %1418  ;;  %v1416_v63 = vpop.permute.xlu0 %1415 }
 0x1f8   : > { %v1421_v5 = vsel %vm1289_vm6, %v1416_v63, %v1419_v62  ;;  %v1452_v9 = vpop.permute.xlu2 %1451 }
 0x1f9   : > { %v1423_v12 = vmul.f32 %v1421_v5, %v5262_v35 }
 0x1fb   : > { %v1472_v23 = vadd.f32 %v1469_v15, %v1423_v12  ;;  %v1473_v29 = vmul.f32 -1.0, %v1423_v12 }
 0x1fd   : > { %v1474_v44 = vadd.f32 %v1473_v29, %v1471_v36 }
 0x1ff   : > { %v1434_v1 = vpop.permute.xlu1 %1433  ;;  %v1428_v2 = vpop.permute.xlu0 %1427 }
 0x200   : > { %v1430_v4 = vsel %vm1299_vm5, %v1425_v61, %v1428_v2  ;;  %v1439_v13 = vsel %vm1309_vm1, %v1434_v1, %v1437_v0  ;;  %v1464_v34 = vpop.permute.xlu2 %1463  ;;  %v1812_v1 = vadd.f32 %v4886_v28, %v1811_v59 }
 0x201   : > { %v1432_v7 = vmul.f32 %v1430_v4, %v5258_v31  ;;  %v1441_v24 = vmul.f32 %v1439_v13, %v5238_v10 }
 0x202   : > { %v5352_v8 = vsel %vm1813_vm12, %v4886_v28, %v1812_v1  ;;  %v7146_v28 = vmov 920167782  }
 0x203   : > { %v1475_v16 = vmul.f32 -2.0, %v1432_v7  ;;  %v1477_v30 = vmul.f32 2.0, %v1441_v24 }
 0x205   : > { %v1476_v27 = vadd.f32 %v1475_v16, %v1472_v23  ;;  %v4972_v16 = vmov 683565275  }
 0x207   : > { %v1446_v18 = vpop.permute.xlu1 %1445  ;;  %v1443_v20 = vpop.permute.xlu0 %1442  ;;  %v1478_v37 = vadd.f32 %v1477_v30, %v1476_v27 }
 0x208   : > { %v1448_v22 = vsel %vm1319_vm4, %v1443_v20, %v1446_v18  ;;  %v7148_v20 = vmov 2475754826  }
 0x209   : > { %v1450_v25 = vmul.f32 %v1448_v22, %v5247_v17  ;;  %v4974_v22 = vmov 2131351028  }
 0x20b   : > { %v1479_v32 = vmul.f32 -1.0, %v1450_v25  ;;  %v1481_v49 = vadd.f32 %v1474_v44, %v1450_v25 }
 0x20d   : > { %v1480_v47 = vadd.f32 %v1479_v32, %v1478_v37 }
 0x20f   : > { %v1461_v38 = vpop.permute.xlu1 %1460  ;;  %v1455_v39 = vpop.permute.xlu0 %1454 }
 0x210   : > { %v1466_v41 = vsel %vm1339_vm0, %v1461_v38, %v1464_v34  ;;  %v1457_v42 = vsel %vm1329_vm2, %v1452_v9, %v1455_v39  ;;  %v7144_v34 = vmov 1326507024  }
 0x211   : > { %v1468_v45 = vmul.f32 %v4883_v33, %v1466_v41  ;;  %v1459_v48 = vmul.f32 %v1457_v42, %v5240_v11 }
 0x213   : > { %v5342_v50 = vadd.f32 %v1480_v47, %v1468_v45  ;;  %v1482_v51 = vmul.f32 2.0, %v1459_v48 }
 0x215   : > { %v1489_v53 = vand.u32 2139095040, %v5342_v50  ;;  %v1483_v54 = vadd.f32 %v1482_v51, %v1481_v49  ;;  %v1486_v56 = vand.u32 2147483647, %v5342_v50 }
 0x217   : > { %v1490_v57 = vshrl.u32 %v1489_v53, 23  ;;  %v5346_v58 = vadd.f32 %v1483_v54, %v1468_v45  ;;  %v1493_v60 = vand.u32 8388607, %v1486_v56 }
 0x219   : > { %v4718_v61 = vadd.s32 4294967169, %v1490_v57  ;;  %v1644_v62 = vand.u32 2139095040, %v5346_v58  ;;  %v1494_v2 = vor.u32 8388608, %v1493_v60  ;;  %v1641_v4 = vand.u32 2147483647, %v5346_v58 }
 0x21b   : > { %v1496_v63 = vadd.s32 1, %v4718_v61  ;;  %v1645_v0 = vshrl.u32 %v1644_v62, 23  ;;  %v5354_v9 = vshll.u32 %v1494_v2, 8  ;;  %v1648_v14 = vand.u32 8388607, %v1641_v4 }
 0x21d   : > { %vm1497_vm11 = vcmp.gt.s32.totalorder %v1496_v63, 0  ;;  %v4721_v3 = vadd.s32 4294967169, %v1645_v0  ;;  %v1535_v39 = vand.u32 65535, %v5354_v9  ;;  %v1649_v41 = vor.u32 8388608, %v1648_v14 }
 0x21e   : > { %v1498_v5 = vsel %vm1497_vm11, %v1496_v63, 0  ;;  %v1536_v0 = vshrl.u32 %v5354_v9, 16 }
 0x21f   : > { %v1500_v6 = vand.u32 31, %v1498_v5  ;;  %v1651_v7 = vadd.s32 1, %v4721_v3  ;;  %v1499_v12 = vshrl.u32 %v1498_v5, 5 }
 0x221   : > { %v1501_v13 = vsub.s32 32, %v1500_v6  ;;  %vm1652_vm13 = vcmp.gt.s32.totalorder %v1651_v7, 0  ;;  %v1503_v18 = vshll.u32 %v4972_v16, %v1500_v6  ;;  %v1506_v21 = vshll.u32 %v7148_v20, %v1500_v6 }
 0x222   : > { %v1653_v15 = vsel %vm1652_vm13, %v1651_v7, 0  ;;  %v1509_v23 = vshll.u32 %v4974_v22, %v1500_v6  ;;  %v1512_v27 = vshll.u32 %v4975_v26, %v1500_v6  ;;  %v1515_v29 = vshll.u32 %v7146_v28, %v1500_v6 }
 0x223   : > { %v5361_v24 = vand.u32 31, %v1653_v15  ;;  %v1504_v25 = vshrl.u32 %v7148_v20, %v1501_v13  ;;  %v1507_v30 = vshrl.u32 %v4974_v22, %v1501_v13  ;;  %v1510_v32 = vshrl.u32 %v4975_v26, %v1501_v13 }
 0x224   : > { %v1513_v33 = vshrl.u32 %v7146_v28, %v1501_v13  ;;  %v1516_v36 = vshrl.u32 %v7144_v34, %v1501_v13  ;;  %v1502_v47 = vshrl.u32 %v4972_v16, %v1501_v13  ;;  %vm1518_vm14 = vcmp.lt.s32.totalorder %v1499_v12, 1 }
 0x225   : > { %v5371_v37 = vsub.s32 32, %v5361_v24  ;;  %v1505_v38 = vor.u32 %v1504_v25, %v1503_v18  ;;  %v1508_v42 = vor.u32 %v1507_v30, %v1506_v21  ;;  %v1511_v43 = vor.u32 %v1510_v32, %v1509_v23 }
 0x226   : > { %v1514_v44 = vor.u32 %v1513_v33, %v1512_v27  ;;  %v1517_v45 = vor.u32 %v1516_v36, %v1515_v29  ;;  %vm1520_vm15 = vcmp.lt.s32.totalorder %v1499_v12, 3  ;;  %vm1521_vm3 = vcmp.lt.s32.totalorder %v1499_v12, 4 }
 0x227   : > { %v1523_v48 = vsel %vm1521_vm3, %v1511_v43, 2102212464  ;;  %v1526_v49 = vsel %vm1518_vm14, %v1505_v38, %v1508_v42  ;;  %v1530_v52 = vsel %vm1518_vm14, %v1508_v42, %v1511_v43  ;;  %vm1519_vm9 = vcmp.lt.s32.totalorder %v1499_v12, 2 }
 0x228   : > { %v1527_v51 = vsel %vm1521_vm3, %v1514_v44, 920167782  ;;  %v1522_v53 = vsel %vm1518_vm14, %v1502_v47, %v1505_v38  ;;  %v1531_v57 = vsel %vm1521_vm3, %v1517_v45, 1326507024  ;;  %v1524_v59 = vsel %vm1520_vm15, %v1508_v42, %v1523_v48 }
 0x229   : > { %v1528_v54 = vsel %vm1520_vm15, %v1511_v43, %v1527_v51  ;;  %v1532_v61 = vsel %vm1520_vm15, %v1514_v44, %v1531_v57  ;;  %v1659_v62 = vshrl.u32 %v7148_v20, %v5371_v37  ;;  %v1658_v6 = vshll.u32 %v4972_v16, %v5361_v24 }
 0x22a   : > { %v1529_v60 = vsel %vm1519_vm9, %v1526_v49, %v1528_v54  ;;  %v1533_v63 = vsel %vm1519_vm9, %v1530_v52, %v1532_v61  ;;  %v5382_v7 = vshll.u32 %v1649_v41, 8  ;;  %v5384_v13 = vshrl.u32 %v1653_v15, 5 }
 0x22b   : > { %v1559_v1 = vand.u32 65535, %v1529_v60  ;;  %v1560_v2 = vshrl.u32 %v1529_v60, 16  ;;  %v1537_v3 = vand.u32 65535, %v1533_v63  ;;  %v1538_v5 = vshrl.u32 %v1533_v63, 16 }
 0x22c   : > { %v5387_v14 = vsel %vm1519_vm9, %v1522_v53, %v1524_v59  ;;  %v5389_v27 = vor.u32 %v1659_v62, %v1658_v6  ;;  %v1661_v29 = vshll.u32 %v7148_v20, %v5361_v24  ;;  %v1662_v44 = vshrl.u32 %v4974_v22, %v5371_v37 }
 0x22d   : > { %v1562_v18 = vmul.u32 %v1560_v2, %v1535_v39  ;;  %v1563_v21 = vmul.u32 %v1559_v1, %v1536_v0  ;;  %v1540_v23 = vmul.u32 %v1538_v5, %v1535_v39  ;;  %v1541_v25 = vmul.u32 %v1537_v3, %v1536_v0 }
 0x22e   : > { %v1539_v30 = vmul.u32 %v1537_v3, %v1535_v39  ;;  %v1561_v32 = vmul.u32 %v1559_v1, %v1535_v39  ;;  %v1564_v33 = vmul.u32 %v1560_v2, %v1536_v0  ;;  %v1542_v38 = vmul.u32 %v1538_v5, %v1536_v0 }
 0x22f   : > { %v1565_v36 = vshll.u32 %v1562_v18, 16  ;;  %v1543_v41 = vshll.u32 %v1540_v23, 16  ;;  %v1566_v15 = vshrl.u32 %v1562_v18, 16  ;;  %v1567_v42 = vshll.u32 %v1563_v21, 16 }
 0x230   : > { %v1544_v12 = vshrl.u32 %v1540_v23, 16  ;;  %v1545_v45 = vshll.u32 %v1541_v25, 16  ;;  %v1665_v51 = vshrl.u32 %v4975_v26, %v5371_v37  ;;  %v1664_v54 = vshll.u32 %v4974_v22, %v5361_v24 }
 0x231   : > { %vm1569_vm11 = vc.u32 %v1561_v32, %v1565_v36  ;;  %v1571_v43 = vadd.s32 %v1565_v36, %v1561_v32  ;;  %vm1547_vm12 = vc.u32 %v1539_v30, %v1543_v41  ;;  %v1549_v47 = vadd.s32 %v1543_v41, %v1539_v30 }
 0x232   : > { %v1570_v48 = vsel %vm1569_vm11, 1, %v4970_v19  ;;  %v1548_v49 = vsel %vm1547_vm12, 1, %v4970_v19  ;;  %v5403_v60 = vor.u32 %v1662_v44, %v1661_v29  ;;  %v1667_v61 = vshll.u32 %v4975_v26, %v5361_v24 }
 0x233   : > { %v1572_v39 = vadd.s32 %v1570_v48, %v1564_v33  ;;  %vm1573_vm13 = vc.u32 %v1571_v43, %v1567_v42  ;;  %v1550_v52 = vadd.s32 %v1548_v49, %v1542_v38  ;;  %vm1551_vm14 = vc.u32 %v1549_v47, %v1545_v45 }
 0x234   : > { %v1574_v53 = vsel %vm1573_vm13, 1, %v4970_v19  ;;  %v1552_v57 = vsel %vm1551_vm14, 1, %v4970_v19  ;;  %v1668_v63 = vshrl.u32 %v7146_v28, %v5371_v37  ;;  %v1670_v0 = vshll.u32 %v7146_v28, %v5361_v24 }
 0x235   : > { %v1576_v59 = vadd.s32 %v1574_v53, %v1572_v39  ;;  %v1554_v62 = vadd.s32 %v1552_v57, %v1550_v52  ;;  %v1671_v1 = vshrl.u32 %v7144_v34, %v5371_v37  ;;  %v1546_v2 = vshrl.u32 %v1541_v25, 16 }
 0x236   : > { %v1568_v3 = vshrl.u32 %v1563_v21, 16  ;;  %v5413_v6 = vor.u32 %v1665_v51, %v1664_v54  ;;  %v1669_v23 = vor.u32 %v1668_v63, %v1667_v61  ;;  %vm1673_vm15 = vcmp.lt.s32.totalorder %v5384_v13, 1 }
 0x237   : > { %v1577_v5 = vadd.s32 %v1576_v59, %v1566_v15  ;;  %v1555_v18 = vadd.s32 %v1554_v62, %v1544_v12  ;;  %v1672_v29 = vor.u32 %v1671_v1, %v1670_v0  ;;  %v5416_v30 = vadd.s32 %v1571_v43, %v1567_v42 }
 0x238   : > { %vm1676_vm3 = vcmp.lt.s32.totalorder %v5384_v13, 4  ;;  %v1681_v24 = vsel %vm1673_vm15, %v5389_v27, %v5403_v60  ;;  %vm1674_vm9 = vcmp.lt.s32.totalorder %v5384_v13, 2  ;;  %vm1675_vm11 = vcmp.lt.s32.totalorder %v5384_v13, 3 }
 0x239   : > { %v1578_v32 = vadd.s32 %v1577_v5, %v1568_v3  ;;  %v5423_v21 = vadd.s32 %v1555_v18, %v1546_v2  ;;  %v1682_v33 = vsel %vm1676_vm3, %v1669_v23, 920167782  ;;  %v1685_v15 = vsel %vm1673_vm15, %v5403_v60, %v5413_v6 }
 0x23a   : > { %v1801_v25 = vpop.xlane.xlu0 %1800  ;;  %v1683_v41 = vsel %vm1675_vm11, %v5413_v6, %v1682_v33  ;;  %v1579_v42 = vmul.u32 %v5354_v9, %v5387_v14  ;;  %v1686_v43 = vsel %vm1676_vm3, %v1672_v29, 1326507024  ;;  %v1690_v14 = vand.u32 65535, %v5382_v7 }
 0x23b   : > { %v1815_v36 = vmul.f32 %v5352_v8, %v1801_v25  ;;  %v1582_v38 = vadd.s32 1, %v1578_v32  ;;  %vm1581_vm12 = vc.u32 %v5423_v21, %v5416_v30  ;;  %v1684_v12 = vsel %vm1674_vm9, %v1681_v24, %v1683_v41 }
 0x23c   : > { %v1687_v47 = vsel %vm1675_vm11, %v1669_v23, %v1686_v43  ;;  %v1691_v49 = vshrl.u32 %v5382_v7, 16  ;;  %v1715_v53 = vshrl.u32 %v1684_v12, 16  ;;  %v1714_v54 = vand.u32 65535, %v1684_v12 }
 0x23d   : > { %v5446_v44 = vsub.f32 %v5280_v55, %v1815_v36  ;;  %v1583_v45 = vsel %vm1581_vm12, %v1582_v38, %v1578_v32  ;;  %v1688_v9 = vsel %vm1674_vm9, %v1685_v15, %v1687_v47 }
 0x23e   : > { %v1584_v48 = vadd.s32 %v1583_v45, %v1579_v42  ;;  %v1692_v51 = vand.u32 65535, %v1688_v9  ;;  %v1693_v52 = vshrl.u32 %v1688_v9, 16  ;;  %v1717_v63 = vmul.u32 %v1715_v53, %v1690_v14 }
 0x23f   : > { %v1821_v39 = vmul.f32 %v5446_v44, %v5446_v44  ;;  %v1716_v3 = vmul.u32 %v1714_v54, %v1690_v14  ;;  %v1718_v5 = vmul.u32 %v1714_v54, %v1691_v49  ;;  %v1719_v36 = vmul.u32 %v1715_v53, %v1691_v49 }
 0x240   : > { %v1585_v55 = vadd.s32 536870912, %v1584_v48  ;;  %v1695_v59 = vmul.u32 %v1693_v52, %v1690_v14  ;;  %v1696_v61 = vmul.u32 %v1692_v51, %v1691_v49  ;;  %v1694_v0 = vmul.u32 %v1692_v51, %v1690_v14 }
 0x241   : > { %v1824_v57 = vsel %vm1392_vm10, %v1821_v39, 0.0  ;;  %v1720_v18 = vshll.u32 %v1717_v63, 16  ;;  %v1697_v23 = vmul.u32 %v1693_v52, %v1691_v49  ;;  %v1722_v43 = vshll.u32 %v1718_v5, 16 }
 0x242   : > { %1825 = vadd.xlane.f32.xlu2 %v1824_v57  ;;  %v5457_v62 = vshrl.u32 %v1585_v55, 30  ;;  %v1698_v1 = vshll.u32 %v1695_v59, 16  ;;  %v1700_v29 = vshll.u32 %v1696_v61, 16  ;;  %v1699_v15 = vshrl.u32 %v1695_v59, 16 }
 0x243   : > { %vm1724_vm14 = vc.u32 %v1716_v3, %v1720_v18  ;;  %v1726_v45 = vadd.s32 %v1720_v18, %v1716_v3  ;;  %v1678_v14 = vsel %vm1676_vm3, %v5413_v6, 2102212464  ;;  %v1701_v52 = vshrl.u32 %v1696_v61, 16 }
 0x244   : > { %v1587_v2 = vshll.u32 %v5457_v62, 30  ;;  %vm1702_vm13 = vc.u32 %v1694_v0, %v1698_v1  ;;  %v1704_v32 = vadd.s32 %v1698_v1, %v1694_v0  ;;  %v1725_v38 = vsel %vm1724_vm14, 1, %v4970_v19 }
 0x245   : > { %v1703_v25 = vsel %vm1702_vm13, 1, %v4970_v19  ;;  %v1727_v47 = vadd.s32 %v1725_v38, %v1719_v36  ;;  %vm1728_vm13 = vc.u32 %v1726_v45, %v1722_v43  ;;  %v1679_v54 = vsel %vm1675_vm11, %v5403_v60, %v1678_v14 }
 0x246   : > { %v1588_v24 = vsub.s32 %v1584_v48, %v1587_v2  ;;  %v1705_v33 = vadd.s32 %v1703_v25, %v1697_v23  ;;  %vm1706_vm12 = vc.u32 %v1704_v32, %v1700_v29  ;;  %v1657_v48 = vshrl.u32 %v4972_v16, %v5371_v37 }
 0x247   : > { %v1707_v42 = vsel %vm1706_vm12, 1, %v4970_v19  ;;  %v1729_v53 = vsel %vm1728_vm13, 1, %v4970_v19  ;;  %v1721_v37 = vshrl.u32 %v1717_v63, 16  ;;  %v1723_v6 = vshrl.u32 %v1718_v5, 16 }
 0x248   : > { %vm1589_vm8 = vcmp.lt.s32.totalorder %v1588_v24, 0  ;;  %v1590_v41 = vsub.s32 0, %v1588_v24  ;;  %v1709_v12 = vadd.s32 %v1707_v42, %v1705_v33  ;;  %v1677_v51 = vsel %vm1673_vm15, %v1657_v48, %v5389_v27 }
 0x249   : > { %v1731_v57 = vadd.s32 %v1729_v53, %v1727_v47  ;;  %v1680_v2 = vsel %vm1674_vm9, %v1677_v51, %v1679_v54  ;;  %v1730_v3 = vadd.s32 %v1726_v45, %v1722_v43  ;;  %v1580_v27 = vadd.s32 %v5416_v30, %v5423_v21 }
 0x24a   : > { %v1591_v9 = vsel %vm1589_vm8, %v1590_v41, %v1588_v24  ;;  %v1710_v39 = vadd.s32 %v1709_v12, %v1699_v15  ;;  %v1734_v25 = vmul.u32 %v5382_v7, %v1680_v2  ;;  %vm1488_vm3 = vcmp.lt.s32.totalorder %v5342_v50, 0 }
 0x24b   : > { %v1592_v49 = vclz %v1591_v9  ;;  %v1732_v0 = vadd.s32 %v1731_v57, %v1721_v37  ;;  %vm5486_vm9 = vcmp.le.f32.partialorder %v1486_v56, 0.7853982  ;;  %v1610_v47 = vsub.s32 4, %v5457_v62 }
 0x24c   : > { %v1711_v59 = vadd.s32 %v1710_v39, %v1701_v52 }
 0x24d   : > { %v4719_v55 = vadd.s32 4294967294, %v1592_v49  ;;  %v1733_v23 = vadd.s32 %v1732_v0, %v1723_v6  ;;  %v1611_v53 = vsel %vm1488_vm3, %v1610_v47, %v5457_v62 }
 0x24e   : > { %vm1736_vm15 = vc.u32 %v1711_v59, %v1730_v3  ;;  %v1613_v37 = vsel %vm5486_vm9, 0, %v1611_v53 }
 0x24f   : > { %vm4720_vm8 = vcmp.lt.s32.totalorder %v4719_v55, 0  ;;  %v1737_v32 = vadd.s32 1, %v1733_v23 }
 0x250   : > { %v1595_v1 = vsel %vm4720_vm8, 0, %v4719_v55 }
 0x251   : > { %v1596_v61 = vsub.s32 32, %v1595_v1  ;;  %v1600_v18 = vsub.s32 4294967266, %v1595_v1  ;;  %v1597_v29 = vshll.u32 %v1588_v24, %v1595_v1  ;;  %v1738_v36 = vsel %vm1736_vm15, %v1737_v32, %v1733_v23 }
 0x252   : > { %v1739_v38 = vadd.s32 %v1738_v36, %v1734_v25  ;;  %vm1629_vm15 = vweird.f32 %v5342_v50 }
 0x253   : > { %v1598_v60 = vshrl.u32 %v1580_v27, %v1596_v61  ;;  %v1601_v63 = vadd.s32 127, %v1600_v18  ;;  %v1735_v27 = vadd.s32 %v1730_v3, %v1711_v59  ;;  %v1630_v18 = vadd.s32 3, %v1613_v37 }
 0x254   : > { %v1740_v41 = vadd.s32 536870912, %v1739_v38 }
 0x255   : > { %v1599_v5 = vor.u32 %v1598_v60, %v1597_v29  ;;  %v1602_v33 = vshll.u32 %v1601_v63, 23 }
 0x256   : > { %v5480_v12 = vshrl.u32 %v1740_v41, 30 }
 0x257   : > { %v1603_v13 = vor.u32 4788187, %v1602_v33  ;;  %v1606_v42 = vcvt.s32.f32 %v1599_v5  ;;  %v1631_v33 = vand.u32 3, %v1630_v18 }
 0x258   : > { %v1742_v21 = vshll.u32 %v5480_v12, 30 }
 0x259   : > { %v1604_v15 = vand.u32 2147483647, %v1603_v13  ;;  %vm1633_vm12 = vcmp.eq.s32.totalorder %v1631_v33, 0  ;;  %vm1636_vm13 = vcmp.eq.s32.totalorder %v1631_v33, 2  ;;  %vm1632_vm8 = vcmp.lt.s32.totalorder %v1631_v33, 2  ;;  %v1209_v33 = vld [vmem:[%s1173_s4 + $0x10] sm:$0xff] }
 0x25a   : > { %v1743_v24 = vsub.s32 %v1739_v38, %v1742_v21 }
 0x25b   : > { %v1607_v30 = vmul.f32 %v1606_v42, %v1604_v15 }
 0x25c   : > { %vm1744_vm11 = vcmp.lt.s32.totalorder %v1743_v24, 0  ;;  %v1745_v48 = vsub.s32 0, %v1743_v24 }
 0x25d   : > { %v1608_v43 = vxor.u32 2147483648, %v1607_v30 }
 0x25e   : > { %v1746_v49 = vsel %vm1744_vm11, %v1745_v48, %v1743_v24 }
 0x25f   : > { %v1609_v45 = vsel %vm1488_vm3, %v1608_v43, %v1607_v30  ;;  %v1747_v52 = vclz %v1746_v49  ;;  %vm1643_vm3 = vcmp.lt.s32.totalorder %v5346_v58, 0 }
 0x260   : > { %v1612_v9 = vsel %vm5486_vm9, %v5342_v50, %v1609_v45  ;;  %vm1642_vm9 = vcmp.le.f32.partialorder %v1641_v4, 0.7853982  ;;  %v1765_v50 = vsub.s32 4, %v5480_v12 }
 0x261   : > { %v1614_v14 = vmul.f32 %v1612_v9, %v1612_v9  ;;  %v4722_v54 = vadd.s32 4294967294, %v1747_v52 }
 0x263   : > { %v1615_v39 = vmul.f32 -0.001358992, %v1614_v14  ;;  %v1622_v51 = vmul.f32 -0.00019511016, %v1614_v14  ;;  %vm4723_vm14 = vcmp.lt.s32.totalorder %v4722_v54, 0 }
 0x264   : > { %v1750_v0 = vsel %vm4723_vm14, 0, %v4722_v54 }
 0x265   : > { %v1616_v56 = vadd.f32 0.041655596, %v1615_v39  ;;  %v1623_v55 = vadd.f32 0.008332121, %v1622_v51  ;;  %v1751_v61 = vsub.s32 32, %v1750_v0  ;;  %v1755_v23 = vsub.s32 4294967266, %v1750_v0 }
 0x266   : > { %v1752_v62 = vshll.u32 %v1743_v24, %v1750_v0  ;;  %v1766_v51 = vsel %vm1643_vm3, %v1765_v50, %v5480_v12 }
 0x267   : > { %v1617_v57 = vmul.f32 %v1616_v56, %v1614_v14  ;;  %v1624_v6 = vmul.f32 %v1623_v55, %v1614_v14  ;;  %v1753_v63 = vshrl.u32 %v1735_v27, %v1751_v61  ;;  %v1756_v32 = vadd.s32 127, %v1755_v23 }
 0x268   : > { %v1768_v56 = vsel %vm1642_vm9, 0, %v1766_v51 }
 0x269   : > { %v1618_v1 = vadd.f32 -0.4999988, %v1617_v57  ;;  %v1625_v2 = vadd.f32 -0.16666654, %v1624_v6  ;;  %v1754_v36 = vor.u32 %v1753_v63, %v1752_v62  ;;  %v1757_v38 = vshll.u32 %v1756_v32, 23 }
 0x26a   : > { %v1785_v6 = vadd.s32 3, %v1768_v56 }
 0x26b   : > { %v1619_v29 = vmul.f32 %v1618_v1, %v1614_v14  ;;  %v1626_v60 = vmul.f32 %v1625_v2, %v1614_v14  ;;  %v1758_v15 = vor.u32 4788187, %v1757_v38  ;;  %v1761_v3 = vcvt.s32.f32 %v1754_v36  ;;  %v1207_v38 = vld [vmem:[%s1173_s4] sm:$0xff] }
 0x26c   : > { %v1786_v27 = vand.u32 3, %v1785_v6 }
 0x26d   : > { %v1620_v25 = vadd.f32 1.0, %v1619_v29  ;;  %v1627_v5 = vadd.f32 1.0, %v1626_v60  ;;  %v1759_v59 = vand.u32 2147483647, %v1758_v15 }
 0x26e   : > { %vm1788_vm11 = vcmp.eq.s32.totalorder %v1786_v27, 0  ;;  %vm1791_vm14 = vcmp.eq.s32.totalorder %v1786_v27, 2 }
 0x26f   : > { %v1628_v13 = vmul.f32 %v1627_v5, %v1612_v9  ;;  %v1637_v41 = vxor.u32 2147483648, %v1620_v25  ;;  %v1762_v24 = vmul.f32 %v1761_v3, %v1759_v59  ;;  %v1210_v5 = vld [vmem:[%s1173_s4 + $0x18] sm:$0xff] }
 0x270   : > { %1240 = vmatpush.msra.mxu3 %v1210_v5  ;;  %v2166_v5 = vld [vmem:[%s5052_s19] sm:$0xff] }
 0x271   : > { %v1634_v42 = vxor.u32 2147483648, %v1628_v13  ;;  %v1638_v21 = vsel %vm1636_vm13, %v1637_v41, %v1628_v13  ;;  %v1763_v47 = vxor.u32 2147483648, %v1762_v24  ;;  %vm1784_vm13 = vweird.f32 %v5346_v58  ;;  %v1203_v13 = vld [vmem:[%s5022_s21] sm:$0xff] }
 0x272   : > { %1241 = vmatpush.msra.mxu3 %v1209_v33 }
 0x273   : > { %v1635_v30 = vsel %vm1633_vm12, %v1620_v25, %v1634_v42  ;;  %v1764_v9 = vsel %vm1643_vm3, %v1763_v47, %v1762_v24  ;;  %vm1787_vm12 = vcmp.lt.s32.totalorder %v1786_v27, 2  ;;  %v1213_v27 = vld [vmem:[%s5027_s25 + $0x10] sm:$0xff] }
 0x274   : > { %v1639_v43 = vsel %vm1632_vm8, %v1635_v30, %v1638_v21  ;;  %v1767_v48 = vsel %vm1642_vm9, %v5346_v58, %v1764_v9  ;;  %v1208_v58 = vld [vmem:[%s1173_s4 + $0x8] sm:$0xff]  ;;  %vm7152_vm8 = vcmask 261120   ;;  %s7225_s4 = smov 127  }
 0x275   : > { %v5498_v7 = vsel %vm1629_vm15, nan, %v1639_v43  ;;  %v1769_v14 = vmul.f32 %v1767_v48, %v1767_v48  ;;  %1242 = vmatpush.msra.mxu3 %v1208_v58  ;;  %v1204_v30 = vld [vmem:[%s5022_s21 + $0x8] sm:$0xff] }
 0x276   : > { %1797 = vst.msk [vmem:[%s5285_s11 + $0x8] sm:$0xff] %vm1392_vm10, %v5498_v7  ;;  %v1802_v45 = vsel %vm1392_vm10, %v5498_v7, 0.0 }
 0x277   : > { %1803 = vadd.xlane.f32.xlu2 %v1802_v45  ;;  %v1770_v49 = vmul.f32 -0.001358992, %v1769_v14  ;;  %v1777_v39 = vmul.f32 -0.00019511016, %v1769_v14  ;;  %1243 = vmatpush.msra.mxu3 %v1207_v38  ;;  %v1206_v45 = vld [vmem:[%s5022_s21 + $0x18] sm:$0xff]  ;;  %v2167_v38 = vld [vmem:[%s5052_s19 + $0x8] sm:$0xff] }
 0x278   : > { %4712 = vmatmul.msk.f32.vlgmr.msra.gmra.mxu3 %vm7152_vm8, %v1203_v13 }
 0x279   : > { %v1771_v52 = vadd.f32 0.041655596, %v1770_v49  ;;  %v1778_v53 = vadd.f32 0.008332121, %v1777_v39 }
 0x27b   : > { %v1772_v55 = vmul.f32 %v1771_v52, %v1769_v14  ;;  %v1779_v54 = vmul.f32 %v1778_v53, %v1769_v14 }
 0x27d   : > { %v1773_v37 = vadd.f32 -0.4999988, %v1772_v55  ;;  %v1780_v57 = vadd.f32 -0.16666654, %v1779_v54 }
 0x27f   : > { %v1774_v0 = vmul.f32 %v1773_v37, %v1769_v14  ;;  %v1781_v4 = vmul.f32 %v1780_v57, %v1769_v14 }
 0x280   : > { %4713 = vmatmul.msk.f32.gmra.mxu3 %vm7152_vm8, %v1204_v30 }
 0x281   : > { %v1775_v1 = vadd.f32 1.0, %v1774_v0  ;;  %v1782_v2 = vadd.f32 1.0, %v1781_v4 }
 0x283   : > { %v1783_v61 = vmul.f32 %v1782_v2, %v1767_v48  ;;  %v1792_v18 = vxor.u32 2147483648, %v1775_v1 }
 0x285   : > { %v1789_v12 = vxor.u32 2147483648, %v1783_v61  ;;  %v1793_v29 = vsel %vm1791_vm14, %v1792_v18, %v1783_v61  ;;  %v1214_v61 = vld [vmem:[%s5027_s25 + $0x18] sm:$0xff]  ;;  %v1212_v18 = vld [vmem:[%s5027_s25 + $0x8] sm:$0xff] }
 0x287   : > { %v1790_v23 = vsel %vm1788_vm11, %v1775_v1, %v1789_v12 }
 0x288   : > { %v1794_v60 = vsel %vm1787_vm12, %v1790_v23, %v1793_v29 }
 0x289   : > { %v1795_v63 = vsel %vm1784_vm13, nan, %v1794_v60 }
 0x28a   : > { %v1805_v62 = vsel %vm1392_vm10, %v1795_v63, 0.0  ;;  %1798 = vst.msk [vmem:[%s5285_s11 + $0x10] sm:$0xff] %vm1392_vm10, %v1795_v63  ;;  %s7226_s11 = smov 71  }
 0x28b   : > { %1806 = vadd.xlane.f32.xlu1 %v1805_v62 }
 0x2b5   : > { %v1826_v32 = vpop.xlane.xlu2 %1825 }
 0x2b6   : > { %v1833_v25 = vmul.f32 %v1826_v32, %v5352_v8 }
 0x2b8   : > { %v1836_v36 = vadd.f32 1e-05, %v1833_v25 }
 0x2ba   : > { %4887 = vrsqrt.f32 %v1836_v36  ;;  %vm1845_vm3 = vweird.f32 %v1836_v36 }
 0x2c0   : > { %v4888_v41 = vpop.eup %4887 }
 0x2c1   : > { %v1840_v15 = vmul.f32 %v4888_v41, %v1836_v36  ;;  %vm1846_vm15 = vweird.f32 %v4888_v41 }
 0x2c2   : > { %vm1847_vm9 = vmor %vm1845_vm3, %vm1846_vm15 }
 0x2c3   : > { %v1841_v42 = vmul.f32 %v4888_v41, %v1840_v15 }
 0x2c5   : > { %v1842_v59 = vmul.f32 0.5, %v1841_v42 }
 0x2c7   : > { %v1843_v3 = vsub.f32 1.5, %v1842_v59 }
 0x2c9   : > { %v1844_v21 = vmul.f32 %v4888_v41, %v1843_v3 }
 0x2cb   : > { %v1848_v43 = vsel %vm1847_vm9, %v4888_v41, %v1844_v21  ;;  %vm1886_vm9 = vcmask 195584  }
 0x2cc   : > { %v5525_v24 = vmul.f32 %v1848_v43, %v5446_v44  ;;  %v1205_v44 = vld [vmem:[%s5022_s21 + $0x10] sm:$0xff] }
 0x2cd   : > { %4714 = vmatmul.msk.f32.gmra.mxu3 %vm7152_vm8, %v1205_v44 }
 0x2ce   : > { %2099 = vrot.lane.b32.xlu1 %v5525_v24, %s7221_s23  ;;  %2027 = vrot.lane.b32.xlu0 %v5525_v24, %s7217_s15 }
 0x2cf   : > { %2018 = vrot.lane.b32.xlu2 %v5525_v24, %s7225_s4 }
 0x2d5   : > { %4715 = vmatmul.msk.f32.gmra.mxu3 %vm7152_vm8, %v1206_v45 }
 0x2d6   : > { %2075 = vrot.lane.b32.xlu1 %v5525_v24, %s7219_s22  ;;  %1994 = vrot.lane.b32.xlu0 %v5525_v24, %s7214_s2 }
 0x2d7   : > { %2003 = vrot.lane.b32.xlu2 %v5525_v24, %s7213_s1 }
 0x2de   : > { %2051 = vrot.lane.b32.xlu1 %v5525_v24, %s7215_s28  ;;  %1970 = vrot.lane.b32.xlu0 %v5525_v24, %s7226_s11 }
 0x2df   : > { %2090 = vrot.lane.b32.xlu2 %v5525_v24, %s7218_s16 }
 0x2e6   : > { %1946 = vrot.lane.b32.xlu0 %v5525_v24, %s7227_s18 }
 0x2e7   : > { %1979 = vrot.lane.b32.xlu2 %v5525_v24, %s7228_s5 }
 0x2ea   : > { %v1804_v47 = vpop.xlane.xlu2 %1803 }
 0x2eb   : > { %v1816_v9 = vmul.f32 %v5352_v8, %v1804_v47 }
 0x2ed   : > { %v5561_v50 = vsub.f32 %v5498_v7, %v1816_v9 }
 0x2ee   : > { %1922 = vrot.lane.b32.xlu0 %v5525_v24, %s7229_s9 }
 0x2ef   : > { %2066 = vrot.lane.b32.xlu2 %v5525_v24, %s7220_s0  ;;  %v1822_v48 = vmul.f32 %v5561_v50, %v5561_v50 }
 0x2f1   : > { %v1827_v14 = vsel %vm1392_vm10, %v1822_v48, 0.0 }
 0x2f7   : > { %1955 = vrot.lane.b32.xlu2 %v5525_v24, %s7230_s13 }
 0x2fb   : > { %v1245_v37 = vpop.f32.mrf.mxu3 }
 0x2fe   : > { %v1807_v49 = vpop.xlane.xlu1 %1806 }
 0x2ff   : > { %2042 = vrot.lane.b32.xlu2 %v5525_v24, %s7216_s26  ;;  %v1817_v39 = vmul.f32 %v5352_v8, %v1807_v49 }
 0x301   : > { %v5571_v51 = vsub.f32 %v1795_v63, %v1817_v39  ;;  %v1211_v63 = vld [vmem:[%s5027_s25] sm:$0xff] }
 0x302   : > { %v5599_v32 = vadd.f32 %v1245_v37, %v1211_v63 }
 0x303   : > { %v1823_v7 = vmul.f32 %v5571_v51, %v5571_v51  ;;  %v1248_v6 = vpop.f32.mrf.mxu3 }
 0x304   : > { %v5596_v62 = vadd.f32 %v1248_v6, %v1212_v18 }
 0x305   : > { %v1830_v52 = vsel %vm1392_vm10, %v1823_v7, 0.0 }
 0x307   : > { %1931 = vrot.lane.b32.xlu2 %v5525_v24, %s7231_s17 }
 0x308   : > { %1828 = vadd.xlane.f32.xlu1 %v1827_v14 }
 0x318   : > { %1831 = vadd.xlane.f32.xlu0 %v1830_v52 }
 0x329   : > { %v2019_v53 = vpop.permute.xlu2 %2018 }
 0x340   : > { %v2028_v56 = vpop.permute.xlu0 %2027  ;;  %v5578_v57 = vpop.permute.xlu1 %2099 }
 0x341   : > { %v2036_v55 = vsel %vm1309_vm1, %v2019_v53, %v2028_v56  ;;  %v2168_v56 = vld [vmem:[%s5057_s24] sm:$0xff] }
 0x342   : > { %v2039_v54 = vmul.f32 %v2036_v55, %v5238_v10 }
 0x344   : > { %2123 = vmatpush.msrb.mxu3 %v2039_v54 }
 0x348   : > { %v5580_v0 = vpop.permute.xlu0 %1994  ;;  %v5582_v4 = vpop.permute.xlu1 %2075 }
 0x350   : > { %v1251_v1 = vpop.f32.mrf.mxu3  ;;  %v5584_v2 = vpop.permute.xlu0 %1970 }
 0x351   : > { %v5589_v23 = vpop.permute.xlu1 %2051  ;;  %v5591_v29 = vadd.f32 %v1251_v1, %v1213_v27  ;;  %v2169_v27 = vld [vmem:[%s5057_s24 + $0x8] sm:$0xff] }
 0x358   : > { %v1254_v12 = vpop.f32.mrf.mxu3  ;;  %v5602_v25 = vpop.permute.xlu0 %1946 }
 0x359   : > { %v5593_v60 = vadd.f32 %v1254_v12, %v1214_v61 }
 0x35b   : > { %2188 = vmatpush.msra.mxu1 %v5593_v60 }
 0x35d   : > { %2189 = vmatpush.msra.mxu1 %v5591_v29 }
 0x35f   : > { %2190 = vmatpush.msra.mxu1 %v5596_v62 }
 0x360   : > { %v5610_v13 = vpop.permute.xlu0 %1922 }
 0x361   : > { %2191 = vmatpush.msra.mxu1 %v5599_v32 }
 0x362   : > { %4727 = vmatmul.msk.f32.vlgmr.msra.gmra.mxu1 %vm7152_vm8, %v2166_v5 }
 0x36a   : > { %4728 = vmatmul.msk.f32.gmra.mxu1 %vm7152_vm8, %v2167_v38 }
 0x37b   : > { %v1829_v33 = vpop.xlane.xlu1 %1828 }
 0x37c   : > { %v1834_v36 = vmul.f32 %v1829_v33, %v5352_v8 }
 0x37e   : > { %v1837_v58 = vadd.f32 1e-05, %v1834_v36 }
 0x380   : > { %4889 = vrsqrt.f32 %v1837_v58  ;;  %vm1855_vm14 = vweird.f32 %v1837_v58 }
 0x386   : > { %v4890_v41 = vpop.eup %4889 }
 0x387   : > { %v1850_v15 = vmul.f32 %v4890_v41, %v1837_v58  ;;  %vm1856_vm11 = vweird.f32 %v4890_v41 }
 0x388   : > { %vm1857_vm12 = vmor %vm1855_vm14, %vm1856_vm11  ;;  %vm7232_vm11 = vcmask 72704  }
 0x389   : > { %v1851_v42 = vmul.f32 %v4890_v41, %v1850_v15  ;;  %vm7233_vm14 = vmmov %vm7232_vm11 }
 0x38b   : > { %v1852_v59 = vmul.f32 0.5, %v1851_v42  ;;  %v1832_v3 = vpop.xlane.xlu0 %1831 }
 0x38c   : > { %v1835_v30 = vmul.f32 %v1832_v3, %v5352_v8 }
 0x38d   : > { %v1853_v21 = vsub.f32 1.5, %v1852_v59 }
 0x38e   : > { %v1838_v43 = vadd.f32 1e-05, %v1835_v30 }
 0x38f   : > { %v1854_v44 = vmul.f32 %v4890_v41, %v1853_v21 }
 0x390   : > { %4891 = vrsqrt.f32 %v1838_v43  ;;  %vm1865_vm15 = vweird.f32 %v1838_v43 }
 0x391   : > { %v1858_v45 = vsel %vm1857_vm12, %v4890_v41, %v1854_v44  ;;  %vm7234_vm12 = vmmov %vm7232_vm11 }
 0x392   : > { %v1870_v47 = vmul.f32 %v1858_v45, %v5561_v50 }
 0x394   : > { %1996 = vrot.lane.b32.xlu2 %v1870_v47, %s7214_s2 }
 0x396   : > { %v4892_v9 = vpop.eup %4891 }
 0x397   : > { %v1860_v48 = vmul.f32 %v4892_v9, %v1838_v43  ;;  %vm1866_vm13 = vweird.f32 %v4892_v9 }
 0x398   : > { %vm1867_vm3 = vmor %vm1865_vm15, %vm1866_vm13  ;;  %vm2119_vm13 = vcmask 719872  }
 0x399   : > { %v1861_v14 = vmul.f32 %v4892_v9, %v1860_v48 }
 0x39b   : > { %v1862_v49 = vmul.f32 0.5, %v1861_v14 }
 0x39d   : > { %v1863_v39 = vsub.f32 1.5, %v1862_v49 }
 0x39f   : > { %v1864_v7 = vmul.f32 %v4892_v9, %v1863_v39 }
 0x3a1   : > { %v1868_v8 = vsel %vm1867_vm3, %v4892_v9, %v1864_v7  ;;  %v5670_v9 = vld [vmem:[%s5032_s29 + $0x8] ss:$0 sm:$0xff] }
 0x3a2   : > { %v1871_v52 = vmul.f32 %v1868_v8, %v5571_v51 }
 0x3a4   : > { %2007 = vrot.lane.b32.xlu0 %v1871_v52, %s7213_s1  ;;  %1906 = vmatpush.msrb.mxu2 %v1871_v52 }
 0x3a5   : > { %1998 = vrot.lane.b32.xlu1 %v1871_v52, %s7214_s2  ;;  %1974 = vrot.lane.b32.xlu2 %v1871_v52, %s7226_s11 }
 0x3a6   : > { %2124 = vmatpush.msrb.mxu3 %v1871_v52  ;;  %1907 = vmatpush.msrb.mxu2 %v1870_v47 }
 0x3a8   : > { %2125 = vmatpush.msrb.mxu3 %v1870_v47  ;;  %1908 = vmatpush.msrb.mxu2 %v5525_v24 }
 0x3aa   : > { %2126 = vmatpush.msrb.mxu3 %v5525_v24  ;;  %v2004_v24 = vpop.permute.xlu2 %2003 }
 0x3ab   : > { %v2012_v42 = vsel %vm1299_vm5, %v5580_v0, %v2004_v24 }
 0x3ac   : > { %2103 = vrot.lane.b32.xlu0 %v1871_v52, %s7221_s23  ;;  %v2015_v30 = vmul.f32 %v2012_v42, %v5258_v31  ;;  %v1872_v42 = vld [vmem:[%s7207_s12] sm:$0xff] }
 0x3ad   : > { %2005 = vrot.lane.b32.xlu1 %v1870_v47, %s7213_s1  ;;  %2101 = vrot.lane.b32.xlu2 %v1870_v47, %s7221_s23 }
 0x3ae   : > { %4724 = vmatmul.msk.f32.vlgmr.msrb.gmra.mxu2 %vm1886_vm9, %v1872_v42 }
 0x3b2   : > { %v2091_v50 = vpop.permute.xlu2 %2090 }
 0x3b3   : > { %v2108_v0 = vsel %vm1339_vm0, %v2091_v50, %v5578_v57 }
 0x3b4   : > { %2092 = vrot.lane.b32.xlu0 %v1870_v47, %s7218_s16  ;;  %v2111_v49 = vmul.f32 %v5670_v9, %v2108_v0 }
 0x3b5   : > { %2094 = vrot.lane.b32.xlu1 %v1871_v52, %s7218_s16  ;;  %1950 = vrot.lane.b32.xlu2 %v1871_v52, %s7227_s18 }
 0x3ba   : > { %v1980_v51 = vpop.permute.xlu2 %1979 }
 0x3bb   : > { %v1988_v57 = vsel %vm1289_vm6, %v5584_v2, %v1980_v51 }
 0x3bc   : > { %1981 = vrot.lane.b32.xlu0 %v1870_v47, %s7228_s5 }
 0x3bd   : > { %1983 = vrot.lane.b32.xlu1 %v1871_v52, %s7228_s5  ;;  %2077 = vrot.lane.b32.xlu2 %v1870_v47, %s7219_s22 }
 0x3c2   : > { %v5646_v53 = vpop.permute.xlu2 %2066 }
 0x3c3   : > { %v2084_v2 = vsel %vm1329_vm2, %v5646_v53, %v5582_v4 }
 0x3c4   : > { %2079 = vrot.lane.b32.xlu0 %v1871_v52, %s7219_s22 }
 0x3c5   : > { %1972 = vrot.lane.b32.xlu1 %v1870_v47, %s7226_s11  ;;  %1926 = vrot.lane.b32.xlu2 %v1871_v52, %s7229_s9 }
 0x3ca   : > { %v5651_v55 = vpop.permute.xlu2 %1955 }
 0x3cc   : > { %2068 = vrot.lane.b32.xlu0 %v1870_v47, %s7220_s0 }
 0x3cd   : > { %2070 = vrot.lane.b32.xlu1 %v1871_v52, %s7220_s0  ;;  %2053 = vrot.lane.b32.xlu2 %v1870_v47, %s7215_s28 }
 0x3d2   : > { %v5654_v1 = vpop.permute.xlu2 %2042 }
 0x3d4   : > { %1957 = vrot.lane.b32.xlu0 %v1870_v47, %s7230_s13 }
 0x3d5   : > { %1959 = vrot.lane.b32.xlu1 %v1871_v52, %s7230_s13  ;;  %2020 = vrot.lane.b32.xlu2 %v1870_v47, %s7225_s4 }
 0x3da   : > { %v5658_v12 = vpop.permute.xlu2 %1931 }
 0x3dc   : > { %2055 = vrot.lane.b32.xlu0 %v1871_v52, %s7215_s28 }
 0x3dd   : > { %1948 = vrot.lane.b32.xlu1 %v1870_v47, %s7227_s18 }
 0x3df   : > { %v2193_v54 = vpop.f32.mrf.mxu1 }
 0x3e0   : > { %v2194_v37 = vadd.f32 %v2193_v54, %v2168_v56 }
 0x3e2   : > { %v2199_v6 = vadd.f32 1.0, %v2194_v37 }
 0x3e4   : > { %2044 = vrot.lane.b32.xlu0 %v1870_v47, %s7216_s26  ;;  %2202 = vperm.xlu2 %4866, %v2199_v6   ;;  %v1991_v6 = vmul.f32 %v1988_v57, %v5262_v35 }
 0x3e5   : > { %2046 = vrot.lane.b32.xlu1 %v1871_v52, %s7216_s26 }
 0x3e7   : > { %v2196_v61 = vpop.f32.mrf.mxu1 }
 0x3e8   : > { %v2197_v18 = vadd.f32 %v2196_v61, %v2169_v27 }
 0x3ec   : > { %1933 = vrot.lane.b32.xlu0 %v1870_v47, %s7231_s17 }
 0x3ed   : > { %1935 = vrot.lane.b32.xlu1 %v1871_v52, %s7231_s17 }
 0x3ee   : > { %v1997_v63 = vpop.permute.xlu2 %1996 }
 0x3f4   : > { %2031 = vrot.lane.b32.xlu0 %v1871_v52, %s7217_s15 }
 0x3f5   : > { %1924 = vrot.lane.b32.xlu1 %v1870_v47, %s7229_s9 }
 0x3fd   : > { %2022 = vrot.lane.b32.xlu1 %v1871_v52, %s7225_s4 }
 0x3ff   : > { %v1975_v38 = vpop.permute.xlu2 %1974 }
 0x405   : > { %2029 = vrot.lane.b32.xlu1 %v1870_v47, %s7217_s15 }
 0x407   : > { %v2102_v43 = vpop.permute.xlu2 %2101 }
 0x40d   : > { %2208 = vperm.xlu1 %4864, %v2197_v18  }
 0x40f   : > { %v1951_v24 = vpop.permute.xlu2 %1950 }
 0x416   : > { %v2008_v5 = vpop.permute.xlu0 %2007 }
 0x417   : > { %v1999_v33 = vpop.permute.xlu1 %1998  ;;  %v2078_v61 = vpop.permute.xlu2 %2077 }
 0x418   : > { %v2014_v36 = vsel %vm1299_vm5, %v1999_v33, %v2008_v5 }
 0x419   : > { %v2017_v58 = vmul.f32 %v2014_v36, %v5258_v31  ;;  %v2087_v36 = vmul.f32 %v2084_v2, %v5240_v11 }
 0x41b   : > { %2127 = vmatpush.msrb.mxu3 %v2017_v58 }
 0x41e   : > { %v2104_v41 = vpop.permute.xlu0 %2103 }
 0x41f   : > { %v2006_v15 = vpop.permute.xlu1 %2005 }
 0x420   : > { %v2013_v59 = vsel %vm1299_vm5, %v1997_v63, %v2006_v15 }
 0x421   : > { %v2016_v3 = vmul.f32 %v2013_v59, %v5258_v31  ;;  %v1927_v59 = vpop.permute.xlu2 %1926 }
 0x423   : > { %2128 = vmatpush.msrb.mxu3 %v2016_v3  ;;  %v1964_v3 = vsel %vm1279_vm7, %v5602_v25, %v5651_v55  ;;  %v2060_v55 = vsel %vm1319_vm4, %v5654_v1, %v5589_v23  ;;  %v1940_v23 = vsel %vm7233_vm14, %v5610_v13, %v5658_v12  ;;  %vm7153_vm14 = vcmask 89088  }
 0x425   : > { %2129 = vmatpush.msrb.mxu3 %v2015_v30 }
 0x426   : > { %v2093_v21 = vpop.permute.xlu0 %2092 }
 0x427   : > { %v2095_v44 = vpop.permute.xlu1 %2094  ;;  %v2109_v45 = vsel %vm1339_vm0, %v2093_v21, %v2102_v43  ;;  %v1967_v43 = vmul.f32 %v1964_v3, %v5265_v40 }
 0x428   : > { %v2110_v47 = vsel %vm1339_vm0, %v2095_v44, %v2104_v41  ;;  %v2112_v14 = vmul.f32 %v5670_v9, %v2109_v45  ;;  %v1873_v44 = vld [vmem:[%s7207_s12 + $0x8] sm:$0xff]  ;;  %s7236_s12 = sld [smem:[#allocation9_spill]] }
 0x429   : > { %v2113_v48 = vmul.f32 %v5670_v9, %v2110_v47  ;;  %4725 = vmatmul.msk.f32.gmra.mxu2 %vm1886_vm9, %v1873_v44  ;;  %v2054_v47 = vpop.permute.xlu2 %2053  ;;  %vm2491_vm9 = vcmask 97280  }
 0x42b   : > { %2148 = vmatpush.msra.mxu2 %v2113_v48 }
 0x42d   : > { %2149 = vmatpush.msra.mxu2 %v2112_v14 }
 0x42e   : > { %v1982_v39 = vpop.permute.xlu0 %1981 }
 0x42f   : > { %v1984_v7 = vpop.permute.xlu1 %1983  ;;  %2150 = vmatpush.msra.mxu2 %v2111_v49 }
 0x430   : > { %v1990_v8 = vsel %vm1289_vm6, %v1975_v38, %v1984_v7 }
 0x431   : > { %v1993_v52 = vmul.f32 %v1990_v8, %v5262_v35  ;;  %v1918_v8 = vld [vmem:[%s5047_s14] sm:$0xff]  ;;  %v5725_v2 = vpop.f32.mrf.mxu2 }
 0x432   : > { %2116 = vperm.xlu0 %4865, %v1918_v8  }
 0x433   : > { %2130 = vmatpush.msrb.mxu3 %v1993_v52 }
 0x436   : > { %v2080_v56 = vpop.permute.xlu0 %2079 }
 0x437   : > { %v1973_v54 = vpop.permute.xlu1 %1972 }
 0x438   : > { %v1989_v50 = vsel %vm1289_vm6, %v1973_v54, %v1982_v39  ;;  %v2063_v39 = vmul.f32 %v2060_v55, %v5247_v17 }
 0x439   : > { %v1992_v37 = vmul.f32 %v1989_v50, %v5262_v35  ;;  %v1943_v50 = vmul.f32 %v1940_v23, %v5271_v46 }
 0x43b   : > { %2131 = vmatpush.msrb.mxu3 %v1992_v37  ;;  %v1916_v37 = vld [vmem:[%s7208_s8] sm:$0xff] }
 0x43d   : > { %2132 = vmatpush.msrb.mxu3 %v1991_v6 }
 0x43e   : > { %v2069_v27 = vpop.permute.xlu0 %2068 }
 0x43f   : > { %v2071_v18 = vpop.permute.xlu1 %2070  ;;  %v2085_v63 = vsel %vm1329_vm2, %v2069_v27, %v2078_v61 }
 0x440   : > { %v2086_v5 = vsel %vm1329_vm2, %v2071_v18, %v2080_v56  ;;  %v2088_v51 = vmul.f32 %v2085_v63, %v5240_v11  ;;  %v2021_v63 = vpop.permute.xlu2 %2020 }
 0x441   : > { %v2089_v33 = vmul.f32 %v2086_v5, %v5240_v11 }
 0x443   : > { %2151 = vmatpush.msra.mxu2 %v2089_v33  ;;  %v1917_v33 = vld [vmem:[%s7208_s8 + $0x8] sm:$0xff]  ;;  %s7235_s8 = sld [smem:[#allocation11_spill]] }
 0x445   : > { %2152 = vmatpush.msra.mxu2 %v2088_v51 }
 0x446   : > { %v1958_v58 = vpop.permute.xlu0 %1957 }
 0x447   : > { %v1960_v38 = vpop.permute.xlu1 %1959  ;;  %2153 = vmatpush.msra.mxu2 %v2087_v36 }
 0x448   : > { %v1966_v41 = vsel %vm1279_vm7, %v1951_v24, %v1960_v38 }
 0x449   : > { %v1969_v15 = vmul.f32 %v1966_v41, %v5265_v40  ;;  %v1874_v44 = vld [vmem:[%s7235_s8] sm:$0xff] }
 0x44b   : > { %2133 = vmatpush.msrb.mxu3 %v1969_v15 }
 0x44e   : > { %v2056_v4 = vpop.permute.xlu0 %2055 }
 0x44f   : > { %v1949_v53 = vpop.permute.xlu1 %1948 }
 0x450   : > { %v1965_v30 = vsel %vm1279_vm7, %v1949_v53, %v1958_v58 }
 0x451   : > { %v1968_v21 = vmul.f32 %v1965_v30, %v5265_v40 }
 0x453   : > { %2134 = vmatpush.msrb.mxu3 %v1968_v21 }
 0x455   : > { %2135 = vmatpush.msrb.mxu3 %v1967_v43 }
 0x456   : > { %v2045_v45 = vpop.permute.xlu0 %2044 }
 0x457   : > { %v2047_v48 = vpop.permute.xlu1 %2046  ;;  %v2061_v0 = vsel %vm1319_vm4, %v2045_v45, %v2054_v47  ;;  %v2217_v45 = vld [vmem:[%s7236_s12] sm:$0xff]  ;;  %v1875_v47 = vld [vmem:[%s7235_s8 + $0x8] sm:$0xff]  ;;  %s7270_s8 = smov 123  }
 0x458   : > { %v2062_v14 = vsel %vm1319_vm4, %v2047_v48, %v2056_v4  ;;  %v2064_v49 = vmul.f32 %v2061_v0, %v5247_v17  ;;  %v2218_v48 = vld [vmem:[%s7236_s12 + $0x8] sm:$0xff]  ;;  %s7280_s12 = sld [smem:[#allocation20_spill]] }
 0x459   : > { %v2065_v25 = vmul.f32 %v2062_v14, %v5247_v17 }
 0x45b   : > { %2154 = vmatpush.msra.mxu2 %v2065_v25 }
 0x45d   : > { %2155 = vmatpush.msra.mxu2 %v2064_v49 }
 0x45e   : > { %v1934_v56 = vpop.permute.xlu0 %1933 }
 0x45f   : > { %v1936_v7 = vpop.permute.xlu1 %1935  ;;  %2156 = vmatpush.msra.mxu2 %v2063_v39 }
 0x460   : > { %v1942_v52 = vsel %vm7232_vm11, %v1927_v59, %v1936_v7  ;;  %v2203_v59 = vpop.permute.xlu2 %2202 }
 0x461   : > { %v1945_v24 = vmul.f32 %v1942_v52, %v5271_v46 }
 0x463   : > { %2136 = vmatpush.msrb.mxu3 %v1945_v24 }
 0x466   : > { %v2032_v6 = vpop.permute.xlu0 %2031 }
 0x467   : > { %v1925_v54 = vpop.permute.xlu1 %1924 }
 0x468   : > { %v1941_v1 = vsel %vm7234_vm12, %v1925_v54, %v1934_v56 }
 0x469   : > { %v1944_v57 = vmul.f32 %v1941_v1, %v5271_v46 }
 0x46b   : > { %2137 = vmatpush.msrb.mxu3 %v1944_v57 }
 0x46d   : > { %2138 = vmatpush.msrb.mxu3 %v1943_v50 }
 0x46e   : > { %2139 = vmatmul.f32.vlgmr.msrb.gmra.mxu3 %v1916_v37 }
 0x46f   : > { %v2023_v27 = vpop.permute.xlu1 %2022 }
 0x470   : > { %v2038_v61 = vsel %vm1309_vm1, %v2023_v27, %v2032_v6 }
 0x471   : > { %v2041_v18 = vmul.f32 %v2038_v61, %v5238_v10 }
 0x473   : > { %2157 = vmatpush.msra.mxu2 %v2041_v18 }
 0x477   : > { %v2030_v13 = vpop.permute.xlu1 %2029 }
 0x478   : > { %v2037_v12 = vsel %vm1309_vm1, %v2021_v63, %v2030_v13 }
 0x479   : > { %v2040_v5 = vmul.f32 %v2037_v12, %v5238_v10 }
 0x47b   : > { %2158 = vmatpush.msra.mxu2 %v2040_v5 }
 0x47c   : > { %4726 = vmatmul.msk.f32.vlgmr.msra.gmra.mxu2 %vm2119_vm13, %v1917_v33 }
 0x47f   : > { %v2209_v3 = vpop.permute.xlu1 %2208 }
 0x4a4   : > { %v2117_v36 = vpop.permute.xlu0 %2116 }
 0x4ac   : > { %v5727_v51 = vpop.f32.mrf.mxu2 }
 0x4f1   : > { %v2140_v58 = vpop.f32.mrf.mxu3 }
 0x4f2   : > { %v2141_v38 = vadd.f32 %v2140_v58, %v2117_v36 }
 0x4ff   : > { %v2160_v41 = vpop.f32.mrf.mxu2 }
 0x500   : > { %v2161_v15 = vadd.f32 %v2160_v41, %v2141_v38 }
 0x502   : > { %vm2163_vm15 = vcmp.gt.f32.partialorder %v2161_v15, 0.0  ;;  %v2164_v42 = vmul.f32 0.2, %v2161_v15 }
 0x504   : > { %v2165_v4 = vsel %vm2163_vm15, %v2161_v15, %v2164_v42 }
 0x505   : > { %v2205_v53 = vmul.f32 %v2203_v59, %v2165_v4 }
 0x507   : > { %v2211_v30 = vadd.f32 %v2209_v3, %v2205_v53 }
 0x509   : > { %vm2212_vm3 = vcmp.gt.f32.partialorder %v2211_v30, 0.0  ;;  %v2213_v21 = vmul.f32 0.2, %v2211_v30 }
 0x50b   : > { %v2214_v43 = vsel %vm2212_vm3, %v2211_v30, %v2213_v21 }
 0x50c   : > { %2268 = vrot.lane.b32.xlu0 %v2214_v43, %s7220_s0  ;;  %2279 = vrot.lane.b32.xlu1 %v2214_v43, %s7221_s23  ;;  %s7165_s23 = smov 117   ;;  %s7161_s0 = smov 4  }
 0x50d   : > { %2276 = vrot.lane.b32.xlu2 %v2214_v43, %s7218_s16 }
 0x514   : > { %2263 = vrot.lane.b32.xlu0 %v2214_v43, %s7215_s28  ;;  %2260 = vrot.lane.b32.xlu1 %v2214_v43, %s7216_s26  ;;  %s7142_s26 = smov 113   ;;  %s7159_s28 = smov 3  }
 0x515   : > { %2271 = vrot.lane.b32.xlu2 %v2214_v43, %s7219_s22  ;;  %s7134_s22 = smov 5  }
 0x51c   : > { %2244 = vrot.lane.b32.xlu0 %v2214_v43, %s7214_s2  ;;  %2255 = vrot.lane.b32.xlu1 %v2214_v43, %s7217_s15  ;;  %s7132_s2 = smov 124  }
 0x51d   : > { %2252 = vrot.lane.b32.xlu2 %v2214_v43, %s7225_s4 }
 0x524   : > { %2239 = vrot.lane.b32.xlu0 %v2214_v43, %s7228_s5  ;;  %2236 = vrot.lane.b32.xlu1 %v2214_v43, %s7226_s11  ;;  %s7237_s5 = sld [smem:[#allocation6_spill]]  ;;  %s7157_s11 = smov 13  }
 0x525   : > { %2247 = vrot.lane.b32.xlu2 %v2214_v43, %s7213_s1 }
 0x52a   : > { %v2335_v6 = vld [vmem:[%s7237_s5 + $0x38] sm:$0xff]  ;;  %v2333_v61 = vld [vmem:[%s7237_s5 + $0x28] sm:$0xff]  ;;  %v2332_v63 = vld [vmem:[%s7237_s5 + $0x20] sm:$0xff] }
 0x52b   : > { %2350 = vmatpush.msra.mxu0 %v2335_v6  ;;  %v2331_v59 = vld [vmem:[%s7237_s5 + $0x18] sm:$0xff]  ;;  %v2330_v4 = vld [vmem:[%s7237_s5 + $0x10] sm:$0xff]  ;;  %v2329_v53 = vld [vmem:[%s7237_s5 + $0x8] sm:$0xff] }
 0x52c   : > { %2220 = vrot.lane.b32.xlu0 %v2214_v43, %s7229_s9  ;;  %2231 = vrot.lane.b32.xlu1 %v2214_v43, %s7230_s13  ;;  %s7238_s9 = sld [smem:[#allocation8_spill]]  ;;  %v2328_v3 = vld [vmem:[%s7237_s5] sm:$0xff]  ;;  %s4775_s13 = sshll.u32 %s7309_s10, 4 }
 0x52d   : > { %2228 = vrot.lane.b32.xlu2 %v2214_v43, %s7227_s18  ;;  %s1187_s15 = scalar_lea.vmem %s5172_s30, %s4775_s13  ;;  %s7136_s18 = smov 116  }
 0x52e   : > { %s7167_s13 = smov 115  }
 0x532   : > { %v2215_v42 = vld [vmem:[%s7238_s9] sm:$0xff] }
 0x534   : > { %1878 = vperm.xlu0 %4865, %v1874_v44   ;;  %2286 = vperm.xlu1 %4864, %v2217_v45  }
 0x535   : > { %2223 = vrot.lane.b32.xlu2 %v2214_v43, %s7231_s17  ;;  %s4778_s17 = smul.u32 48, %s7309_s10 }
 0x537   : > { %s5783_s16 = scalar_lea.vmem %s7240_s3, %s4778_s17  ;;  %s7155_s17 = smov 15  }
 0x538   : > { %s7267_s3 = smov 115  }
 0x53c   : > { %1883 = vperm.xlu1 %4864, %v1875_v47  }
 0x53d   : > { %2291 = vperm.xlu2 %4866, %v2218_v48  }
 0x567   : > { %v2277_v0 = vpop.permute.xlu2 %2276 }
 0x56f   : > { %v2272_v14 = vpop.permute.xlu2 %2271 }
 0x577   : > { %v2253_v49 = vpop.permute.xlu2 %2252 }
 0x57e   : > { %v2269_v25 = vpop.permute.xlu0 %2268  ;;  %v2280_v55 = vpop.permute.xlu1 %2279 }
 0x57f   : > { %v2274_v39 = vsel %vm1329_vm2, %v2269_v25, %v2272_v14  ;;  %v2282_v7 = vsel %vm1339_vm0, %v2277_v0, %v2280_v55  ;;  %v2248_v1 = vpop.permute.xlu2 %2247  ;;  %vm7239_vm0 = vmmov %vm7232_vm11  ;;  %vm2365_vm2 = vcmask 130048   ;;  %vm7154_vm11 = vcmask 121856  }
 0x580   : > { %v2283_v8 = vmul.f32 %v5670_v9, %v2282_v7  ;;  %v2275_v52 = vmul.f32 %v2274_v39, %v5240_v11  ;;  %v2334_v9 = vld [vmem:[%s7237_s5 + $0x30] sm:$0xff]  ;;  %s7269_s5 = smov 117  }
 0x581   : > { %2351 = vmatpush.msra.mxu0 %v2334_v9 }
 0x582   : > { %2308 = vmatpush.msrb.mxu1 %v2283_v8 }
 0x583   : > { %2352 = vmatpush.msra.mxu0 %v2333_v61 }
 0x584   : > { %2309 = vmatpush.msrb.mxu1 %v2275_v52 }
 0x585   : > { %2353 = vmatpush.msra.mxu0 %v2332_v63 }
 0x586   : > { %v2264_v24 = vpop.permute.xlu0 %2263  ;;  %v2261_v56 = vpop.permute.xlu1 %2260 }
 0x587   : > { %v2266_v54 = vsel %vm1319_vm4, %v2261_v56, %v2264_v24  ;;  %v2229_v18 = vpop.permute.xlu2 %2228  ;;  %2354 = vmatpush.msra.mxu0 %v2331_v59  ;;  %vm2402_vm4 = vcmask 31744  }
 0x588   : > { %v2267_v23 = vmul.f32 %v2266_v54, %v5247_v17 }
 0x589   : > { %2355 = vmatpush.msra.mxu0 %v2330_v4 }
 0x58a   : > { %2310 = vmatpush.msrb.mxu1 %v2267_v23 }
 0x58b   : > { %2356 = vmatpush.msra.mxu0 %v2329_v53 }
 0x58d   : > { %2357 = vmatpush.msra.mxu0 %v2328_v3 }
 0x58e   : > { %v2245_v57 = vpop.permute.xlu0 %2244  ;;  %v2256_v50 = vpop.permute.xlu1 %2255 }
 0x58f   : > { %v2258_v37 = vsel %vm1309_vm1, %v2253_v49, %v2256_v50  ;;  %v2250_v11 = vsel %vm1299_vm5, %v2245_v57, %v2248_v1  ;;  %v2224_v33 = vpop.permute.xlu2 %2223  ;;  %vm2294_vm1 = vcmask 588800  }
 0x590   : > { %v2259_v27 = vmul.f32 %v2258_v37, %v5238_v10  ;;  %v2251_v17 = vmul.f32 %v2250_v11, %v5258_v31 }
 0x592   : > { %2311 = vmatpush.msrb.mxu1 %v2259_v27 }
 0x594   : > { %2312 = vmatpush.msrb.mxu1 %v2214_v43 }
 0x596   : > { %v2240_v13 = vpop.permute.xlu0 %2239  ;;  %v2237_v12 = vpop.permute.xlu1 %2236  ;;  %2313 = vmatpush.msrb.mxu1 %v2251_v17 }
 0x597   : > { %v2242_v10 = vsel %vm1289_vm6, %v2237_v12, %v2240_v13  ;;  %v2292_v47 = vpop.permute.xlu2 %2291  ;;  %vm2384_vm6 = vcmask 39936  }
 0x598   : > { %v2243_v5 = vmul.f32 %v2242_v10, %v5262_v35  ;;  %v2216_v35 = vld [vmem:[%s7238_s9 + $0x8] sm:$0xff]  ;;  %s7273_s9 = sld [smem:[#allocation15_spill]] }
 0x59a   : > { %2314 = vmatpush.msrb.mxu1 %v2243_v5 }
 0x59e   : > { %v2221_v36 = vpop.permute.xlu0 %2220  ;;  %v2232_v58 = vpop.permute.xlu1 %2231 }
 0x59f   : > { %v2226_v31 = vsel %vm7239_vm0, %v2221_v36, %v2224_v33  ;;  %v2234_v38 = vsel %vm1279_vm7, %v2229_v18, %v2232_v58  ;;  %vm2420_vm7 = vcmask 23552  }
 0x5a0   : > { %v2235_v41 = vmul.f32 %v2234_v38, %v5265_v40  ;;  %v2227_v15 = vmul.f32 %v2226_v31, %v5271_v46 }
 0x5a2   : > { %2315 = vmatpush.msrb.mxu1 %v2235_v41 }
 0x5a4   : > { %2316 = vmatpush.msrb.mxu1 %v2227_v15 }
 0x5a5   : > { %4729 = vmatmul.msk.f32.vlgmr.msrb.gmra.mxu1 %vm2294_vm1, %v2215_v42 }
 0x5a6   : > { %v2287_v30 = vpop.permute.xlu1 %2286  ;;  %v1879_v40 = vpop.permute.xlu0 %1878 }
 0x5a7   : > { %v1911_v43 = vadd.f32 %v5725_v2, %v1879_v40 }
 0x5ad   : > { %4730 = vmatmul.msk.f32.gmra.mxu1 %vm2294_vm1, %v2216_v35 }
 0x5ae   : > { %v1884_v48 = vpop.permute.xlu1 %1883 }
 0x5af   : > { %v1914_v25 = vadd.f32 %v5727_v51, %v1884_v48 }
 0x622   : > { %v2318_v21 = vpop.f32.mrf.mxu1 }
 0x623   : > { %v2319_v46 = vadd.f32 %v2318_v21, %v2287_v30 }
 0x625   : > { %v2324_v44 = vmul.f32 0.1, %v2319_v46 }
 0x627   : > { %v2326_v45 = vadd.f32 %v2324_v44, %v1911_v43 }
 0x629   : > { %4731 = vmatmul.msk.f32.vlgmr.msra.gmra.mxu0 %vm1392_vm10, %v2326_v45 }
 0x62a   : > { %v2321_v0 = vpop.f32.mrf.mxu1 }
 0x62b   : > { %v2322_v14 = vadd.f32 %v2321_v0, %v2292_v47 }
 0x62d   : > { %v2325_v55 = vmul.f32 0.1, %v2322_v14 }
 0x62f   : > { %v2327_v49 = vadd.f32 %v2325_v55, %v1914_v25 }
 0x631   : > { %4732 = vmatmul.msk.f32.gmra.mxu0 %vm1392_vm10, %v2327_v49  ;;  %vm2473_vm10 = vcmask 105472  }
 0x6a6   : > { %v5785_v2 = vpop.f32.mrf.mxu0 }
 0x6a7   : > { %2366 = vst.msk [vmem:[%s1187_s15] sm:$0xff] %vm2365_vm2, %v5785_v2  ;;  %2390 = vrot.lane.b32.xlu0 %v5785_v2, %s7136_s18  ;;  %2378 = vrot.lane.b32.xlu1 %v5785_v2, %s7134_s22  ;;  %s7140_s22 = smov 12   ;;  %v3175_v39 = vsel %vm2365_vm2, %v5785_v2, 0.0 }
 0x6a8   : > { %2372 = vrot.lane.b32.xlu2 %v5785_v2, %s7165_s23  ;;  %3169 = vst.msk [vmem:[%s5783_s16] sm:$0xff] %vm2365_vm2, %v5785_v2 }
 0x6ae   : > { %v5798_v51 = vpop.f32.mrf.mxu0 }
 0x6af   : > { %2367 = vst.msk [vmem:[%s1187_s15 + $0x8] sm:$0xff] %vm2365_vm2, %v5798_v51  ;;  %2426 = vrot.lane.b32.xlu0 %v5785_v2, %s7142_s26  ;;  %2414 = vrot.lane.b32.xlu1 %v5785_v2, %s7159_s28  ;;  %s7169_s15 = smov 123   ;;  %v3178_v23 = vsel %vm2365_vm2, %v5798_v51, 0.0 }
 0x6b0   : > { %2396 = vrot.lane.b32.xlu2 %v5785_v2, %s7161_s0  ;;  %3170 = vst.msk [vmem:[%s5783_s16 + $0x8] sm:$0xff] %vm2365_vm2, %v5798_v51 }
 0x6b7   : > { %2479 = vrot.lane.b32.xlu0 %v5785_v2, %s7132_s2  ;;  %2467 = vrot.lane.b32.xlu1 %v5785_v2, %s7157_s11  ;;  %s7138_s2 = smov 125  }
 0x6b8   : > { %2408 = vrot.lane.b32.xlu2 %v5785_v2, %s7167_s13 }
 0x6bf   : > { %2449 = vrot.lane.b32.xlu0 %v5785_v2, %s7155_s17  ;;  %2443 = vrot.lane.b32.xlu1 %v5785_v2, %s7225_s4 }
 0x6c0   : > { %2432 = vrot.lane.b32.xlu2 %v5785_v2, %s7213_s1 }
 0x6c7   : > { %2497 = vrot.lane.b32.xlu0 %v5785_v2, %s7169_s15  ;;  %2392 = vrot.lane.b32.xlu1 %v5798_v51, %s7136_s18  ;;  %s7163_s18 = smov 11  }
 0x6c8   : > { %2461 = vrot.lane.b32.xlu2 %v5785_v2, %s7138_s2 }
 0x6cf   : > { %2410 = vrot.lane.b32.xlu1 %v5798_v51, %s7167_s13  ;;  %2374 = vrot.lane.b32.xlu0 %v5798_v51, %s7165_s23 }
 0x6d0   : > { %2485 = vrot.lane.b32.xlu2 %v5785_v2, %s7140_s22 }
 0x6d7   : > { %2463 = vrot.lane.b32.xlu1 %v5798_v51, %s7138_s2  ;;  %2398 = vrot.lane.b32.xlu0 %v5798_v51, %s7161_s0  ;;  %s7241_s2 = sld [smem:[#allocation12_spill]] }
 0x6d8   : > { %2503 = vrot.lane.b32.xlu2 %v5785_v2, %s7163_s18 }
 0x6dd   : > { %v2368_v37 = vld [vmem:[%s7241_s2] sm:$0xff]  ;;  %v5897_v49 = vld [vmem:[%s7241_s2 + $0x8] ss:$0 sm:$0xff] }
 0x6de   : > { %v5864_v6 = vperm.slane %v2368_v37, 1  ;;  %v5866_v9 = vperm.slane %v2368_v37, 0  ;;  %v5870_v61 = vperm.slane %v2368_v37, 3  ;;  %v5872_v18 = vperm.slane %v2368_v37, 2 }
 0x6df   : > { %2487 = vrot.lane.b32.xlu1 %v5798_v51, %s7140_s22  ;;  %2416 = vrot.lane.b32.xlu0 %v5798_v51, %s7159_s28  ;;  %s7242_s22 = smov 5   ;;  %v5882_v31 = vperm.slane %v2368_v37, 6  ;;  %v5884_v38 = vperm.slane %v2368_v37, 7  ;;  %v5886_v42 = vperm.slane %v2368_v37, 5 }
 0x6e7   : > { %2445 = vrot.lane.b32.xlu1 %v5798_v51, %s7225_s4  ;;  %2428 = vrot.lane.b32.xlu0 %v5798_v51, %s7142_s26  ;;  %s7243_s26 = smov 124  }
 0x6ef   : > { %2505 = vrot.lane.b32.xlu1 %v5798_v51, %s7163_s18  ;;  %2469 = vrot.lane.b32.xlu0 %v5798_v51, %s7157_s11 }
 0x6f7   : > { %2451 = vrot.lane.b32.xlu0 %v5798_v51, %s7155_s17 }
 0x701   : > { %3176 = vadd.xlane.f32.xlu2 %v3175_v39 }
 0x702   : > { %v2373_v7 = vpop.permute.xlu2 %2372 }
 0x70a   : > { %v2397_v8 = vpop.permute.xlu2 %2396 }
 0x712   : > { %v2409_v52 = vpop.permute.xlu2 %2408 }
 0x719   : > { %2380 = vrot.lane.b32.xlu2 %v5798_v51, %s7242_s22  ;;  %v2391_v24 = vpop.permute.xlu0 %2390  ;;  %v2379_v56 = vpop.permute.xlu1 %2378 }
 0x71a   : > { %v2433_v54 = vpop.permute.xlu2 %2432  ;;  %v2403_v27 = vsel %vm2402_vm4, %v2391_v24, %v2397_v8  ;;  %v2385_v11 = vsel %vm2384_vm6, %v2373_v7, %v2379_v56 }
 0x71b   : > { %v2406_v10 = vmul.f32 %v5864_v6, %v2403_v27  ;;  %v2388_v5 = vmul.f32 %v5866_v9, %v2385_v11 }
 0x71d   : > { %v2517_v41 = vmul.f32 -2.0, %v2406_v10  ;;  %v2515_v15 = vmul.f32 -1.0, %v2388_v5 }
 0x71f   : > { %v2519_v46 = vadd.f32 %v2517_v41, %v2515_v15 }
 0x721   : > { %2434 = vrot.lane.b32.xlu2 %v5798_v51, %s7213_s1  ;;  %v2427_v1 = vpop.permute.xlu0 %2426  ;;  %v2415_v57 = vpop.permute.xlu1 %2414  ;;  %3179 = vadd.xlane.f32.xlu0 %v3178_v23 }
 0x722   : > { %v2462_v50 = vpop.permute.xlu2 %2461  ;;  %v2438_v13 = vsel %vm1299_vm5, %v2427_v1, %v2433_v54  ;;  %v2421_v12 = vsel %vm2420_vm7, %v2409_v52, %v2415_v57 }
 0x723   : > { %v2441_v33 = vmul.f32 %v5870_v61, %v2438_v13  ;;  %v2424_v36 = vmul.f32 %v5872_v18, %v2421_v12 }
 0x725   : > { %v2527_v4 = vmul.f32 -2.0, %v2441_v33  ;;  %v2521_v53 = vadd.f32 %v2515_v15, %v2424_v36  ;;  %v2523_v3 = vmul.f32 -1.0, %v2424_v36 }
 0x727   : > { %v2529_v47 = vadd.f32 %v2527_v4, %v2521_v53  ;;  %v2525_v48 = vadd.f32 %v2523_v3, %v2519_v46 }
 0x729   : > { %2481 = vrot.lane.b32.xlu2 %v5798_v51, %s7243_s26  ;;  %v2480_v63 = vpop.permute.xlu0 %2479  ;;  %v2468_v17 = vpop.permute.xlu1 %2467 }
 0x72a   : > { %v2486_v58 = vpop.permute.xlu2 %2485  ;;  %v2474_v35 = vsel %vm2473_vm10, %v2462_v50, %v2468_v17 }
 0x72b   : > { %v2492_v59 = vsel %vm2491_vm9, %v2480_v63, %v2486_v58  ;;  %v2477_v43 = vmul.f32 %v5882_v31, %v2474_v35 }
 0x72c   : > { %v2495_v44 = vmul.f32 %v5884_v38, %v2492_v59 }
 0x72d   : > { %v2539_v14 = vadd.f32 %v2525_v48, %v2477_v43  ;;  %v2535_v39 = vmul.f32 -1.0, %v2477_v43 }
 0x72e   : > { %v2541_v25 = vmul.f32 2.0, %v2495_v44 }
 0x730   : > { %v2543_v24 = vadd.f32 %v2541_v25, %v2539_v14  ;;  %v4992_v14 = vmov 16.0  }
 0x731   : > { %2499 = vrot.lane.b32.xlu2 %v5798_v51, %s7169_s15  ;;  %v2450_v30 = vpop.permute.xlu0 %2449  ;;  %v2444_v40 = vpop.permute.xlu1 %2443  ;;  %4893 = vrcp.f32 %v4992_v14 }
 0x732   : > { %v2456_v21 = vsel %vm7154_vm11, %v2444_v40, %v2450_v30  ;;  %v2504_v7 = vpop.permute.xlu2 %2503 }
 0x733   : > { %v2459_v45 = vmul.f32 %v5886_v42, %v2456_v21 }
 0x735   : > { %v2531_v0 = vmul.f32 2.0, %v2459_v45 }
 0x737   : > { %v2533_v55 = vadd.f32 %v2531_v0, %v2529_v47 }
 0x739   : > { %v2498_v8 = vpop.permute.xlu0 %2497  ;;  %v2537_v54 = vadd.f32 %v2535_v39, %v2533_v55 }
 0x73a   : > { %v2510_v52 = vsel %vm7153_vm14, %v2498_v8, %v2504_v7 }
 0x73b   : > { %v2513_v56 = vmul.f32 %v5897_v49, %v2510_v52 }
 0x73d   : > { %v5901_v23 = vadd.f32 %v2537_v54, %v2513_v56  ;;  %v5903_v1 = vadd.f32 %v2543_v24, %v2513_v56 }
 0x73f   : > { %v2552_v57 = vand.u32 2139095040, %v5901_v23  ;;  %v2862_v50 = vand.u32 2139095040, %v5903_v1  ;;  %v7151_v11 = vand.u32 2147483647, %v5901_v23  ;;  %v7150_v41 = vand.u32 2147483647, %v5903_v1 }
 0x741   : > { %v2553_v37 = vshrl.u32 %v2552_v57, 23  ;;  %v2863_v27 = vshrl.u32 %v2862_v50, 23  ;;  %v2556_v10 = vand.u32 8388607, %v7151_v11  ;;  %v2866_v4 = vand.u32 8388607, %v7150_v41  ;;  %v5934_v39 = vpop.permute.xlu0 %2374 }
 0x743   : > { %v4733_v63 = vadd.s32 4294967169, %v2553_v37  ;;  %v4739_v17 = vadd.s32 4294967169, %v2863_v27  ;;  %v2557_v15 = vor.u32 8388608, %v2556_v10  ;;  %v2867_v57 = vor.u32 8388608, %v2866_v4 }
 0x745   : > { %v2559_v13 = vadd.s32 1, %v4733_v63  ;;  %v2869_v12 = vadd.s32 1, %v4739_v17  ;;  %v5920_v30 = vshll.u32 %v2557_v15, 8 }
 0x747   : > { %vm2560_vm12 = vcmp.gt.s32.totalorder %v2559_v13, 0  ;;  %vm2870_vm13 = vcmp.gt.s32.totalorder %v2869_v12, 0  ;;  %v2598_v27 = vand.u32 65535, %v5920_v30  ;;  %v2599_v4 = vshrl.u32 %v5920_v30, 16 }
 0x748   : > { %v2561_v5 = vsel %vm2560_vm12, %v2559_v13, 0  ;;  %v2871_v33 = vsel %vm2870_vm13, %v2869_v12, 0 }
 0x749   : > { %v2563_v36 = vand.u32 31, %v2561_v5  ;;  %v5910_v58 = vand.u32 31, %v2871_v33  ;;  %v5922_v40 = vshrl.u32 %v2561_v5, 5  ;;  %v5942_v50 = vshrl.u32 %v2871_v33, 5  ;;  %v5954_v33 = vpop.eup %4893 }
 0x74a   : > { %v5978_v14 = vmul.f32 16.0, %v5954_v33 }
 0x74b   : > { %v2564_v35 = vsub.s32 32, %v2563_v36  ;;  %v5914_v59 = vsub.s32 32, %v5910_v58  ;;  %v2566_v21 = vshll.u32 %v4972_v16, %v2563_v36  ;;  %v2569_v46 = vshll.u32 %v7148_v20, %v2563_v36 }
 0x74c   : > { %v2572_v45 = vshll.u32 %v4974_v22, %v2563_v36  ;;  %v2575_v47 = vshll.u32 %v4975_v26, %v2563_v36  ;;  %v2578_v52 = vshll.u32 %v7146_v28, %v2563_v36  ;;  %v2885_v56 = vshll.u32 %v4975_v26, %v5910_v58 }
 0x74d   : > { %v2567_v53 = vshrl.u32 %v7148_v20, %v2564_v35  ;;  %v2570_v3 = vshrl.u32 %v4974_v22, %v2564_v35  ;;  %v2573_v43 = vshrl.u32 %v4975_v26, %v2564_v35  ;;  %v2886_v44 = vshrl.u32 %v7146_v28, %v5914_v59 }
 0x74e   : > { %v2576_v48 = vshrl.u32 %v7146_v28, %v2564_v35  ;;  %v2889_v0 = vshrl.u32 %v7144_v34, %v5914_v59  ;;  %v2579_v24 = vshrl.u32 %v7144_v34, %v2564_v35  ;;  %v2888_v54 = vshll.u32 %v7146_v28, %v5910_v58 }
 0x74f   : > { %v2568_v25 = vor.u32 %v2567_v53, %v2566_v21  ;;  %v2571_v55 = vor.u32 %v2570_v3, %v2569_v46  ;;  %v2574_v7 = vor.u32 %v2573_v43, %v2572_v45  ;;  %vm2581_vm15 = vcmp.lt.s32.totalorder %v5922_v40, 1 }
 0x750   : > { %v2577_v8 = vor.u32 %v2576_v48, %v2575_v47  ;;  %v2580_v37 = vor.u32 %v2579_v24, %v2578_v52  ;;  %v5946_v63 = vor.u32 %v2886_v44, %v2885_v56  ;;  %v2890_v17 = vor.u32 %v2889_v0, %v2888_v54  ;;  %v5982_v24 = vpop.permute.xlu0 %2398 }
 0x751   : > { %vm2584_vm3 = vcmp.lt.s32.totalorder %v5922_v40, 4  ;;  %v2589_v13 = vsel %vm2581_vm15, %v2568_v25, %v2571_v55  ;;  %vm2583_vm0 = vcmp.lt.s32.totalorder %v5922_v40, 3  ;;  %v2593_v10 = vsel %vm2581_vm15, %v2571_v55, %v2574_v7 }
 0x752   : > { %v2590_v12 = vsel %vm2584_vm3, %v2577_v8, 920167782  ;;  %v2594_v5 = vsel %vm2584_vm3, %v2580_v37, 1326507024  ;;  %vm2582_vm1 = vcmp.lt.s32.totalorder %v5922_v40, 2  ;;  %vm2894_vm12 = vcmp.lt.s32.totalorder %v5942_v50, 4 }
 0x753   : > { %v2591_v36 = vsel %vm2583_vm0, %v2574_v7, %v2590_v12  ;;  %v2595_v15 = vsel %vm2583_vm0, %v2577_v8, %v2594_v5  ;;  %v2565_v53 = vshrl.u32 %v4972_v16, %v2564_v35  ;;  %v2586_v46 = vsel %vm2584_vm3, %v2574_v7, 2102212464 }
 0x754   : > { %v2592_v3 = vsel %vm2582_vm1, %v2589_v13, %v2591_v36  ;;  %v2596_v21 = vsel %vm2582_vm1, %v2593_v10, %v2595_v15  ;;  %v5971_v47 = vsel %vm2894_vm12, %v5946_v63, 920167782  ;;  %v2904_v48 = vsel %vm2894_vm12, %v2890_v17, 1326507024  ;;  %v5992_v10 = vpop.permute.xlu1 %2392 }
 0x755   : > { %v2600_v43 = vand.u32 65535, %v2596_v21  ;;  %v2601_v44 = vshrl.u32 %v2596_v21, 16  ;;  %v2622_v45 = vand.u32 65535, %v2592_v3  ;;  %v2623_v0 = vshrl.u32 %v2592_v3, 16 }
 0x756   : > { %v5975_v35 = vshll.u32 %v2867_v57, 8  ;;  %v2585_v7 = vsel %vm2581_vm15, %v2565_v53, %v2568_v25  ;;  %v2587_v56 = vsel %vm2583_vm0, %v2571_v55, %v2586_v46  ;;  %v2876_v17 = vshll.u32 %v4972_v16, %v5910_v58 }
 0x757   : > { %v2603_v8 = vmul.u32 %v2601_v44, %v2598_v27  ;;  %v2604_v52 = vmul.u32 %v2600_v43, %v2599_v4  ;;  %v2625_v54 = vmul.u32 %v2623_v0, %v2598_v27  ;;  %v2626_v37 = vmul.u32 %v2622_v45, %v2599_v4 }
 0x758   : > { %v2602_v57 = vmul.u32 %v2600_v43, %v2598_v27  ;;  %v2877_v12 = vshrl.u32 %v7148_v20, %v5914_v59  ;;  %v2879_v25 = vshll.u32 %v7148_v20, %v5910_v58  ;;  %v2605_v5 = vmul.u32 %v2601_v44, %v2599_v4 }
 0x759   : > { %v2606_v13 = vshll.u32 %v2603_v8, 16  ;;  %v2624_v36 = vmul.u32 %v2622_v45, %v2598_v27  ;;  %v2628_v15 = vshll.u32 %v2625_v54, 16  ;;  %v2880_v55 = vshrl.u32 %v4974_v22, %v5914_v59 }
 0x75a   : > { %v2608_v53 = vshll.u32 %v2604_v52, 16  ;;  %v2627_v21 = vmul.u32 %v2623_v0, %v2599_v4  ;;  %v2630_v43 = vshll.u32 %v2626_v37, 16  ;;  %v5998_v41 = vor.u32 %v2877_v12, %v2876_v17 }
 0x75b   : > { %vm2610_vm13 = vc.u32 %v2602_v57, %v2606_v13  ;;  %v2612_v3 = vadd.s32 %v2606_v13, %v2602_v57  ;;  %vm2632_vm15 = vc.u32 %v2624_v36, %v2628_v15  ;;  %v2634_v34 = vadd.s32 %v2628_v15, %v2624_v36 }
 0x75c   : > { %v2611_v46 = vsel %vm2610_vm13, 1, %v4970_v19  ;;  %v2633_v20 = vsel %vm2632_vm15, 1, %v4970_v19  ;;  %v6001_v45 = vor.u32 %v2880_v55, %v2879_v25  ;;  %v3195_v57 = vsub.f32 1.0, %v5978_v14  ;;  %v6010_v25 = vpop.permute.xlu0 %2416 }
 0x75d   : > { %v2613_v28 = vadd.s32 %v2611_v46, %v2605_v5  ;;  %vm2614_vm3 = vc.u32 %v2612_v3, %v2608_v53  ;;  %v2635_v44 = vadd.s32 %v2633_v20, %v2627_v21  ;;  %vm2636_vm0 = vc.u32 %v2634_v34, %v2630_v43 }
 0x75e   : > { %v2615_v27 = vsel %vm2614_vm3, 1, %v4970_v19  ;;  %v2607_v4 = vshrl.u32 %v2603_v8, 16  ;;  %v2637_v13 = vsel %vm2636_vm0, 1, %v4970_v19  ;;  %v2629_v11 = vshrl.u32 %v2625_v54, 16 }
 0x75f   : > { %v2617_v0 = vadd.s32 %v2615_v27, %v2613_v28  ;;  %v2639_v36 = vadd.s32 %v2637_v13, %v2635_v44  ;;  %v2882_v5 = vshll.u32 %v4974_v22, %v5910_v58  ;;  %v2883_v17 = vshrl.u32 %v4975_v26, %v5914_v59 }
 0x760   : > { %v2609_v12 = vshrl.u32 %v2604_v52, 16  ;;  %v2631_v20 = vshrl.u32 %v2626_v37, 16  ;;  %vm2891_vm13 = vcmp.lt.s32.totalorder %v5942_v50, 1  ;;  %vm2893_vm15 = vcmp.lt.s32.totalorder %v5942_v50, 3  ;;  %v6028_v37 = vpop.permute.xlu1 %2410 }
 0x761   : > { %v2618_v15 = vadd.s32 %v2617_v0, %v2607_v4  ;;  %v2640_v14 = vadd.s32 %v2639_v36, %v2629_v11  ;;  %v6012_v8 = vor.u32 %v2883_v17, %v2882_v5  ;;  %v2899_v28 = vsel %vm2891_vm13, %v5998_v41, %v6001_v45 }
 0x762   : > { %v2588_v58 = vsel %vm2582_vm1, %v2585_v7, %v2587_v56  ;;  %v6023_v54 = vadd.s32 %v2634_v34, %v2630_v43  ;;  %v2905_v11 = vsel %vm2893_vm15, %v5946_v63, %v2904_v48  ;;  %vm2892_vm3 = vcmp.lt.s32.totalorder %v5942_v50, 2 }
 0x763   : > { %v6021_v52 = vadd.s32 %v2618_v15, %v2609_v12  ;;  %v2641_v55 = vadd.s32 %v2640_v14, %v2631_v20  ;;  %v2901_v53 = vsel %vm2893_vm15, %v6012_v8, %v5971_v47  ;;  %v2903_v34 = vsel %vm2891_vm13, %v6001_v45, %v6012_v8 }
 0x764   : > { %v2902_v40 = vsel %vm2892_vm3, %v2899_v28, %v2901_v53  ;;  %v3196_v63 = vmul.f32 %v5954_v33, %v3195_v57  ;;  %v2906_v7 = vsel %vm2892_vm3, %v2903_v34, %v2905_v11  ;;  %v2642_v56 = vmul.u32 %v5920_v30, %v2588_v58  ;;  %v6051_v12 = vpop.permute.xlu0 %2428 }
 0x765   : > { %vm2644_vm1 = vc.u32 %v6021_v52, %v6023_v54  ;;  %v2645_v48 = vadd.s32 1, %v2641_v55  ;;  %v2908_v47 = vand.u32 65535, %v5975_v35  ;;  %v2910_v3 = vand.u32 65535, %v2906_v7 }
 0x766   : > { %v2911_v21 = vshrl.u32 %v2906_v7, 16  ;;  %v2909_v43 = vshrl.u32 %v5975_v35, 16  ;;  %v2932_v27 = vand.u32 65535, %v2902_v40  ;;  %v2933_v44 = vshrl.u32 %v2902_v40, 16 }
 0x767   : > { %v2646_v46 = vsel %vm2644_vm1, %v2645_v48, %v2641_v55  ;;  %v3197_v13 = vadd.f32 %v5954_v33, %v3196_v63  ;;  %vm3198_vm0 = vweird.f32 %v5954_v33  ;;  %v2912_v17 = vmul.u32 %v2910_v3, %v2908_v47 }
 0x768   : > { %v2647_v4 = vadd.s32 %v2646_v46, %v2642_v56  ;;  %v2913_v0 = vmul.u32 %v2911_v21, %v2908_v47  ;;  %v2914_v57 = vmul.u32 %v2910_v3, %v2909_v43  ;;  %v2935_v36 = vmul.u32 %v2933_v44, %v2908_v47  ;;  %v6055_v53 = vpop.permute.xlu1 %2463 }
 0x769   : > { %v2915_v15 = vmul.u32 %v2911_v21, %v2909_v43  ;;  %v2934_v20 = vmul.u32 %v2932_v27, %v2908_v47  ;;  %v2936_v14 = vmul.u32 %v2932_v27, %v2909_v43  ;;  %v6058_v34 = vsel %vm3198_vm0, %v5954_v33, %v3197_v13 }
 0x76a   : > { %v2648_v5 = vadd.s32 536870912, %v2647_v4  ;;  %v2916_v30 = vshll.u32 %v2913_v0, 16  ;;  %v2938_v28 = vshll.u32 %v2935_v36, 16  ;;  %v2918_v11 = vshll.u32 %v2914_v57, 16 }
 0x76b   : > { %v2937_v7 = vmul.u32 %v2933_v44, %v2909_v43  ;;  %v2940_v3 = vshll.u32 %v2936_v14, 16  ;;  %v2917_v13 = vshrl.u32 %v2913_v0, 16  ;;  %v2896_v43 = vsel %vm2894_vm12, %v6012_v8, 2102212464 }
 0x76c   : > { %v6053_v58 = vshrl.u32 %v2648_v5, 30  ;;  %vm2920_vm1 = vc.u32 %v2912_v17, %v2916_v30  ;;  %v2922_v55 = vadd.s32 %v2916_v30, %v2912_v17  ;;  %vm2942_vm8 = vc.u32 %v2934_v20, %v2938_v28 }
 0x76d   : > { %v2921_v40 = vsel %vm2920_vm1, 1, %v4970_v19  ;;  %v2943_v21 = vsel %vm2942_vm8, 1, %v4970_v19  ;;  %v2944_v46 = vadd.s32 %v2938_v28, %v2934_v20  ;;  %v2875_v0 = vshrl.u32 %v4972_v16, %v5914_v59 }
 0x76e   : > { %v2650_v63 = vshll.u32 %v6053_v58, 30  ;;  %v2923_v48 = vadd.s32 %v2921_v40, %v2915_v15  ;;  %vm2924_vm14 = vc.u32 %v2922_v55, %v2918_v11  ;;  %v2945_v17 = vadd.s32 %v2943_v21, %v2937_v7  ;;  %v2470_v55 = vpop.permute.xlu0 %2469 }
 0x76f   : > { %v2925_v47 = vsel %vm2924_vm14, 1, %v4970_v19  ;;  %vm2946_vm0 = vc.u32 %v2944_v46, %v2940_v3  ;;  %v2919_v40 = vshrl.u32 %v2914_v57, 16  ;;  %v2895_v8 = vsel %vm2891_vm13, %v2875_v0, %v5998_v41 }
 0x770   : > { %v2651_v5 = vsub.s32 %v2647_v4, %v2650_v63  ;;  %v2927_v33 = vadd.s32 %v2925_v47, %v2923_v48  ;;  %v2947_v11 = vsel %vm2946_vm0, 1, %v4970_v19  ;;  %v2939_v63 = vshrl.u32 %v2935_v36, 16 }
 0x771   : > { %v2949_v28 = vadd.s32 %v2947_v11, %v2945_v17  ;;  %v2897_v7 = vsel %vm2893_vm15, %v6001_v45, %v2896_v43  ;;  %v6085_v57 = vadd.s32 %v2944_v46, %v2940_v3  ;;  %vm2551_vm12 = vcmp.lt.s32.totalorder %v5901_v23, 0 }
 0x772   : > { %vm2652_vm1 = vcmp.lt.s32.totalorder %v2651_v5, 0  ;;  %v2653_v15 = vsub.s32 0, %v2651_v5  ;;  %v2928_v44 = vadd.s32 %v2927_v33, %v2917_v13  ;;  %v2643_v13 = vadd.s32 %v6023_v54, %v6021_v52 }
 0x773   : > { %v2950_v33 = vadd.s32 %v2949_v28, %v2939_v63  ;;  %v2898_v17 = vsel %vm2892_vm3, %v2895_v8, %v2897_v7  ;;  %v2673_v63 = vsub.s32 4, %v6053_v58  ;;  %vm2861_vm3 = vcmp.lt.s32.totalorder %v5903_v1, 0 }
 0x774   : > { %v3177_v56 = vpop.xlane.xlu2 %3176  ;;  %v2654_v4 = vsel %vm2652_vm1, %v2653_v15, %v2651_v5  ;;  %v6083_v59 = vadd.s32 %v2928_v44, %v2919_v40  ;;  %v2952_v54 = vmul.u32 %v5975_v35, %v2898_v17  ;;  %vm7248_vm1 = vcmask 89088  }
 0x775   : > { %v3200_v27 = vmul.f32 %v6058_v34, %v3177_v56  ;;  %v2488_v56 = vpop.permute.xlu1 %2487 }
 0x776   : > { %vm2954_vm14 = vc.u32 %v6083_v59, %v6085_v57 }
 0x777   : > { %v6066_v30 = vsub.f32 %v5785_v2, %v3200_v27  ;;  %v2655_v2 = vclz %v2654_v4  ;;  %v2941_v27 = vshrl.u32 %v2936_v14, 16  ;;  %v2404_v14 = vsel %vm2402_vm4, %v5992_v10, %v5982_v24 }
 0x778   : > { %v2422_v24 = vsel %vm2420_vm7, %v6028_v37, %v6010_v25 }
 0x779   : > { %v3212_v20 = vmul.f32 %v6066_v30, %v6066_v30  ;;  %v4734_v21 = vadd.s32 4294967294, %v2655_v2  ;;  %v2951_v36 = vadd.s32 %v2950_v33, %v2941_v27  ;;  %v2407_v2 = vmul.f32 %v5864_v6, %v2404_v14 }
 0x77b   : > { %v3218_v48 = vsel %vm2365_vm2, %v3212_v20, 0.0  ;;  %vm4735_vm8 = vcmp.lt.s32.totalorder %v4734_v21, 0  ;;  %v2955_v3 = vadd.s32 1, %v2951_v36  ;;  %v2452_v20 = vpop.permute.xlu0 %2451  ;;  %v2518_v33 = vmul.f32 -2.0, %v2407_v2 }
 0x77c   : > { %3219 = vadd.xlane.f32.xlu2 %v3218_v48  ;;  %v2381_v47 = vpop.permute.xlu2 %2380  ;;  %v2658_v41 = vsel %vm4735_vm8, 0, %v4734_v21 }
 0x77d   : > { %v2386_v45 = vsel %vm2384_vm6, %v5934_v39, %v2381_v47  ;;  %v2659_v15 = vsub.s32 32, %v2658_v41  ;;  %v2663_v43 = vsub.s32 4294967266, %v2658_v41  ;;  %v2660_v46 = vshll.u32 %v2651_v5, %v2658_v41  ;;  %v2446_v5 = vpop.permute.xlu1 %2445 }
 0x77e   : > { %v2389_v50 = vmul.f32 %v5866_v9, %v2386_v45  ;;  %v2956_v11 = vsel %vm2954_vm14, %v2955_v3, %v2951_v36  ;;  %v2457_v48 = vsel %vm7154_vm11, %v2446_v5, %v2452_v20  ;;  %v2425_v47 = vmul.f32 %v5872_v18, %v2422_v24 }
 0x77f   : > { %v2661_v44 = vshrl.u32 %v2643_v13, %v2659_v15  ;;  %v2664_v52 = vadd.s32 127, %v2663_v43  ;;  %v2957_v28 = vadd.s32 %v2956_v11, %v2952_v54  ;;  %v2460_v37 = vmul.f32 %v5886_v42, %v2457_v48 }
 0x780   : > { %v2516_v8 = vmul.f32 -1.0, %v2389_v50  ;;  %v2674_v13 = vsel %vm2551_vm12, %v2673_v63, %v6053_v58  ;;  %v2475_v41 = vsel %vm2473_vm10, %v6055_v53, %v2470_v55  ;;  %v2524_v43 = vmul.f32 -1.0, %v2425_v47 }
 0x781   : > { %v2662_v4 = vor.u32 %v2661_v44, %v2660_v46  ;;  %v2665_v0 = vshll.u32 %v2664_v52, 23  ;;  %v2958_v7 = vadd.s32 536870912, %v2957_v28  ;;  %v7244_v3 = vand.u32 2147483647, %v5901_v23 }
 0x782   : > { %v2520_v17 = vadd.f32 %v2518_v33, %v2516_v8  ;;  %v2522_v45 = vadd.f32 %v2516_v8, %v2425_v47  ;;  %v2478_v58 = vmul.f32 %v5882_v31, %v2475_v41  ;;  %v2532_v11 = vmul.f32 2.0, %v2460_v37 }
 0x783   : > { %v2666_v40 = vor.u32 4788187, %v2665_v0  ;;  %v2669_v27 = vcvt.s32.f32 %v2662_v4  ;;  %v2959_v25 = vshrl.u32 %v2958_v7, 30  ;;  %vm2550_vm13 = vcmp.le.f32.partialorder %v7244_v3, 0.7853982 }
 0x784   : > { %v2435_v39 = vpop.permute.xlu2 %2434  ;;  %v2676_v54 = vsel %vm2550_vm13, 0, %v2674_v13  ;;  %v2526_v20 = vadd.f32 %v2524_v43, %v2520_v17  ;;  %v2536_v63 = vmul.f32 -1.0, %v2478_v58  ;;  %vm3002_vm11 = vweird.f32 %v5903_v1 }
 0x785   : > { %v2439_v10 = vsel %vm1299_vm5, %v6051_v12, %v2435_v39  ;;  %v2667_v21 = vand.u32 2147483647, %v2666_v40  ;;  %v2960_v15 = vshll.u32 %v2959_v25, 30  ;;  %v2506_v40 = vpop.permute.xlu1 %2505  ;;  %v2983_v8 = vsub.s32 4, %v2959_v25 }
 0x786   : > { %v2442_v35 = vmul.f32 %v5870_v61, %v2439_v10  ;;  %v2540_v48 = vadd.f32 %v2526_v20, %v2478_v58 }
 0x787   : > { %v2670_v12 = vmul.f32 %v2669_v27, %v2667_v21  ;;  %v6120_v50 = vsub.s32 %v2957_v28, %v2960_v15 }
 0x788   : > { %v2528_v36 = vmul.f32 -2.0, %v2442_v35 }
 0x789   : > { %v2671_v46 = vxor.u32 2147483648, %v2670_v12  ;;  %vm2962_vm15 = vcmp.lt.s32.totalorder %v6120_v50, 0  ;;  %v2963_v4 = vsub.s32 0, %v6120_v50 }
 0x78a   : > { %v2530_v44 = vadd.f32 %v2528_v36, %v2522_v45  ;;  %v7245_v36 = vand.u32 2147483647, %v5903_v1 }
 0x78b   : > { %v2672_v55 = vsel %vm2551_vm12, %v2671_v46, %v2670_v12  ;;  %v2964_v24 = vsel %vm2962_vm15, %v2963_v4, %v6120_v50  ;;  %v2953_v46 = vadd.s32 %v6085_v57, %v6083_v59 }
 0x78c   : > { %v2482_v14 = vpop.permute.xlu2 %2481  ;;  %v2675_v39 = vsel %vm2550_vm13, %v5901_v23, %v2672_v55  ;;  %v2534_v2 = vadd.f32 %v2532_v11, %v2530_v44  ;;  %v2965_v35 = vclz %v2964_v24  ;;  %vm6133_vm0 = vcmp.le.f32.partialorder %v7245_v36, 0.7853982 }
 0x78d   : > { %v2493_v52 = vsel %vm2491_vm9, %v2482_v14, %v2488_v56  ;;  %v2677_v0 = vmul.f32 %v2675_v39, %v2675_v39  ;;  %v2693_v56 = vadd.s32 3, %v2676_v54 }
 0x78e   : > { %v2496_v53 = vmul.f32 %v5884_v38, %v2493_v52  ;;  %v4740_v12 = vadd.s32 4294967294, %v2965_v35  ;;  %v2538_v41 = vadd.f32 %v2536_v63, %v2534_v2  ;;  %v2984_v52 = vsel %vm2861_vm3, %v2983_v8, %v2959_v25 }
 0x78f   : > { %v2678_v10 = vmul.f32 -0.001358992, %v2677_v0  ;;  %v2685_v5 = vmul.f32 -0.00019511016, %v2677_v0  ;;  %v2694_v33 = vand.u32 3, %v2693_v56 }
 0x790   : > { %v2542_v28 = vmul.f32 2.0, %v2496_v53  ;;  %vm4741_vm8 = vcmp.lt.s32.totalorder %v4740_v12, 0 }
 0x791   : > { %v2679_v21 = vadd.f32 0.041655596, %v2678_v10  ;;  %v2686_v27 = vadd.f32 0.008332121, %v2685_v5  ;;  %v2968_v44 = vsel %vm4741_vm8, 0, %v4740_v12  ;;  %vm2695_vm14 = vcmp.lt.s32.totalorder %v2694_v33, 2 }
 0x792   : > { %v2544_v13 = vadd.f32 %v2542_v28, %v2540_v48  ;;  %v2969_v55 = vsub.s32 32, %v2968_v44  ;;  %v2973_v20 = vsub.s32 4294967266, %v2968_v44  ;;  %v2986_v48 = vsel %vm6133_vm0, 0, %v2984_v52 }
 0x793   : > { %v2680_v43 = vmul.f32 %v2679_v21, %v2677_v0  ;;  %v2687_v14 = vmul.f32 %v2686_v27, %v2677_v0  ;;  %vm2696_vm12 = vcmp.eq.s32.totalorder %v2694_v33, 0  ;;  %vm2699_vm13 = vcmp.eq.s32.totalorder %v2694_v33, 2 }
 0x794   : > { %v2500_v7 = vpop.permute.xlu2 %2499  ;;  %v3180_v47 = vpop.xlane.xlu0 %3179  ;;  %v2971_v2 = vshrl.u32 %v2953_v46, %v2969_v55  ;;  %v2974_v28 = vadd.s32 127, %v2973_v20  ;;  %vm2692_vm8 = vweird.f32 %v5901_v23 }
 0x795   : > { %v2511_v17 = vsel %vm7248_vm1, %v2500_v7, %v2506_v40  ;;  %v3201_v45 = vmul.f32 %v6058_v34, %v3180_v47  ;;  %v2681_v11 = vadd.f32 -0.4999988, %v2680_v43  ;;  %v2688_v53 = vadd.f32 -0.16666654, %v2687_v14 }
 0x796   : > { %v2514_v15 = vmul.f32 %v5897_v49, %v2511_v17 }
 0x797   : > { %v6141_v3 = vsub.f32 %v5798_v51, %v3201_v45  ;;  %v2970_v51 = vshll.u32 %v6120_v50, %v2968_v44  ;;  %v2682_v57 = vmul.f32 %v2681_v11, %v2677_v0  ;;  %v2689_v56 = vmul.f32 %v2688_v53, %v2677_v0 }
 0x798   : > { %v6147_v54 = vadd.f32 %v2538_v41, %v2514_v15  ;;  %v6149_v58 = vadd.f32 %v2544_v13, %v2514_v15  ;;  %v2975_v50 = vshll.u32 %v2974_v28, 23  ;;  %v3003_v45 = vadd.s32 3, %v2986_v48 }
 0x799   : > { %v3213_v49 = vmul.f32 %v6141_v3, %v6141_v3  ;;  %v2683_v35 = vadd.f32 1.0, %v2682_v57  ;;  %v2690_v40 = vadd.f32 1.0, %v2689_v56  ;;  %v2972_v63 = vor.u32 %v2971_v2, %v2970_v51 }
 0x79a   : > { %v2707_v4 = vand.u32 2139095040, %v6147_v54  ;;  %v3017_v59 = vand.u32 2139095040, %v6149_v58  ;;  %v3014_v24 = vand.u32 2147483647, %v6149_v58  ;;  %v2976_v21 = vor.u32 4788187, %v2975_v50 }
 0x79b   : > { %v3221_v25 = vsel %vm2365_vm2, %v3213_v49, 0.0  ;;  %v2691_v47 = vmul.f32 %v2690_v40, %v2675_v39  ;;  %v2700_v0 = vxor.u32 2147483648, %v2683_v35  ;;  %v2979_v17 = vcvt.s32.f32 %v2972_v63 }
 0x79c   : > { %v2708_v10 = vshrl.u32 %v2707_v4, 23  ;;  %v3018_v5 = vshrl.u32 %v3017_v59, 23  ;;  %3222 = vadd.xlane.f32.xlu0 %v3221_v25  ;;  %v3021_v13 = vand.u32 8388607, %v3014_v24  ;;  %v2977_v41 = vand.u32 2147483647, %v2976_v21 }
 0x79d   : > { %v2697_v12 = vxor.u32 2147483648, %v2691_v47  ;;  %v2701_v43 = vsel %vm2699_vm13, %v2700_v0, %v2691_v47  ;;  %v6174_v20 = vand.u32 3, %v3003_v45  ;;  %v2704_v23 = vand.u32 2147483647, %v6147_v54 }
 0x79e   : > { %v4736_v8 = vadd.s32 4294967169, %v2708_v10  ;;  %v4742_v7 = vadd.s32 4294967169, %v3018_v5  ;;  %v2980_v44 = vmul.f32 %v2979_v17, %v2977_v41  ;;  %v3022_v53 = vor.u32 8388608, %v3021_v13 }
 0x79f   : > { %v2698_v15 = vsel %vm2696_vm12, %v2683_v35, %v2697_v12  ;;  %v7249_v5 = vmov 2475754826   ;;  %v7250_v63 = vmov 920167782   ;;  %v7251_v47 = vmov 1326507024  }
 0x7a0   : > { %v2714_v27 = vadd.s32 1, %v4736_v8  ;;  %v3024_v36 = vadd.s32 1, %v4742_v7  ;;  %v2702_v46 = vsel %vm2695_vm14, %v2698_v15, %v2701_v43  ;;  %v2981_v55 = vxor.u32 2147483648, %v2980_v44 }
 0x7a1   : > { %v6166_v49 = vsel %vm2692_vm8, nan, %v2702_v46  ;;  %v6190_v2 = vshll.u32 %v3022_v53, 8  ;;  %vm3009_vm13 = vcmp.eq.s32.totalorder %v6174_v20, 2  ;;  %vm3005_vm8 = vcmp.lt.s32.totalorder %v6174_v20, 2 }
 0x7a2   : > { %vm2715_vm15 = vcmp.gt.s32.totalorder %v2714_v27, 0  ;;  %vm3025_vm1 = vcmp.gt.s32.totalorder %v3024_v36, 0  ;;  %3171 = vst.msk [vmem:[%s5783_s16 + $0x10] sm:$0xff] %vm2365_vm2, %v6166_v49  ;;  %v3181_v4 = vsel %vm2365_vm2, %v6166_v49, 0.0  ;;  %v2982_v59 = vsel %vm2861_vm3, %v2981_v55, %v2980_v44 }
 0x7a3   : > { %v2716_v39 = vsel %vm2715_vm15, %v2714_v27, 0  ;;  %v3026_v14 = vsel %vm3025_vm1, %v3024_v36, 0  ;;  %3182 = vadd.xlane.f32.xlu1 %v3181_v4  ;;  %v6188_v25 = vsel %vm6133_vm0, %v5903_v1, %v2982_v59  ;;  %vm3006_vm15 = vcmp.eq.s32.totalorder %v6174_v20, 0 }
 0x7a4   : > { %v6163_v52 = vand.u32 31, %v2716_v39  ;;  %v3028_v11 = vand.u32 31, %v3026_v14  ;;  %v6181_v57 = vshrl.u32 %v2716_v39, 5  ;;  %v6183_v56 = vshrl.u32 %v3026_v14, 5 }
 0x7a5   : > { %v2987_v10 = vmul.f32 %v6188_v25, %v6188_v25 }
 0x7a6   : > { %v6169_v51 = vsub.s32 32, %v6163_v52  ;;  %v3029_v33 = vsub.s32 32, %v3028_v11  ;;  %v2730_v28 = vshll.u32 %v4975_v26, %v6163_v52  ;;  %v3031_v48 = vshll.u32 %v4972_v16, %v3028_v11 }
 0x7a7   : > { %v3034_v37 = vshll.u32 %v7249_v5, %v3028_v11  ;;  %v2733_v7 = vshll.u32 %v7250_v63, %v6163_v52  ;;  %v2988_v21 = vmul.f32 -0.001358992, %v2987_v10  ;;  %v2995_v27 = vmul.f32 -0.00019511016, %v2987_v10 }
 0x7a8   : > { %v3032_v35 = vshrl.u32 %v7249_v5, %v3029_v33  ;;  %v3035_v40 = vshrl.u32 %v4974_v22, %v3029_v33  ;;  %v2731_v50 = vshrl.u32 %v7250_v63, %v6169_v51  ;;  %v3038_v8 = vshrl.u32 %v4975_v26, %v3029_v33 }
 0x7a9   : > { %v2734_v0 = vshrl.u32 %v7251_v47, %v6169_v51  ;;  %v3030_v36 = vshrl.u32 %v4972_v16, %v3029_v33  ;;  %v3037_v41 = vshll.u32 %v4974_v22, %v3028_v11  ;;  %vm2739_vm3 = vcmp.lt.s32.totalorder %v6181_v57, 4 }
 0x7aa   : > { %v3033_v12 = vor.u32 %v3032_v35, %v3031_v48  ;;  %v3036_v13 = vor.u32 %v3035_v40, %v3034_v37  ;;  %v2989_v17 = vadd.f32 0.041655596, %v2988_v21  ;;  %v2996_v45 = vadd.f32 0.008332121, %v2995_v27 }
 0x7ab   : > { %v3040_v15 = vshll.u32 %v4975_v26, %v3028_v11  ;;  %v3041_v43 = vshrl.u32 %v7250_v63, %v3029_v33  ;;  %v6212_v39 = vor.u32 %v2731_v50, %v2730_v28  ;;  %v3039_v14 = vor.u32 %v3038_v8, %v3037_v41 }
 0x7ac   : > { %v3043_v46 = vshll.u32 %v7250_v63, %v3028_v11  ;;  %v3044_v44 = vshrl.u32 %v7251_v47, %v3029_v33  ;;  %v2990_v53 = vmul.f32 %v2989_v17, %v2987_v10  ;;  %v2997_v55 = vmul.f32 %v2996_v45, %v2987_v10 }
 0x7ad   : > { %v3042_v4 = vor.u32 %v3041_v43, %v3040_v15  ;;  %vm3046_vm0 = vcmp.lt.s32.totalorder %v6183_v56, 1  ;;  %vm3048_vm14 = vcmp.lt.s32.totalorder %v6183_v56, 3  ;;  %vm3049_vm12 = vcmp.lt.s32.totalorder %v6183_v56, 4 }
 0x7ae   : > { %v3045_v59 = vor.u32 %v3044_v44, %v3043_v46  ;;  %v3054_v35 = vsel %vm3046_vm0, %v3033_v12, %v3036_v13  ;;  %v2735_v28 = vor.u32 %v2734_v0, %v2733_v7  ;;  %v2991_v40 = vadd.f32 -0.4999988, %v2990_v53 }
 0x7af   : > { %v2998_v50 = vadd.f32 -0.16666654, %v2997_v55  ;;  %v3055_v11 = vsel %vm3049_vm12, %v3042_v4, 920167782  ;;  %vm3047_vm1 = vcmp.lt.s32.totalorder %v6183_v56, 2  ;;  %v3058_v63 = vsel %vm3046_vm0, %v3036_v13, %v3039_v14 }
 0x7b0   : > { %v3056_v33 = vsel %vm3048_vm14, %v3039_v14, %v3055_v11  ;;  %v3059_v48 = vsel %vm3049_vm12, %v3045_v59, 1326507024  ;;  %v2992_v37 = vmul.f32 %v2991_v40, %v2987_v10  ;;  %v3051_v0 = vsel %vm3049_vm12, %v3039_v14, 2102212464 }
 0x7b1   : > { %v2999_v8 = vmul.f32 %v2998_v50, %v2987_v10  ;;  %v3057_v7 = vsel %vm3047_vm1, %v3054_v35, %v3056_v33  ;;  %v3060_v47 = vsel %vm3048_vm14, %v3042_v4, %v3059_v48  ;;  %v3063_v27 = vand.u32 65535, %v6190_v2 }
 0x7b2   : > { %v3061_v21 = vsel %vm3047_vm1, %v3058_v63, %v3060_v47  ;;  %v3087_v41 = vand.u32 65535, %v3057_v7  ;;  %v2993_v10 = vadd.f32 1.0, %v2992_v37  ;;  %v6246_v43 = vsel %vm2739_vm3, %v6212_v39, 920167782 }
 0x7b3   : > { %v3000_v17 = vadd.f32 1.0, %v2999_v8  ;;  %v3065_v45 = vand.u32 65535, %v3061_v21  ;;  %v3066_v15 = vshrl.u32 %v3061_v21, 16  ;;  %v6250_v46 = vsel %vm2739_vm3, %v2735_v28, 1326507024 }
 0x7b4   : > { %v3064_v14 = vshrl.u32 %v6190_v2, 16  ;;  %v3088_v44 = vshrl.u32 %v3057_v7, 16  ;;  %v3010_v55 = vxor.u32 2147483648, %v2993_v10  ;;  %v3050_v4 = vsel %vm3046_vm0, %v3030_v36, %v3033_v12 }
 0x7b5   : > { %v3001_v53 = vmul.f32 %v3000_v17, %v6188_v25  ;;  %v3068_v59 = vmul.u32 %v3066_v15, %v3063_v27  ;;  %v3052_v35 = vsel %vm3048_vm14, %v3036_v13, %v3051_v0  ;;  %v3067_v63 = vmul.u32 %v3065_v45, %v3063_v27 }
 0x7b6   : > { %v3069_v40 = vmul.u32 %v3065_v45, %v3064_v14  ;;  %v3090_v50 = vmul.u32 %v3088_v44, %v3063_v27  ;;  %v3091_v11 = vmul.u32 %v3087_v41, %v3064_v14  ;;  %v3089_v48 = vmul.u32 %v3087_v41, %v3063_v27 }
 0x7b7   : > { %v3007_v33 = vxor.u32 2147483648, %v3001_v53  ;;  %v3071_v28 = vshll.u32 %v3068_v59, 16  ;;  %v3011_v37 = vsel %vm3009_vm13, %v3010_v55, %v3001_v53  ;;  %v3070_v8 = vmul.u32 %v3066_v15, %v3064_v14 }
 0x7b8   : > { %v3092_v25 = vmul.u32 %v3088_v44, %v3064_v14  ;;  %v3093_v7 = vshll.u32 %v3090_v50, 16  ;;  %v3073_v12 = vshll.u32 %v3069_v40, 16  ;;  %v3095_v21 = vshll.u32 %v3091_v11, 16 }
 0x7b9   : > { %v3008_v36 = vsel %vm3006_vm15, %v2993_v10, %v3007_v33  ;;  %vm3075_vm0 = vc.u32 %v3067_v63, %v3071_v28  ;;  %v3077_v13 = vadd.s32 %v3071_v28, %v3067_v63  ;;  %v3072_v14 = vshrl.u32 %v3068_v59, 16 }
 0x7ba   : > { %v3012_v47 = vsel %vm3005_vm8, %v3008_v36, %v3011_v37  ;;  %v3076_v0 = vsel %vm3075_vm0, 1, %v4970_v19  ;;  %vm3097_vm14 = vc.u32 %v3089_v48, %v3093_v7  ;;  %v3099_v45 = vadd.s32 %v3093_v7, %v3089_v48 }
 0x7bb   : > { %v6267_v27 = vsel %vm3002_vm11, nan, %v3012_v47  ;;  %v3078_v41 = vadd.s32 %v3076_v0, %v3070_v8  ;;  %vm3079_vm12 = vc.u32 %v3077_v13, %v3073_v12  ;;  %v3098_v17 = vsel %vm3097_vm14, 1, %v4970_v19 }
 0x7bc   : > { %v3187_v10 = vsel %vm2365_vm2, %v6267_v27, 0.0  ;;  %3173 = vst.msk [vmem:[%s5783_s16 + $0x20] sm:$0xff] %vm2365_vm2, %v6267_v27  ;;  %v3080_v20 = vsel %vm3079_vm12, 1, %v4970_v19  ;;  %v3100_v15 = vadd.s32 %v3098_v17, %v3092_v25  ;;  %v3074_v44 = vshrl.u32 %v3069_v40, 16 }
 0x7bd   : > { %3188 = vadd.xlane.f32.xlu0 %v3187_v10  ;;  %v3082_v1 = vadd.s32 %v3080_v20, %v3078_v41  ;;  %v2711_v53 = vand.u32 8388607, %v2704_v23  ;;  %v3094_v55 = vshrl.u32 %v3090_v50, 16  ;;  %vm3101_vm11 = vc.u32 %v3099_v45, %v3095_v21 }
 0x7be   : > { %v2721_v33 = vshll.u32 %v4972_v16, %v6163_v52  ;;  %v2722_v63 = vshrl.u32 %v7249_v5, %v6169_v51  ;;  %v3102_v37 = vsel %vm3101_vm11, 1, %v4970_v19  ;;  %v2724_v48 = vshll.u32 %v7249_v5, %v6163_v52 }
 0x7bf   : > { %v3083_v28 = vadd.s32 %v3082_v1, %v3072_v14  ;;  %v2725_v59 = vshrl.u32 %v4974_v22, %v6169_v51  ;;  %v3104_v40 = vadd.s32 %v3102_v37, %v3100_v15  ;;  %v2727_v50 = vshll.u32 %v4974_v22, %v6163_v52 }
 0x7c0   : > { %v6287_v8 = vor.u32 %v2722_v63, %v2721_v33  ;;  %v2728_v25 = vshrl.u32 %v4975_v26, %v6169_v51  ;;  %v3096_v36 = vshrl.u32 %v3091_v11, 16  ;;  %v2712_v12 = vor.u32 8388608, %v2711_v53 }
 0x7c1   : > { %v6293_v7 = vadd.s32 %v3083_v28, %v3074_v44  ;;  %v6295_v13 = vor.u32 %v2725_v59, %v2724_v48  ;;  %v3105_v47 = vadd.s32 %v3104_v40, %v3094_v55  ;;  %vm2736_vm13 = vcmp.lt.s32.totalorder %v6181_v57, 1 }
 0x7c2   : > { %v2729_v5 = vor.u32 %v2728_v25, %v2727_v50  ;;  %vm2738_vm15 = vcmp.lt.s32.totalorder %v6181_v57, 3  ;;  %v3053_v0 = vsel %vm3047_vm1, %v3050_v4, %v3052_v35  ;;  %v6301_v41 = vadd.s32 %v3099_v45, %v3095_v21 }
 0x7c3   : > { %v2744_v22 = vsel %vm2736_vm13, %v6287_v8, %v6295_v13  ;;  %v2750_v26 = vsel %vm2738_vm15, %v6212_v39, %v6250_v46  ;;  %v3106_v52 = vadd.s32 %v3105_v47, %v3096_v36  ;;  %vm2737_vm8 = vcmp.lt.s32.totalorder %v6181_v57, 2 }
 0x7c4   : > { %v2746_v56 = vsel %vm2738_vm15, %v2729_v5, %v6246_v43  ;;  %v2748_v4 = vsel %vm2736_vm13, %v6295_v13, %v2729_v5  ;;  %vm3109_vm1 = vc.u32 %v6293_v7, %v6301_v41  ;;  %v6324_v46 = vshll.u32 %v2712_v12, 8 }
 0x7c5   : > { %v2747_v35 = vsel %vm2737_vm8, %v2744_v22, %v2746_v56  ;;  %v2751_v39 = vsel %vm2737_vm8, %v2748_v4, %v2750_v26  ;;  %v3107_v11 = vmul.u32 %v6190_v2, %v3053_v0  ;;  %v3110_v21 = vadd.s32 1, %v3106_v52 }
 0x7c6   : > { %v2755_v17 = vand.u32 65535, %v2751_v39  ;;  %v2756_v43 = vshrl.u32 %v2751_v39, 16  ;;  %v2753_v10 = vand.u32 65535, %v6324_v46  ;;  %v2754_v20 = vshrl.u32 %v6324_v46, 16 }
 0x7c7   : > { %v2777_v45 = vand.u32 65535, %v2747_v35  ;;  %v2778_v15 = vshrl.u32 %v2747_v35, 16  ;;  %v3111_v14 = vsel %vm3109_vm1, %v3110_v21, %v3106_v52  ;;  %v2720_v21 = vshrl.u32 %v4972_v16, %v6169_v51 }
 0x7c8   : > { %v3112_v44 = vadd.s32 %v3111_v14, %v3107_v11  ;;  %v2758_v1 = vmul.u32 %v2756_v43, %v2753_v10  ;;  %v2759_v53 = vmul.u32 %v2755_v17, %v2754_v20  ;;  %v2757_v28 = vmul.u32 %v2755_v17, %v2753_v10 }
 0x7c9   : > { %v2780_v55 = vmul.u32 %v2778_v15, %v2753_v10  ;;  %v2781_v33 = vmul.u32 %v2777_v45, %v2754_v20  ;;  %v2760_v48 = vmul.u32 %v2756_v43, %v2754_v20  ;;  %v2779_v2 = vmul.u32 %v2777_v45, %v2753_v10 }
 0x7ca   : > { %v3113_v63 = vadd.s32 536870912, %v3112_v44  ;;  %v2761_v37 = vshll.u32 %v2758_v1, 16  ;;  %v2763_v50 = vshll.u32 %v2759_v53, 16  ;;  %v2782_v26 = vmul.u32 %v2778_v15, %v2754_v20 }
 0x7cb   : > { %v2783_v59 = vshll.u32 %v2780_v55, 16  ;;  %v2785_v12 = vshll.u32 %v2781_v33, 16  ;;  %v2762_v35 = vshrl.u32 %v2758_v1, 16  ;;  %v2741_v17 = vsel %vm2739_vm3, %v2729_v5, 2102212464 }
 0x7cc   : > { %v6329_v40 = vshrl.u32 %v3113_v63, 30  ;;  %vm2765_vm0 = vc.u32 %v2757_v28, %v2761_v37  ;;  %v2767_v25 = vadd.s32 %v2761_v37, %v2757_v28  ;;  %v2764_v20 = vshrl.u32 %v2759_v53, 16 }
 0x7cd   : > { %v2766_v36 = vsel %vm2765_vm0, 1, %v4970_v19  ;;  %vm2787_vm14 = vc.u32 %v2779_v2, %v2783_v59  ;;  %v2789_v47 = vadd.s32 %v2783_v59, %v2779_v2  ;;  %v2784_v15 = vshrl.u32 %v2780_v55, 16 }
 0x7ce   : > { %v3115_v0 = vshll.u32 %v6329_v40, 30  ;;  %v2768_v22 = vadd.s32 %v2766_v36, %v2760_v48  ;;  %vm2769_vm12 = vc.u32 %v2767_v25, %v2763_v50  ;;  %v2788_v56 = vsel %vm2787_vm14, 1, %v4970_v19 }
 0x7cf   : > { %v2770_v52 = vsel %vm2769_vm12, 1, %v4970_v19  ;;  %vm2791_vm11 = vc.u32 %v2789_v47, %v2785_v12  ;;  %v2790_v11 = vadd.s32 %v2788_v56, %v2782_v26  ;;  %v2742_v16 = vsel %vm2738_vm15, %v6295_v13, %v2741_v17 }
 0x7d0   : > { %v3116_v4 = vsub.s32 %v3112_v44, %v3115_v0  ;;  %v2772_v39 = vadd.s32 %v2770_v52, %v2768_v22  ;;  %v2792_v43 = vsel %vm2791_vm11, 1, %v4970_v19  ;;  %v2740_v44 = vsel %vm2736_vm13, %v2720_v21, %v6287_v8 }
 0x7d1   : > { %v2794_v14 = vadd.s32 %v2792_v43, %v2790_v11  ;;  %v2786_v5 = vshrl.u32 %v2781_v33, 16  ;;  %v2793_v19 = vadd.s32 %v2789_v47, %v2785_v12  ;;  %v2743_v53 = vsel %vm2737_vm8, %v2740_v44, %v2742_v16 }
 0x7d2   : > { %vm3117_vm1 = vcmp.lt.s32.totalorder %v3116_v4, 0  ;;  %v3118_v10 = vsub.s32 0, %v3116_v4  ;;  %v2773_v45 = vadd.s32 %v2772_v39, %v2762_v35  ;;  %v2797_v8 = vmul.u32 %v6324_v46, %v2743_v53 }
 0x7d3   : > { %v2795_v28 = vadd.s32 %v2794_v14, %v2784_v15  ;;  %v3108_v59 = vadd.s32 %v6301_v41, %v6293_v7  ;;  %vm3016_vm15 = vcmp.lt.s32.totalorder %v6149_v58, 0  ;;  %vm6357_vm8 = vcmp.le.f32.partialorder %v3014_v24, 0.7853982 }
 0x7d4   : > { %v3119_v63 = vsel %vm3117_vm1, %v3118_v10, %v3116_v4  ;;  %v2774_v51 = vadd.s32 %v2773_v45, %v2764_v20  ;;  %v3138_v10 = vsub.s32 4, %v6329_v40  ;;  %vm3157_vm12 = vweird.f32 %v6149_v58 }
 0x7d5   : > { %v3120_v1 = vclz %v3119_v63  ;;  %v2796_v55 = vadd.s32 %v2795_v28, %v2786_v5  ;;  %vm2706_vm11 = vcmp.lt.s32.totalorder %v6147_v54, 0 }
 0x7d6   : > { %vm2799_vm3 = vc.u32 %v2774_v51, %v2793_v19  ;;  %v3139_v24 = vsel %vm3016_vm15, %v3138_v10, %v6329_v40  ;;  %v2798_v53 = vadd.s32 %v2793_v19, %v2774_v51 }
 0x7d7   : > { %v4743_v37 = vadd.s32 4294967294, %v3120_v1  ;;  %v2800_v48 = vadd.s32 1, %v2796_v55 }
 0x7d9   : > { %vm4744_vm0 = vcmp.lt.s32.totalorder %v4743_v37, 0  ;;  %v2801_v25 = vsel %vm2799_vm3, %v2800_v48, %v2796_v55 }
 0x7da   : > { %v3123_v2 = vsel %vm4744_vm0, 0, %v4743_v37  ;;  %v2802_v33 = vadd.s32 %v2801_v25, %v2797_v8 }
 0x7db   : > { %v3124_v13 = vsub.s32 32, %v3123_v2  ;;  %v3128_v50 = vsub.s32 4294967266, %v3123_v2  ;;  %v3125_v36 = vshll.u32 %v3116_v4, %v3123_v2  ;;  %v3141_v2 = vsel %vm6357_vm8, 0, %v3139_v24 }
 0x7dc   : > { %v2803_v0 = vadd.s32 536870912, %v2802_v33 }
 0x7dd   : > { %v3126_v12 = vshrl.u32 %v3108_v59, %v3124_v13  ;;  %v3129_v47 = vadd.s32 127, %v3128_v50 }
 0x7de   : > { %v6351_v26 = vshrl.u32 %v2803_v0, 30 }
 0x7df   : > { %v3127_v57 = vor.u32 %v3126_v12, %v3125_v36  ;;  %v3130_v22 = vshll.u32 %v3129_v47, 23  ;;  %v3158_v12 = vadd.s32 3, %v3141_v2 }
 0x7e0   : > { %v2805_v56 = vshll.u32 %v6351_v26, 30 }
 0x7e1   : > { %v3131_v52 = vor.u32 4788187, %v3130_v22  ;;  %v3134_v46 = vcvt.s32.f32 %v3127_v57 }
 0x7e2   : > { %v2806_v39 = vsub.s32 %v2802_v33, %v2805_v56 }
 0x7e3   : > { %v3132_v35 = vand.u32 2147483647, %v3131_v52 }
 0x7e4   : > { %vm2807_vm13 = vcmp.lt.s32.totalorder %v2806_v39, 0  ;;  %v2808_v7 = vsub.s32 0, %v2806_v39 }
 0x7e5   : > { %v3135_v11 = vmul.f32 %v3134_v46, %v3132_v35  ;;  %v3159_v35 = vand.u32 3, %v3158_v12 }
 0x7e6   : > { %v2809_v4 = vsel %vm2807_vm13, %v2808_v7, %v2806_v39  ;;  %vm6373_vm13 = vcmp.le.f32.partialorder %v2704_v23, 0.7853982 }
 0x7e7   : > { %v3136_v41 = vxor.u32 2147483648, %v3135_v11  ;;  %v2810_v43 = vclz %v2809_v4  ;;  %vm3161_vm1 = vcmp.eq.s32.totalorder %v3159_v35, 0  ;;  %vm3164_vm3 = vcmp.eq.s32.totalorder %v3159_v35, 2 }
 0x7e8   : > { %vm3160_vm0 = vcmp.lt.s32.totalorder %v3159_v35, 2 }
 0x7e9   : > { %v3137_v17 = vsel %vm3016_vm15, %v3136_v41, %v3135_v11  ;;  %v4737_v15 = vadd.s32 4294967294, %v2810_v43 }
 0x7ea   : > { %v3140_v20 = vsel %vm6357_vm8, %v6149_v58, %v3137_v17 }
 0x7eb   : > { %v3142_v45 = vmul.f32 %v3140_v20, %v3140_v20  ;;  %vm4738_vm14 = vcmp.lt.s32.totalorder %v4737_v15, 0 }
 0x7ec   : > { %v2813_v1 = vsel %vm4738_vm14, 0, %v4737_v15 }
 0x7ed   : > { %v3143_v44 = vmul.f32 -0.001358992, %v3142_v45  ;;  %v3150_v16 = vmul.f32 -0.00019511016, %v3142_v45  ;;  %v2814_v55 = vsub.s32 32, %v2813_v1  ;;  %v2818_v48 = vsub.s32 4294967266, %v2813_v1 }
 0x7ee   : > { %v2815_v13 = vshll.u32 %v2806_v39, %v2813_v1 }
 0x7ef   : > { %v3220_v14 = vpop.xlane.xlu2 %3219  ;;  %v3144_v28 = vadd.f32 0.041655596, %v3143_v44  ;;  %v3151_v37 = vadd.f32 0.008332121, %v3150_v16  ;;  %v2816_v50 = vshrl.u32 %v2798_v53, %v2814_v55  ;;  %v2819_v25 = vadd.s32 127, %v2818_v48 }
 0x7f0   : > { %v3236_v63 = vmul.f32 %v3220_v14, %v6058_v34  ;;  %v2828_v44 = vsub.s32 4, %v6351_v26 }
 0x7f1   : > { %v3145_v8 = vmul.f32 %v3144_v28, %v3142_v45  ;;  %v3152_v59 = vmul.f32 %v3151_v37, %v3142_v45  ;;  %v2817_v40 = vor.u32 %v2816_v50, %v2815_v13  ;;  %v2820_v47 = vshll.u32 %v2819_v25, 23 }
 0x7f2   : > { %v3242_v5 = vadd.f32 1e-05, %v3236_v63  ;;  %v2829_v48 = vsel %vm2706_vm11, %v2828_v44, %v6351_v26 }
 0x7f3   : > { %v3146_v33 = vadd.f32 -0.4999988, %v3145_v8  ;;  %v3153_v36 = vadd.f32 -0.16666654, %v3152_v59  ;;  %v2821_v22 = vor.u32 4788187, %v2820_v47  ;;  %v2824_v11 = vcvt.s32.f32 %v2817_v40 }
 0x7f4   : > { %4895 = vrsqrt.f32 %v3242_v5  ;;  %vm3254_vm8 = vweird.f32 %v3242_v5  ;;  %v2831_v8 = vsel %vm6373_vm13, 0, %v2829_v48 }
 0x7f5   : > { %v3147_v0 = vmul.f32 %v3146_v33, %v3142_v45  ;;  %v3154_v57 = vmul.f32 %v3153_v36, %v3142_v45  ;;  %v2822_v46 = vand.u32 2147483647, %v2821_v22  ;;  %v2848_v33 = vadd.s32 3, %v2831_v8 }
 0x7f7   : > { %v3148_v19 = vadd.f32 1.0, %v3147_v0  ;;  %v3155_v52 = vadd.f32 1.0, %v3154_v57  ;;  %v2825_v4 = vmul.f32 %v2824_v11, %v2822_v46  ;;  %v2849_v0 = vand.u32 3, %v2848_v33 }
 0x7f9   : > { %v3156_v7 = vmul.f32 %v3155_v52, %v3140_v20  ;;  %v3165_v41 = vxor.u32 2147483648, %v3148_v19  ;;  %v2826_v43 = vxor.u32 2147483648, %v2825_v4 }
 0x7fa   : > { %v4896_v51 = vpop.eup %4895 }
 0x7fb   : > { %v3249_v56 = vmul.f32 %v4896_v51, %v3242_v5  ;;  %v3162_v21 = vxor.u32 2147483648, %v3156_v7  ;;  %v3166_v45 = vsel %vm3164_vm3, %v3165_v41, %v3156_v7  ;;  %vm3255_vm15 = vweird.f32 %v4896_v51 }
 0x7fc   : > { %v2827_v14 = vsel %vm2706_vm11, %v2826_v43, %v2825_v4  ;;  %vm3256_vm14 = vmor %vm3254_vm8, %vm3255_vm15  ;;  %vm2854_vm11 = vcmp.eq.s32.totalorder %v2849_v0, 2  ;;  %vm2847_vm3 = vweird.f32 %v6147_v54  ;;  %vm7263_vm8 = vcmask 89088  }
 0x7fd   : > { %v3250_v39 = vmul.f32 %v4896_v51, %v3249_v56  ;;  %v3163_v10 = vsel %vm3161_vm1, %v3148_v19, %v3162_v21  ;;  %v2830_v16 = vsel %vm6373_vm13, %v6147_v54, %v2827_v14  ;;  %vm2850_vm1 = vcmp.lt.s32.totalorder %v2849_v0, 2 }
 0x7fe   : > { %v3167_v58 = vsel %vm3160_vm0, %v3163_v10, %v3166_v45  ;;  %v2832_v1 = vmul.f32 %v2830_v16, %v2830_v16 }
 0x7ff   : > { %v3251_v17 = vmul.f32 0.5, %v3250_v39  ;;  %v6379_v63 = vsel %vm3157_vm12, nan, %v3167_v58  ;;  %vm2851_vm12 = vcmp.eq.s32.totalorder %v2849_v0, 0 }
 0x800   : > { %v3190_v23 = vsel %vm2365_vm2, %v6379_v63, 0.0  ;;  %3174 = vst.msk [vmem:[%s5783_s16 + $0x28] sm:$0xff] %vm2365_vm2, %v6379_v63  ;;  %v2833_v37 = vmul.f32 -0.001358992, %v2832_v1  ;;  %v2840_v53 = vmul.f32 -0.00019511016, %v2832_v1 }
 0x801   : > { %v3252_v15 = vsub.f32 1.5, %v3251_v17  ;;  %3191 = vadd.xlane.f32.xlu1 %v3190_v23 }
 0x802   : > { %v2834_v5 = vadd.f32 0.041655596, %v2833_v37  ;;  %v2841_v2 = vadd.f32 0.008332121, %v2840_v53 }
 0x803   : > { %v3253_v24 = vmul.f32 %v4896_v51, %v3252_v15 }
 0x804   : > { %v2835_v59 = vmul.f32 %v2834_v5, %v2832_v1  ;;  %v2842_v13 = vmul.f32 %v2841_v2, %v2832_v1 }
 0x805   : > { %v3257_v28 = vsel %vm3256_vm14, %v4896_v51, %v3253_v24  ;;  %vm7264_vm14 = vcmask 121856  }
 0x806   : > { %v6391_v55 = vmul.f32 %v3257_v28, %v6066_v30  ;;  %v2836_v50 = vadd.f32 -0.4999988, %v2835_v59  ;;  %v2843_v25 = vadd.f32 -0.16666654, %v2842_v13 }
 0x808   : > { %3483 = vrot.lane.b32.xlu0 %v6391_v55, %s7167_s13  ;;  %v2837_v36 = vmul.f32 %v2836_v50, %v2832_v1  ;;  %v2844_v30 = vmul.f32 %v2843_v25, %v2832_v1 }
 0x80a   : > { %v2838_v12 = vadd.f32 1.0, %v2837_v36  ;;  %v2845_v40 = vadd.f32 1.0, %v2844_v30 }
 0x80c   : > { %v2846_v57 = vmul.f32 %v2845_v40, %v2830_v16  ;;  %v2855_v22 = vxor.u32 2147483648, %v2838_v12 }
 0x80e   : > { %v2852_v19 = vxor.u32 2147483648, %v2846_v57  ;;  %v2856_v56 = vsel %vm2854_vm11, %v2855_v22, %v2846_v57 }
 0x80f   : > { %v3223_v47 = vpop.xlane.xlu0 %3222 }
 0x810   : > { %v3237_v26 = vmul.f32 %v3223_v47, %v6058_v34  ;;  %3597 = vrot.lane.b32.xlu0 %v6391_v55, %s7155_s17  ;;  %v2853_v52 = vsel %vm2851_vm12, %v2838_v12, %v2852_v19  ;;  %s7256_s17 = smov 116   ;;  %vm7265_vm12 = vmmov %vm7264_vm14 }
 0x811   : > { %v2857_v35 = vsel %vm2850_vm1, %v2853_v52, %v2856_v56 }
 0x812   : > { %v3243_v51 = vadd.f32 1e-05, %v3237_v26  ;;  %v6404_v46 = vsel %vm2847_vm3, nan, %v2857_v35 }
 0x813   : > { %v3184_v11 = vsel %vm2365_vm2, %v6404_v46, 0.0  ;;  %3172 = vst.msk [vmem:[%s5783_s16 + $0x18] sm:$0xff] %vm2365_vm2, %v6404_v46  ;;  %s7257_s16 = smov 12  }
 0x814   : > { %4897 = vrsqrt.f32 %v3243_v51  ;;  %3185 = vadd.xlane.f32.xlu2 %v3184_v11  ;;  %vm3264_vm13 = vweird.f32 %v3243_v51 }
 0x816   : > { %v3183_v58 = vpop.xlane.xlu1 %3182 }
 0x817   : > { %v3202_v24 = vmul.f32 %v6058_v34, %v3183_v58 }
 0x818   : > { %3435 = vrot.lane.b32.xlu0 %v6391_v55, %s7256_s17 }
 0x81a   : > { %v4898_v7 = vpop.eup %4897  ;;  %3723 = vrot.lane.b32.xlu1 %v6391_v55, %s7169_s15 }
 0x81b   : > { %v3259_v41 = vmul.f32 %v4898_v7, %v3243_v51  ;;  %vm3265_vm0 = vweird.f32 %v4898_v7 }
 0x81c   : > { %vm3266_vm15 = vmor %vm3264_vm13, %vm3265_vm0 }
 0x81d   : > { %v3260_v54 = vmul.f32 %v4898_v7, %v3259_v41 }
 0x81f   : > { %v3261_v39 = vmul.f32 0.5, %v3260_v54 }
 0x820   : > { %3675 = vrot.lane.b32.xlu0 %v6391_v55, %s7243_s26 }
 0x821   : > { %v3262_v4 = vsub.f32 1.5, %v3261_v39 }
 0x822   : > { %3501 = vrot.lane.b32.xlu1 %v6391_v55, %s7159_s28  ;;  %s7259_s28 = smov 113  }
 0x823   : > { %v3263_v21 = vmul.f32 %v4898_v7, %v3262_v4 }
 0x825   : > { %v3267_v17 = vsel %vm3266_vm15, %v4898_v7, %v3263_v21 }
 0x826   : > { %v6430_v43 = vmul.f32 %v3267_v17, %v6141_v3 }
 0x828   : > { %3387 = vrot.lane.b32.xlu0 %v6391_v55, %s7165_s23 }
 0x82a   : > { %3453 = vrot.lane.b32.xlu1 %v6391_v55, %s7161_s0 }
 0x82c   : > { %3741 = vrot.lane.b32.xlu2 %v6391_v55, %s7163_s18 }
 0x830   : > { %3645 = vrot.lane.b32.xlu0 %v6391_v55, %s7157_s11  ;;  %s7258_s11 = smov 125   ;;  %v3189_v3 = vpop.xlane.xlu0 %3188 }
 0x831   : > { %v3204_v10 = vmul.f32 %v6058_v34, %v3189_v3 }
 0x832   : > { %3693 = vrot.lane.b32.xlu1 %v6391_v55, %s7257_s16 }
 0x833   : > { %v6474_v45 = vsub.f32 %v6267_v27, %v3204_v10  ;;  %v6485_v27 = vsub.f32 %v6166_v49, %v3202_v24 }
 0x834   : > { %3579 = vrot.lane.b32.xlu2 %v6391_v55, %s7225_s4 }
 0x835   : > { %v3216_v15 = vmul.f32 %v6474_v45, %v6474_v45  ;;  %v3214_v53 = vmul.f32 %v6485_v27, %v6485_v27 }
 0x837   : > { %v3230_v14 = vsel %vm2365_vm2, %v3216_v15, 0.0  ;;  %v3224_v59 = vsel %vm2365_vm2, %v3214_v53, 0.0 }
 0x838   : > { %3743 = vrot.lane.b32.xlu0 %v6430_v43, %s7163_s18  ;;  %s7261_s18 = smov 15  }
 0x83a   : > { %3405 = vrot.lane.b32.xlu1 %v6391_v55, %s7242_s22 }
 0x83c   : > { %3627 = vrot.lane.b32.xlu2 %v6391_v55, %s7258_s11 }
 0x840   : > { %3455 = vrot.lane.b32.xlu0 %v6430_v43, %s7161_s0  ;;  %s7260_s0 = smov 3  }
 0x842   : > { %3531 = vrot.lane.b32.xlu1 %v6391_v55, %s7259_s28 }
 0x844   : > { %3549 = vrot.lane.b32.xlu2 %v6391_v55, %s7213_s1 }
 0x848   : > { %3695 = vrot.lane.b32.xlu0 %v6430_v43, %s7257_s16 }
 0x84a   : > { %3485 = vrot.lane.b32.xlu1 %v6430_v43, %s7167_s13  ;;  %s7266_s13 = smov 11  }
 0x84c   : > { %3725 = vrot.lane.b32.xlu2 %v6430_v43, %s7169_s15 }
 0x850   : > { %3389 = vrot.lane.b32.xlu0 %v6430_v43, %s7165_s23  ;;  %s7262_s23 = smov 13  }
 0x852   : > { %3581 = vrot.lane.b32.xlu1 %v6430_v43, %s7225_s4 }
 0x854   : > { %3503 = vrot.lane.b32.xlu2 %v6430_v43, %s7260_s0 }
 0x858   : > { %3533 = vrot.lane.b32.xlu0 %v6430_v43, %s7259_s28 }
 0x85a   : > { %3407 = vrot.lane.b32.xlu1 %v6430_v43, %s7242_s22 }
 0x85c   : > { %3599 = vrot.lane.b32.xlu2 %v6430_v43, %s7261_s18 }
 0x862   : > { %3629 = vrot.lane.b32.xlu1 %v6430_v43, %s7258_s11 }
 0x864   : > { %3437 = vrot.lane.b32.xlu2 %v6430_v43, %s7256_s17 }
 0x86a   : > { %3551 = vrot.lane.b32.xlu1 %v6430_v43, %s7213_s1 }
 0x86c   : > { %3677 = vrot.lane.b32.xlu2 %v6430_v43, %s7243_s26 }
 0x874   : > { %3647 = vrot.lane.b32.xlu2 %v6430_v43, %s7262_s23  ;;  %v3192_v16 = vpop.xlane.xlu1 %3191 }
 0x875   : > { %v3205_v37 = vmul.f32 %v6058_v34, %v3192_v16 }
 0x877   : > { %v6496_v8 = vsub.f32 %v6379_v63, %v3205_v37 }
 0x879   : > { %v3217_v50 = vmul.f32 %v6496_v8, %v6496_v8 }
 0x87a   : > { %v6478_v20 = vpop.permute.xlu0 %3483 }
 0x87b   : > { %v3233_v30 = vsel %vm2365_vm2, %v3217_v50, 0.0 }
 0x882   : > { %3231 = vadd.xlane.f32.xlu0 %v3230_v14  ;;  %v3598_v44 = vpop.permute.xlu0 %3597 }
 0x887   : > { %v3186_v1 = vpop.xlane.xlu2 %3185 }
 0x888   : > { %v3203_v2 = vmul.f32 %v6058_v34, %v3186_v1 }
 0x88a   : > { %v3436_v23 = vpop.permute.xlu0 %3435  ;;  %v6502_v13 = vsub.f32 %v6404_v46, %v3203_v2 }
 0x88c   : > { %v6487_v28 = vpop.permute.xlu1 %3723  ;;  %v3215_v36 = vmul.f32 %v6502_v13, %v6502_v13 }
 0x88e   : > { %v3227_v40 = vsel %vm2365_vm2, %v3215_v36, 0.0 }
 0x88f   : > { %v6492_v5 = vpop.permute.xlu2 %3741 }
 0x892   : > { %v3676_v48 = vpop.permute.xlu0 %3675 }
 0x894   : > { %3225 = vadd.xlane.f32.xlu1 %v3224_v59  ;;  %v6499_v49 = vpop.permute.xlu1 %3501 }
 0x897   : > { %v3580_v33 = vpop.permute.xlu2 %3579 }
 0x898   : > { %v3615_v10 = vsel %vm7264_vm14, %v3580_v33, %v3598_v44 }
 0x899   : > { %v3621_v14 = vmul.f32 %v3615_v10, %v5886_v42 }
 0x89a   : > { %v3388_v25 = vpop.permute.xlu0 %3387 }
 0x89c   : > { %3234 = vadd.xlane.f32.xlu1 %v3233_v30  ;;  %v3454_v63 = vpop.permute.xlu1 %3453 }
 0x89d   : > { %v6510_v12 = vsel %vm2402_vm4, %v3436_v23, %v3454_v63  ;;  %3228 = vadd.xlane.f32.xlu2 %v3227_v40 }
 0x89f   : > { %v3628_v0 = vpop.permute.xlu2 %3627 }
 0x8a2   : > { %v3646_v47 = vpop.permute.xlu0 %3645 }
 0x8a3   : > { %v6514_v26 = vsel %vm2473_vm10, %v3628_v0, %v3646_v47 }
 0x8a4   : > { %v3694_v57 = vpop.permute.xlu1 %3693 }
 0x8a5   : > { %v6517_v22 = vsel %vm2491_vm9, %v3676_v48, %v3694_v57 }
 0x8a7   : > { %v3550_v51 = vpop.permute.xlu2 %3549 }
 0x8aa   : > { %v3744_v56 = vpop.permute.xlu0 %3743 }
 0x8ac   : > { %v3406_v19 = vpop.permute.xlu1 %3405 }
 0x8ad   : > { %v6520_v52 = vsel %vm2384_vm6, %v3388_v25, %v3406_v19 }
 0x8af   : > { %v3726_v35 = vpop.permute.xlu2 %3725 }
 0x8b0   : > { %v6523_v46 = vsel %vm7263_vm8, %v3726_v35, %v3744_v56 }
 0x8b2   : > { %v3456_v41 = vpop.permute.xlu0 %3455 }
 0x8b4   : > { %v3532_v11 = vpop.permute.xlu1 %3531 }
 0x8b5   : > { %v6526_v7 = vsel %vm1299_vm5, %v3532_v11, %v3550_v51 }
 0x8b7   : > { %v3504_v54 = vpop.permute.xlu2 %3503 }
 0x8ba   : > { %v3696_v17 = vpop.permute.xlu0 %3695 }
 0x8bc   : > { %v3486_v39 = vpop.permute.xlu1 %3485 }
 0x8bd   : > { %v6529_v4 = vsel %vm2420_vm7, %v3486_v39, %v3504_v54 }
 0x8bf   : > { %v3600_v21 = vpop.permute.xlu2 %3599 }
 0x8c2   : > { %v3390_v23 = vpop.permute.xlu0 %3389 }
 0x8c4   : > { %v3582_v3 = vpop.permute.xlu1 %3581 }
 0x8c5   : > { %v3616_v15 = vsel %vm7265_vm12, %v3582_v3, %v3600_v21 }
 0x8c6   : > { %v3622_v58 = vmul.f32 %v3616_v15, %v5886_v42 }
 0x8c7   : > { %v3438_v16 = vpop.permute.xlu2 %3437 }
 0x8c8   : > { %3810 = vmatpush.msra.mxu1 %v3622_v58  ;;  %v6536_v24 = vsel %vm2402_vm4, %v3438_v16, %v3456_v41 }
 0x8ca   : > { %3811 = vmatpush.msra.mxu1 %v3621_v14  ;;  %v3534_v50 = vpop.permute.xlu0 %3533 }
 0x8cc   : > { %v3408_v1 = vpop.permute.xlu1 %3407 }
 0x8cd   : > { %v6539_v37 = vsel %vm2384_vm6, %v3390_v23, %v3408_v1 }
 0x8cf   : > { %v3678_v53 = vpop.permute.xlu2 %3677 }
 0x8d0   : > { %v6542_v44 = vsel %vm2491_vm9, %v3678_v53, %v3696_v17 }
 0x8d4   : > { %v3630_v48 = vpop.permute.xlu1 %3629 }
 0x8d7   : > { %v3648_v2 = vpop.permute.xlu2 %3647 }
 0x8d8   : > { %v6545_v59 = vsel %vm2473_vm10, %v3630_v48, %v3648_v2 }
 0x8dc   : > { %v3552_v25 = vpop.permute.xlu1 %3551 }
 0x8dd   : > { %v6548_v33 = vsel %vm1299_vm5, %v3534_v50, %v3552_v25 }
 0x8f5   : > { %v3232_v36 = vpop.xlane.xlu0 %3231 }
 0x8f6   : > { %v3240_v30 = vmul.f32 %v3232_v36, %v6058_v34 }
 0x8f8   : > { %v3246_v63 = vadd.f32 1e-05, %v3240_v30 }
 0x8fa   : > { %4899 = vrsqrt.f32 %v3246_v63  ;;  %vm3294_vm1 = vweird.f32 %v3246_v63 }
 0x900   : > { %v4900_v40 = vpop.eup %4899 }
 0x901   : > { %v3289_v47 = vmul.f32 %v4900_v40, %v3246_v63  ;;  %vm3295_vm11 = vweird.f32 %v4900_v40 }
 0x902   : > { %vm3296_vm3 = vmor %vm3294_vm1, %vm3295_vm11 }
 0x903   : > { %v3290_v0 = vmul.f32 %v4900_v40, %v3289_v47 }
 0x905   : > { %v3291_v57 = vmul.f32 0.5, %v3290_v0 }
 0x907   : > { %v3292_v51 = vsub.f32 1.5, %v3291_v57  ;;  %v3226_v56 = vpop.xlane.xlu1 %3225 }
 0x908   : > { %v3238_v11 = vmul.f32 %v3226_v56, %v6058_v34 }
 0x909   : > { %v3293_v19 = vmul.f32 %v4900_v40, %v3292_v51 }
 0x90a   : > { %v3244_v54 = vadd.f32 1e-05, %v3238_v11 }
 0x90b   : > { %v3297_v35 = vsel %vm3296_vm3, %v4900_v40, %v3293_v19 }
 0x90c   : > { %v6553_v41 = vmul.f32 %v3297_v35, %v6474_v45  ;;  %4901 = vrsqrt.f32 %v3244_v54  ;;  %vm3274_vm13 = vweird.f32 %v3244_v54 }
 0x90e   : > { %3749 = vrot.lane.b32.xlu0 %v6553_v41, %s7266_s13  ;;  %3731 = vrot.lane.b32.xlu2 %v6553_v41, %s7169_s15 }
 0x90f   : > { %v3235_v39 = vpop.xlane.xlu1 %3234 }
 0x910   : > { %v3241_v21 = vmul.f32 %v3235_v39, %v6058_v34  ;;  %v3229_v3 = vpop.xlane.xlu2 %3228 }
 0x911   : > { %v3239_v15 = vmul.f32 %v3229_v3, %v6058_v34 }
 0x912   : > { %v4902_v17 = vpop.eup %4901  ;;  %v3247_v10 = vadd.f32 1e-05, %v3241_v21 }
 0x913   : > { %v3269_v58 = vmul.f32 %v4902_v17, %v3244_v54  ;;  %v3245_v45 = vadd.f32 1e-05, %v3239_v15  ;;  %vm3275_vm0 = vweird.f32 %v4902_v17 }
 0x914   : > { %4903 = vrsqrt.f32 %v3247_v10  ;;  %vm3276_vm15 = vmor %vm3274_vm13, %vm3275_vm0  ;;  %vm3304_vm14 = vweird.f32 %v3247_v10  ;;  %vm7271_vm0 = vcmask 89088  }
 0x915   : > { %v3270_v14 = vmul.f32 %v4902_v17, %v3269_v58  ;;  %4905 = vrsqrt.f32 %v3245_v45  ;;  %vm3284_vm1 = vweird.f32 %v3245_v45  ;;  %vm7272_vm13 = vmmov %vm7271_vm0 }
 0x917   : > { %v3271_v16 = vmul.f32 0.5, %v3270_v14 }
 0x919   : > { %v3272_v23 = vsub.f32 1.5, %v3271_v16 }
 0x91a   : > { %v4904_v1 = vpop.eup %4903 }
 0x91b   : > { %v3273_v53 = vmul.f32 %v4902_v17, %v3272_v23  ;;  %v3299_v48 = vmul.f32 %v4904_v1, %v3247_v10  ;;  %v4906_v2 = vpop.eup %4905  ;;  %vm3305_vm8 = vweird.f32 %v4904_v1 }
 0x91c   : > { %v3279_v36 = vmul.f32 %v4906_v2, %v3245_v45  ;;  %vm3285_vm12 = vweird.f32 %v4906_v2  ;;  %vm3306_vm11 = vmor %vm3304_vm14, %vm3305_vm8 }
 0x91d   : > { %v3277_v50 = vsel %vm3276_vm15, %v4902_v17, %v3273_v53  ;;  %v3300_v25 = vmul.f32 %v4904_v1, %v3299_v48  ;;  %vm3286_vm3 = vmor %vm3284_vm1, %vm3285_vm12  ;;  %vm7274_vm15 = vcmask 121856   ;;  %vm7281_vm1 = vcmask 261120  }
 0x91e   : > { %v6562_v30 = vmul.f32 %v3277_v50, %v6485_v27  ;;  %v3280_v63 = vmul.f32 %v4906_v2, %v3279_v36  ;;  %vm7275_vm8 = vmmov %vm7271_vm0 }
 0x91f   : > { %v3301_v34 = vmul.f32 0.5, %v3300_v25  ;;  %vm7277_vm14 = vmmov %vm7271_vm0 }
 0x920   : > { %3745 = vrot.lane.b32.xlu1 %v6562_v30, %s7266_s13  ;;  %3727 = vrot.lane.b32.xlu0 %v6562_v30, %s7169_s15  ;;  %v3281_v47 = vmul.f32 0.5, %v3280_v63  ;;  %s7268_s15 = smov 4   ;;  %vm7278_vm12 = vmmov %vm7271_vm0 }
 0x921   : > { %v3302_v40 = vsub.f32 1.5, %v3301_v34  ;;  %3487 = vrot.lane.b32.xlu2 %v6562_v30, %s7267_s3 }
 0x922   : > { %v3282_v57 = vsub.f32 1.5, %v3281_v47 }
 0x923   : > { %v3303_v0 = vmul.f32 %v4904_v1, %v3302_v40 }
 0x924   : > { %v3283_v51 = vmul.f32 %v4906_v2, %v3282_v57 }
 0x925   : > { %v3307_v27 = vsel %vm3306_vm11, %v4904_v1, %v3303_v0  ;;  %vm3335_vm11 = vcmask 392192  }
 0x926   : > { %v6571_v19 = vmul.f32 %v3307_v27, %v6496_v8  ;;  %v3287_v56 = vsel %vm3286_vm3, %v4906_v2, %v3283_v51  ;;  %vm7282_vm3 = vmmov %vm7281_vm1 }
 0x927   : > { %v6582_v35 = vmul.f32 %v3287_v56, %v6502_v13  ;;  %v3380_v56 = vld [vmem:[%s7273_s9 + $0x8] sm:$0xff] }
 0x928   : > { %3461 = vrot.lane.b32.xlu1 %v6553_v41, %s7268_s15  ;;  %3505 = vrot.lane.b32.xlu0 %v6562_v30, %s7260_s0 }
 0x929   : > { %3355 = vmatpush.msrb.mxu0 %v6571_v19  ;;  %3683 = vrot.lane.b32.xlu2 %v6553_v41, %s7243_s26 }
 0x92a   : > { %3812 = vmatpush.msra.mxu1 %v6571_v19 }
 0x92b   : > { %3356 = vmatpush.msrb.mxu0 %v6553_v41 }
 0x92c   : > { %3813 = vmatpush.msra.mxu1 %v6553_v41 }
 0x92d   : > { %3357 = vmatpush.msrb.mxu0 %v6582_v35 }
 0x92e   : > { %3814 = vmatpush.msra.mxu1 %v6582_v35 }
 0x92f   : > { %3358 = vmatpush.msrb.mxu0 %v6562_v30 }
 0x930   : > { %3815 = vmatpush.msra.mxu1 %v6562_v30  ;;  %3439 = vrot.lane.b32.xlu1 %v6562_v30, %s7256_s17 }
 0x931   : > { %3443 = vrot.lane.b32.xlu0 %v6553_v41, %s7256_s17  ;;  %3457 = vrot.lane.b32.xlu2 %v6562_v30, %s7268_s15 }
 0x932   : > { %3359 = vmatpush.msrb.mxu0 %v6430_v43  ;;  %3816 = vmatpush.msra.mxu1 %v6430_v43 }
 0x934   : > { %3360 = vmatpush.msrb.mxu0 %v6391_v55  ;;  %3817 = vmatpush.msra.mxu1 %v6391_v55 }
 0x938   : > { %3679 = vrot.lane.b32.xlu1 %v6562_v30, %s7243_s26 }
 0x939   : > { %3701 = vrot.lane.b32.xlu0 %v6553_v41, %s7257_s16  ;;  %3697 = vrot.lane.b32.xlu2 %v6562_v30, %s7257_s16 }
 0x940   : > { %3635 = vrot.lane.b32.xlu1 %v6553_v41, %s7258_s11 }
 0x941   : > { %3413 = vrot.lane.b32.xlu0 %v6553_v41, %s7242_s22  ;;  %3395 = vrot.lane.b32.xlu2 %v6553_v41, %s7269_s5 }
 0x948   : > { %3409 = vrot.lane.b32.xlu1 %v6562_v30, %s7242_s22 }
 0x949   : > { %3391 = vrot.lane.b32.xlu0 %v6562_v30, %s7269_s5  ;;  %3653 = vrot.lane.b32.xlu2 %v6553_v41, %s7262_s23 }
 0x950   : > { %3631 = vrot.lane.b32.xlu1 %v6562_v30, %s7258_s11 }
 0x951   : > { %3557 = vrot.lane.b32.xlu0 %v6553_v41, %s7213_s1  ;;  %3539 = vrot.lane.b32.xlu2 %v6553_v41, %s7259_s28 }
 0x958   : > { %3587 = vrot.lane.b32.xlu1 %v6553_v41, %s7225_s4 }
 0x959   : > { %3553 = vrot.lane.b32.xlu0 %v6562_v30, %s7213_s1  ;;  %3649 = vrot.lane.b32.xlu2 %v6562_v30, %s7262_s23 }
 0x960   : > { %3509 = vrot.lane.b32.xlu1 %v6553_v41, %s7260_s0 }
 0x961   : > { %3491 = vrot.lane.b32.xlu0 %v6553_v41, %s7267_s3  ;;  %3535 = vrot.lane.b32.xlu2 %v6562_v30, %s7259_s28 }
 0x968   : > { %3733 = vrot.lane.b32.xlu1 %v6571_v19, %s7270_s8  ;;  %v3732_v55 = vpop.permute.xlu2 %3731 }
 0x969   : > { %3751 = vrot.lane.b32.xlu0 %v6571_v19, %s7266_s13  ;;  %3605 = vrot.lane.b32.xlu2 %v6553_v41, %s7261_s18 }
 0x970   : > { %3729 = vrot.lane.b32.xlu1 %v6582_v35, %s7270_s8 }
 0x971   : > { %3489 = vrot.lane.b32.xlu0 %v6582_v35, %s7267_s3  ;;  %3747 = vrot.lane.b32.xlu2 %v6582_v35, %s7266_s13 }
 0x978   : > { %3507 = vrot.lane.b32.xlu1 %v6582_v35, %s7260_s0 }
 0x979   : > { %3463 = vrot.lane.b32.xlu0 %v6571_v19, %s7268_s15  ;;  %3445 = vrot.lane.b32.xlu2 %v6571_v19, %s7256_s17 }
 0x97b   : > { %v3488_v43 = vpop.permute.xlu2 %3487 }
 0x980   : > { %v3750_v8 = vpop.permute.xlu0 %3749  ;;  %3685 = vrot.lane.b32.xlu1 %v6571_v19, %s7243_s26 }
 0x981   : > { %v6655_v13 = vsel %vm7271_vm0, %v3732_v55, %v3750_v8  ;;  %3441 = vrot.lane.b32.xlu0 %v6582_v35, %s7256_s17  ;;  %3703 = vrot.lane.b32.xlu2 %v6571_v19, %s7257_s16  ;;  %vm7283_vm0 = vmmov %vm7281_vm1 }
 0x983   : > { %v3684_v11 = vpop.permute.xlu2 %3683 }
 0x988   : > { %3459 = vrot.lane.b32.xlu1 %v6582_v35, %s7268_s15 }
 0x989   : > { %3681 = vrot.lane.b32.xlu0 %v6582_v35, %s7243_s26  ;;  %3415 = vrot.lane.b32.xlu2 %v6571_v19, %s7242_s22 }
 0x98b   : > { %v3458_v41 = vpop.permute.xlu2 %3457 }
 0x990   : > { %3699 = vrot.lane.b32.xlu1 %v6582_v35, %s7257_s16 }
 0x991   : > { %3393 = vrot.lane.b32.xlu0 %v6582_v35, %s7269_s5  ;;  %3655 = vrot.lane.b32.xlu2 %v6571_v19, %s7262_s23 }
 0x992   : > { %v3728_v54 = vpop.permute.xlu0 %3727  ;;  %v3746_v39 = vpop.permute.xlu1 %3745 }
 0x993   : > { %v6676_v21 = vsel %vm7272_vm13, %v3728_v54, %v3746_v39  ;;  %v3698_v17 = vpop.permute.xlu2 %3697  ;;  %vm7284_vm13 = vmmov %vm7283_vm0 }
 0x998   : > { %3397 = vrot.lane.b32.xlu1 %v6571_v19, %s7269_s5 }
 0x999   : > { %3559 = vrot.lane.b32.xlu0 %v6571_v19, %s7213_s1  ;;  %3541 = vrot.lane.b32.xlu2 %v6571_v19, %s7259_s28 }
 0x99a   : > { %v3506_v3 = vpop.permute.xlu0 %3505  ;;  %v3462_v10 = vpop.permute.xlu1 %3461 }
 0x99b   : > { %v6685_v15 = vsel %vm2420_vm7, %v3488_v43, %v3506_v3  ;;  %v3396_v58 = vpop.permute.xlu2 %3395 }
 0x9a0   : > { %3637 = vrot.lane.b32.xlu1 %v6571_v19, %s7258_s11 }
 0x9a1   : > { %3555 = vrot.lane.b32.xlu0 %v6582_v35, %s7213_s1  ;;  %3651 = vrot.lane.b32.xlu2 %v6582_v35, %s7262_s23 }
 0x9a2   : > { %v3440_v45 = vpop.permute.xlu1 %3439 }
 0x9a3   : > { %v3444_v14 = vpop.permute.xlu0 %3443  ;;  %v6694_v16 = vsel %vm2402_vm4, %v3440_v45, %v3458_v41  ;;  %v3654_v23 = vpop.permute.xlu2 %3653 }
 0x9a4   : > { %v6697_v1 = vsel %vm2402_vm4, %v3444_v14, %v3462_v10 }
 0x9a8   : > { %3411 = vrot.lane.b32.xlu1 %v6582_v35, %s7242_s22 }
 0x9a9   : > { %3589 = vrot.lane.b32.xlu0 %v6571_v19, %s7225_s4  ;;  %3537 = vrot.lane.b32.xlu2 %v6582_v35, %s7259_s28 }
 0x9aa   : > { %v3680_v53 = vpop.permute.xlu1 %3679 }
 0x9ab   : > { %v3702_v48 = vpop.permute.xlu0 %3701  ;;  %v6706_v2 = vsel %vm2491_vm9, %v3680_v53, %v3698_v17  ;;  %v3540_v50 = vpop.permute.xlu2 %3539 }
 0x9ac   : > { %v6709_v25 = vsel %vm2491_vm9, %v3684_v11, %v3702_v48  ;;  %v3379_v11 = vld [vmem:[%s7273_s9] sm:$0xff]  ;;  %v6755_v48 = vld [vmem:[%s7241_s2 + $0x8] ss:$0 sm:$0xff]  ;;  %s7276_s9 = sld [smem:[#allocation14_spill]] }
 0x9ad   : > { %s7279_s2 = sld [smem:[#allocation16_spill]] }
 0x9b0   : > { %3633 = vrot.lane.b32.xlu1 %v6582_v35, %s7258_s11 }
 0x9b1   : > { %3511 = vrot.lane.b32.xlu0 %v6571_v19, %s7260_s0  ;;  %3493 = vrot.lane.b32.xlu2 %v6571_v19, %s7267_s3 }
 0x9b2   : > { %v3636_v36 = vpop.permute.xlu1 %3635 }
 0x9b3   : > { %v3414_v34 = vpop.permute.xlu0 %3413  ;;  %v6718_v63 = vsel %vm2473_vm10, %v3636_v36, %v3654_v23  ;;  %v3650_v40 = vpop.permute.xlu2 %3649  ;;  %v3769_v36 = vmul.f32 %v6755_v48, %v6655_v13  ;;  %v3766_v13 = vmul.f32 %v6755_v48, %v6523_v46  ;;  %v3526_v46 = vmul.f32 %v6529_v4, %v5872_v18 }
 0x9b4   : > { %v6721_v47 = vsel %vm2384_vm6, %v3396_v58, %v3414_v34  ;;  %v3721_v4 = vmul.f32 %v6709_v25, %v5884_v38 }
 0x9b8   : > { %3607 = vrot.lane.b32.xlu1 %v6571_v19, %s7261_s18 }
 0x9b9   : > { %3603 = vrot.lane.b32.xlu0 %v6582_v35, %s7261_s18  ;;  %3585 = vrot.lane.b32.xlu2 %v6582_v35, %s7225_s4 }
 0x9ba   : > { %v3410_v0 = vpop.permute.xlu1 %3409 }
 0x9bb   : > { %v3392_v57 = vpop.permute.xlu0 %3391  ;;  %v3536_v27 = vpop.permute.xlu2 %3535 }
 0x9bc   : > { %v6730_v51 = vsel %vm2384_vm6, %v3392_v57, %v3410_v0 }
 0x9c0   : > { %3583 = vrot.lane.b32.xlu1 %v6562_v30, %s7225_s4 }
 0x9c1   : > { %3778 = vperm.xlu0 %4865, %v3380_v56   ;;  %3601 = vrot.lane.b32.xlu2 %v6562_v30, %s7261_s18  ;;  %v3767_v56 = vmul.f32 %v6755_v48, %v6676_v21 }
 0x9c2   : > { %v3632_v19 = vpop.permute.xlu1 %3631 }
 0x9c3   : > { %v3558_v55 = vpop.permute.xlu0 %3557  ;;  %v6738_v43 = vsel %vm2473_vm10, %v3632_v19, %v3650_v40  ;;  %v3606_v35 = vpop.permute.xlu2 %3605  ;;  %v3759_v19 = vsel %vm7278_vm12, %v6487_v28, %v6492_v5  ;;  %v3527_v28 = vmul.f32 %v6685_v15, %v5872_v18  ;;  %v3519_v5 = vsel %vm2420_vm7, %v6478_v20, %v6499_v49 }
 0x9c4   : > { %v6741_v8 = vsel %vm1299_vm5, %v3540_v50, %v3558_v55  ;;  %v3765_v55 = vmul.f32 %v6755_v48, %v3759_v19 }
 0x9c8   : > { %3773 = vperm.xlu1 %4864, %v3379_v11   ;;  %v3374_v11 = vld [vmem:[%s7276_s9 + $0x18] sm:$0xff] }
 0x9ca   : > { %v3588_v41 = vpop.permute.xlu1 %3587 }
 0x9cb   : > { %v3554_v54 = vpop.permute.xlu0 %3553  ;;  %v6745_v39 = vsel %vm7274_vm15, %v3588_v41, %v3606_v35  ;;  %v3748_v30 = vpop.permute.xlu2 %3747 }
 0x9cc   : > { %v6748_v17 = vsel %vm1299_vm5, %v3536_v27, %v3554_v54 }
 0x9d2   : > { %v3510_v3 = vpop.permute.xlu1 %3509 }
 0x9d3   : > { %v3492_v10 = vpop.permute.xlu0 %3491  ;;  %v3446_v45 = vpop.permute.xlu2 %3445 }
 0x9d4   : > { %v6751_v58 = vsel %vm2420_vm7, %v3492_v10, %v3510_v3  ;;  %v3525_v10 = vmul.f32 %v3519_v5, %v5872_v18  ;;  %v3316_v5 = vld [vmem:[%s7280_s12 + $0x10] sm:$0xff] }
 0x9da   : > { %v3734_v14 = vpop.permute.xlu1 %3733 }
 0x9db   : > { %v3752_v23 = vpop.permute.xlu0 %3751  ;;  %v3704_v34 = vpop.permute.xlu2 %3703 }
 0x9dc   : > { %v3764_v53 = vsel %vm7275_vm8, %v3734_v14, %v3752_v23  ;;  %vm7285_vm8 = vmmov %vm7274_vm15 }
 0x9dd   : > { %v3770_v50 = vmul.f32 %v6755_v48, %v3764_v53  ;;  %v3885_v53 = vld [vmem:[%s7279_s2] sm:$0xff] }
 0x9df   : > { %3866 = vmatpush.msrb.mxu2 %v3770_v50 }
 0x9e1   : > { %3867 = vmatpush.msrb.mxu2 %v3769_v36 }
 0x9e2   : > { %v3730_v40 = vpop.permute.xlu1 %3729 }
 0x9e3   : > { %v3490_v0 = vpop.permute.xlu0 %3489  ;;  %v3762_v57 = vsel %vm7277_vm14, %v3730_v40, %v3748_v30  ;;  %v6771_v41 = vpop.permute.xlu2 %3415  ;;  %v3478_v40 = vmul.f32 %v6536_v24, %v5864_v6  ;;  %v3315_v24 = vld [vmem:[%s7280_s12 + $0x8] sm:$0xff]  ;;  %vm7287_vm14 = vmmov %vm7285_vm8 }
 0x9e4   : > { %v3768_v27 = vmul.f32 %v6755_v48, %v3762_v57 }
 0x9e6   : > { %3868 = vmatpush.msrb.mxu2 %v3768_v27  ;;  %v3886_v27 = vld [vmem:[%s7279_s2 + $0x8] sm:$0xff] }
 0x9e8   : > { %3869 = vmatpush.msrb.mxu2 %v3767_v56 }
 0x9ea   : > { %v3508_v35 = vpop.permute.xlu1 %3507  ;;  %3870 = vmatpush.msrb.mxu2 %v3766_v13  ;;  %v3719_v13 = vmul.f32 %v6706_v2, %v5884_v38 }
 0x9eb   : > { %v3464_v54 = vpop.permute.xlu0 %3463  ;;  %v3522_v21 = vsel %vm2420_vm7, %v3490_v0, %v3508_v35  ;;  %v3477_v0 = vmul.f32 %v6510_v12, %v5864_v6  ;;  %v3718_v12 = vmul.f32 %v6542_v44, %v5884_v38  ;;  %v3717_v35 = vmul.f32 %v6517_v22, %v5884_v38 }
 0x9ec   : > { %v3528_v30 = vmul.f32 %v3522_v21, %v5872_v18  ;;  %3871 = vmatpush.msrb.mxu2 %v3765_v55  ;;  %v3476_v3 = vsel %vm2402_vm4, %v3446_v45, %v3464_v54  ;;  %v3887_v54 = vld [vmem:[%s7279_s2 + $0x10] sm:$0xff]  ;;  %v3433_v22 = vmul.f32 %v6721_v47, %v5866_v9 }
 0x9ed   : > { %4748 = vmatmul.msk.f32.vlgmr.msrb.gmra.mxu2 %vm3335_vm11, %v3374_v11  ;;  %v3482_v20 = vmul.f32 %v3476_v3, %v5864_v6  ;;  %v3888_v3 = vld [vmem:[%s7279_s2 + $0x18] sm:$0xff]  ;;  %s7286_s2 = sld [smem:[#allocation17_spill]] }
 0x9ee   : > { %3917 = vmatpush.msra.mxu2 %v5593_v60  ;;  %3787 = vmatpush.msra.mxu3 %v3528_v30  ;;  %v3378_v60 = vld [vmem:[%s7276_s9 + $0x38] sm:$0xff] }
 0x9f0   : > { %3918 = vmatpush.msra.mxu2 %v5591_v29  ;;  %3788 = vmatpush.msra.mxu3 %v3527_v28  ;;  %v3656_v29 = vpop.permute.xlu2 %3655 }
 0x9f2   : > { %3919 = vmatpush.msra.mxu2 %v5596_v62  ;;  %v3686_v15 = vpop.permute.xlu1 %3685  ;;  %3789 = vmatpush.msra.mxu3 %v3526_v46  ;;  %v3481_v62 = vmul.f32 %v6697_v1, %v5864_v6  ;;  %v3479_v1 = vmul.f32 %v6694_v16, %v5864_v6  ;;  %v3577_v46 = vmul.f32 %v6741_v8, %v5870_v61 }
 0x9f3   : > { %v3442_v14 = vpop.permute.xlu0 %3441  ;;  %v3716_v23 = vsel %vm2491_vm9, %v3686_v15, %v3704_v34  ;;  %v3314_v34 = vld [vmem:[%s7280_s12] sm:$0xff]  ;;  %v3673_v8 = vmul.f32 %v6718_v63, %v5882_v31 }
 0x9f4   : > { %v3722_v49 = vmul.f32 %v3716_v23, %v5884_v38  ;;  %3920 = vmatpush.msra.mxu2 %v5599_v32  ;;  %3790 = vmatpush.msra.mxu3 %v3525_v10 }
 0x9f5   : > { %4749 = vmatmul.msk.f32.gmra.mxu2 %vm3335_vm11, %v3378_v60  ;;  %4745 = vmatmul.msk.f32.vlgmr.msrb.gmra.mxu0 %vm3335_vm11, %v3314_v34 }
 0x9f6   : > { %3791 = vmatpush.msra.mxu3 %v3482_v20  ;;  %3833 = vmatpush.msra.mxu0 %v3722_v49  ;;  %v3575_v20 = vmul.f32 %v6748_v17, %v5870_v61  ;;  %v3574_v49 = vmul.f32 %v6548_v33, %v5870_v61  ;;  %v3431_v17 = vmul.f32 %v6730_v51, %v5866_v9 }
 0x9f7   : > { %v3430_v33 = vmul.f32 %v6539_v37, %v5866_v9  ;;  %v3671_v37 = vmul.f32 %v6738_v43, %v5882_v31 }
 0x9f8   : > { %3792 = vmatpush.msra.mxu3 %v3481_v62  ;;  %3834 = vmatpush.msra.mxu0 %v3721_v4  ;;  %v3542_v25 = vpop.permute.xlu2 %3541  ;;  %v3573_v62 = vmul.f32 %v6526_v7, %v5870_v61  ;;  %v3429_v7 = vmul.f32 %v6520_v52, %v5866_v9  ;;  %v3529_v52 = vmul.f32 %v6751_v58, %v5872_v18 }
 0x9fa   : > { %v3460_v45 = vpop.permute.xlu1 %3459 }
 0x9fb   : > { %v3682_v50 = vpop.permute.xlu0 %3681  ;;  %v3474_v32 = vsel %vm2402_vm4, %v3442_v14, %v3460_v45 }
 0x9fc   : > { %v3480_v36 = vmul.f32 %v3474_v32, %v5864_v6  ;;  %v3371_v32 = vld [vmem:[%s7276_s9] sm:$0xff] }
 0x9fd   : > { %4750 = vmatmul.msk.f32.vlgmr.msra.gmra.mxu2 %vm7281_vm1, %v3885_v53  ;;  %4746 = vmatmul.msk.f32.gmra.mxu0 %vm3335_vm11, %v3315_v24 }
 0x9fe   : > { %3793 = vmatpush.msra.mxu3 %v3480_v36 }
 0xa00   : > { %3794 = vmatpush.msra.mxu3 %v3479_v1  ;;  %v3652_v55 = vpop.permute.xlu2 %3651 }
 0xa02   : > { %v3700_v57 = vpop.permute.xlu1 %3699  ;;  %3795 = vmatpush.msra.mxu3 %v3478_v40  ;;  %v3372_v40 = vld [vmem:[%s7276_s9 + $0x8] sm:$0xff] }
 0xa03   : > { %v3394_v56 = vpop.permute.xlu0 %3393  ;;  %v3714_v16 = vsel %vm2491_vm9, %v3682_v50, %v3700_v57 }
 0xa04   : > { %v3720_v19 = vmul.f32 %v3714_v16, %v5884_v38  ;;  %3796 = vmatpush.msra.mxu3 %v3477_v0  ;;  %v3670_v0 = vmul.f32 %v6545_v59, %v5882_v31  ;;  %v3375_v16 = vld [vmem:[%s7276_s9 + $0x20] sm:$0xff] }
 0xa05   : > { %4751 = vmatmul.msk.f32.gmra.mxu2 %vm7282_vm3, %v3886_v27  ;;  %4747 = vmatmul.msk.f32.gmra.mxu0 %vm3335_vm11, %v3316_v5  ;;  %v3669_v27 = vmul.f32 %v6514_v26, %v5882_v31  ;;  %v3376_v26 = vld [vmem:[%s7276_s9 + $0x28] sm:$0xff] }
 0xa06   : > { %3835 = vmatpush.msra.mxu0 %v3720_v19  ;;  %v3890_v5 = vld [vmem:[%s7286_s2 + $0x8] sm:$0xff] }
 0xa08   : > { %3836 = vmatpush.msra.mxu0 %v3719_v13  ;;  %v3538_v10 = vpop.permute.xlu2 %3537  ;;  %v3625_v13 = vmul.f32 %v6745_v39, %v5886_v42  ;;  %v3377_v39 = vld [vmem:[%s7276_s9 + $0x30] sm:$0xff] }
 0xa0a   : > { %v3398_v11 = vpop.permute.xlu1 %3397  ;;  %3837 = vmatpush.msra.mxu0 %v3718_v12 }
 0xa0b   : > { %v3560_v21 = vpop.permute.xlu0 %3559  ;;  %v3428_v2 = vsel %vm2384_vm6, %v3398_v11, %v6771_v41 }
 0xa0c   : > { %v3572_v30 = vsel %vm1299_vm5, %v3542_v25, %v3560_v21  ;;  %v3434_v44 = vmul.f32 %v3428_v2, %v5866_v9  ;;  %3838 = vmatpush.msra.mxu0 %v3717_v35 }
 0xa0d   : > { %v3578_v28 = vmul.f32 %v3572_v30, %v5870_v61  ;;  %4752 = vmatmul.msk.f32.gmra.mxu2 %vm7283_vm0, %v3887_v54  ;;  %v3373_v54 = vld [vmem:[%s7276_s9 + $0x10] sm:$0xff]  ;;  %v3889_v30 = vld [vmem:[%s7286_s2] sm:$0xff]  ;;  %vm7290_vm0 = vmmov %vm7285_vm8 }
 0xa0e   : > { %3797 = vmatpush.msra.mxu3 %v3434_v44 }
 0xa0f   : > { %3818 = vmatpush.msra.mxu1 %v3578_v28 }
 0xa10   : > { %3798 = vmatpush.msra.mxu3 %v3433_v22  ;;  %v3494_v53 = vpop.permute.xlu2 %3493 }
 0xa11   : > { %3819 = vmatpush.msra.mxu1 %v3577_v46 }
 0xa12   : > { %v3638_v41 = vpop.permute.xlu1 %3637 }
 0xa13   : > { %v3556_v15 = vpop.permute.xlu0 %3555  ;;  %v3668_v60 = vsel %vm2473_vm10, %v3638_v41, %v3656_v29 }
 0xa14   : > { %v3570_v14 = vsel %vm1299_vm5, %v3538_v10, %v3556_v15  ;;  %v3674_v47 = vmul.f32 %v3668_v60, %v5882_v31  ;;  %v3891_v10 = vld [vmem:[%s7286_s2 + $0x10] sm:$0xff] }
 0xa15   : > { %v3576_v23 = vmul.f32 %v3570_v14, %v5870_v61  ;;  %4753 = vmatmul.msk.f32.gmra.mxu2 %vm7284_vm13, %v3888_v3  ;;  %v3892_v14 = vld [vmem:[%s7286_s2 + $0x18] sm:$0xff]  ;;  %s7288_s2 = sld [smem:[#allocation19_spill]] }
 0xa16   : > { %3839 = vmatpush.msra.mxu0 %v3674_v47 }
 0xa17   : > { %3820 = vmatpush.msra.mxu1 %v3576_v23 }
 0xa18   : > { %3840 = vmatpush.msra.mxu0 %v3673_v8  ;;  %v3586_v57 = vpop.permute.xlu2 %3585 }
 0xa19   : > { %3821 = vmatpush.msra.mxu1 %v3575_v20 }
 0xa1a   : > { %v3412_v29 = vpop.permute.xlu1 %3411 }
 0xa1b   : > { %v3590_v4 = vpop.permute.xlu0 %3589  ;;  %v3426_v45 = vsel %vm2384_vm6, %v3394_v56, %v3412_v29  ;;  %3822 = vmatpush.msra.mxu1 %v3574_v49 }
 0xa1c   : > { %v3432_v63 = vmul.f32 %v3426_v45, %v5866_v9 }
 0xa1d   : > { %3823 = vmatpush.msra.mxu1 %v3573_v62 }
 0xa1e   : > { %3799 = vmatpush.msra.mxu3 %v3432_v63 }
 0xa20   : > { %3800 = vmatpush.msra.mxu3 %v3431_v17  ;;  %v3602_v12 = vpop.permute.xlu2 %3601 }
 0xa22   : > { %v3634_v50 = vpop.permute.xlu1 %3633  ;;  %3801 = vmatpush.msra.mxu3 %v3430_v33 }
 0xa23   : > { %v3512_v36 = vpop.permute.xlu0 %3511  ;;  %v3666_v1 = vsel %vm2473_vm10, %v3634_v50, %v3652_v55 }
 0xa24   : > { %v3524_v34 = vsel %vm2420_vm7, %v3494_v53, %v3512_v36  ;;  %v3672_v51 = vmul.f32 %v3666_v1, %v5882_v31  ;;  %3802 = vmatpush.msra.mxu3 %v3429_v7 }
 0xa25   : > { %v3530_v25 = vmul.f32 %v3524_v34, %v5872_v18  ;;  %3803 = vmatmul.f32.vlgmr.msra.gmra.mxu3 %v3371_v32 }
 0xa26   : > { %3841 = vmatpush.msra.mxu0 %v3672_v51 }
 0xa27   : > { %3824 = vmatpush.msra.mxu1 %v3530_v25 }
 0xa28   : > { %3842 = vmatpush.msra.mxu0 %v3671_v37 }
 0xa29   : > { %3825 = vmatpush.msra.mxu1 %v3529_v52 }
 0xa2a   : > { %v3608_v56 = vpop.permute.xlu1 %3607  ;;  %3843 = vmatpush.msra.mxu0 %v3670_v0  ;;  %3826 = vmatmul.f32.vlgmr.msra.gmra.mxu1 %v3372_v40 }
 0xa2b   : > { %v3604_v43 = vpop.permute.xlu0 %3603  ;;  %v3620_v19 = vsel %vm7274_vm15, %v3590_v4, %v3608_v56 }
 0xa2c   : > { %v3626_v58 = vmul.f32 %v3620_v19, %v5886_v42  ;;  %3844 = vmatpush.msra.mxu0 %v3669_v27  ;;  %v3618_v59 = vsel %vm7285_vm8, %v3586_v57, %v3604_v43  ;;  %vm7303_vm8 = vcmask 261120  }
 0xa2d   : > { %3806 = vmatmul.f32.gmra.mxu3 %v3375_v16  ;;  %v3624_v24 = vmul.f32 %v3618_v59, %v5886_v42 }
 0xa2e   : > { %3845 = vmatpush.msra.mxu0 %v3626_v58 }
 0xa30   : > { %3846 = vmatpush.msra.mxu0 %v3625_v13 }
 0xa32   : > { %v3584_v55 = vpop.permute.xlu1 %3583  ;;  %3847 = vmatpush.msra.mxu0 %v3624_v24  ;;  %3829 = vmatmul.f32.gmra.mxu1 %v3376_v26 }
 0xa33   : > { %v3617_v35 = vsel %vm7287_vm14, %v3584_v55, %v3602_v12  ;;  %v3779_v33 = vpop.permute.xlu0 %3778  ;;  %v3972_v55 = vld [vmem:[%s7288_s2] sm:$0xff]  ;;  %vm7304_vm14 = vmmov %vm7303_vm8 }
 0xa34   : > { %v3623_v11 = vmul.f32 %v3617_v35, %v5886_v42  ;;  %v3973_v35 = vld [vmem:[%s7288_s2 + $0x8] sm:$0xff] }
 0xa36   : > { %3848 = vmatpush.msra.mxu0 %v3623_v11 }
 0xa37   : > { %3849 = vmatmul.f32.vlgmr.msra.gmra.mxu0 %v3373_v54 }
 0xa3a   : > { %v3774_v62 = vpop.permute.xlu1 %3773 }
 0xa3f   : > { %3852 = vmatmul.f32.gmra.mxu0 %v3377_v39 }
 0xa70   : > { %v3873_v21 = vpop.f32.mrf.mxu2 }
 0xa72   : > { %v6887_v8 = vpop.f32.mrf.mxu0 }
 0xa78   : > { %v3876_v2 = vpop.f32.mrf.mxu2 }
 0xa7a   : > { %v6889_v20 = vpop.f32.mrf.mxu0 }
 0xa80   : > { %v3922_v44 = vpop.f32.mrf.mxu2 }
 0xa81   : > { %v3923_v28 = vadd.f32 %v3922_v44, %v3889_v30 }
 0xa82   : > { %v6891_v49 = vpop.f32.mrf.mxu0 }
 0xa83   : > { %v3934_v22 = vadd.f32 1.0, %v3923_v28 }
 0xa85   : > { %3938 = vperm.xlu0 %4865, %v3934_v22  }
 0xa88   : > { %v3925_v46 = vpop.f32.mrf.mxu2 }
 0xa89   : > { %v3926_v41 = vadd.f32 %v3925_v46, %v3890_v5 }
 0xa8b   : > { %v3935_v3 = vadd.f32 1.0, %v3926_v41 }
 0xa8d   : > { %3943 = vperm.xlu2 %4866, %v3935_v3  }
 0xa90   : > { %v3928_v15 = vpop.f32.mrf.mxu2 }
 0xa91   : > { %v3929_v60 = vadd.f32 %v3928_v15, %v3891_v10 }
 0xa95   : > { %3950 = vperm.xlu2 %4866, %v3929_v60  }
 0xa98   : > { %v3931_v47 = vpop.f32.mrf.mxu2 }
 0xa99   : > { %v3932_v23 = vadd.f32 %v3931_v47, %v3892_v14 }
 0xa9b   : > { %3955 = vperm.xlu1 %4864, %v3932_v23  }
 0xaa7   : > { %v3827_v45 = vpop.f32.mrf.mxu1 }
 0xaa8   : > { %v3804_v29 = vpop.f32.mrf.mxu3 }
 0xaa9   : > { %v3805_v4 = vadd.f32 %v3804_v29, %v3774_v62 }
 0xaab   : > { %v3828_v17 = vadd.f32 %v3827_v45, %v3805_v4 }
 0xaaf   : > { %v3830_v57 = vpop.f32.mrf.mxu1 }
 0xab0   : > { %v3807_v52 = vpop.f32.mrf.mxu3 }
 0xab1   : > { %v3808_v0 = vadd.f32 %v3807_v52, %v3779_v33 }
 0xab3   : > { %v3831_v56 = vadd.f32 %v3830_v57, %v3808_v0 }
 0xab4   : > { %v3850_v63 = vpop.f32.mrf.mxu0 }
 0xab5   : > { %v3851_v53 = vadd.f32 %v3850_v63, %v3828_v17 }
 0xab7   : > { %v3874_v7 = vadd.f32 %v3873_v21, %v3851_v53  ;;  %v3974_v21 = vld [vmem:[%s7288_s2 + $0x10] sm:$0xff] }
 0xab9   : > { %v3881_v32 = vmul.f32 0.2, %v3874_v7  ;;  %vm3879_vm12 = vcmp.gt.f32.partialorder %v3874_v7, 0.0 }
 0xabb   : > { %v3883_v1 = vsel %vm3879_vm12, %v3874_v7, %v3881_v32  ;;  %vm7305_vm12 = vmmov %vm7303_vm8 }
 0xabc   : > { %v3853_v27 = vpop.f32.mrf.mxu0 }
 0xabd   : > { %v3854_v16 = vadd.f32 %v3853_v27, %v3831_v56 }
 0xabf   : > { %v3877_v43 = vadd.f32 %v3876_v2, %v3854_v16 }
 0xac1   : > { %v3882_v19 = vmul.f32 0.2, %v3877_v43  ;;  %vm3880_vm1 = vcmp.gt.f32.partialorder %v3877_v43, 0.0 }
 0xac3   : > { %v3884_v58 = vsel %vm3880_vm1, %v3877_v43, %v3882_v19 }
 0xae7   : > { %v3944_v50 = vpop.permute.xlu2 %3943 }
 0xae8   : > { %v3947_v13 = vmul.f32 %v3944_v50, %v3884_v58 }
 0xaef   : > { %v3951_v51 = vpop.permute.xlu2 %3950 }
 0xaf7   : > { %v3939_v36 = vpop.permute.xlu0 %3938 }
 0xaf8   : > { %v3946_v34 = vmul.f32 %v3939_v36, %v3883_v1 }
 0xafa   : > { %v3958_v25 = vadd.f32 %v3951_v51, %v3946_v34 }
 0xafc   : > { %vm3960_vm11 = vcmp.gt.f32.partialorder %v3958_v25, 0.0  ;;  %v3962_v37 = vmul.f32 0.2, %v3958_v25 }
 0xafe   : > { %v6893_v40 = vsel %vm3960_vm11, %v3958_v25, %v3962_v37  ;;  %vm7306_vm11 = vmmov %vm7303_vm8 }
 0xaff   : > { %4063 = vrot.lane.b32.xlu1 %v6893_v40, %s7262_s23  ;;  %4079 = vrot.lane.b32.xlu0 %v6893_v40, %s7257_s16 }
 0xb00   : > { %4073 = vrot.lane.b32.xlu2 %v6893_v40, %s7243_s26 }
 0xb07   : > { %4041 = vrot.lane.b32.xlu1 %v6893_v40, %s7225_s4  ;;  %4057 = vrot.lane.b32.xlu0 %v6893_v40, %s7258_s11 }
 0xb08   : > { %4047 = vrot.lane.b32.xlu2 %v6893_v40, %s7261_s18 }
 0xb0d   : > { %v3956_v59 = vpop.permute.xlu1 %3955 }
 0xb0e   : > { %v3959_v26 = vadd.f32 %v3956_v59, %v3947_v13 }
 0xb0f   : > { %4015 = vrot.lane.b32.xlu1 %v6893_v40, %s7260_s0  ;;  %4031 = vrot.lane.b32.xlu0 %v6893_v40, %s7213_s1 }
 0xb10   : > { %4025 = vrot.lane.b32.xlu2 %v6893_v40, %s7259_s28  ;;  %v3963_v24 = vmul.f32 0.2, %v3959_v26  ;;  %vm3961_vm3 = vcmp.gt.f32.partialorder %v3959_v26, 0.0 }
 0xb12   : > { %v6919_v12 = vsel %vm3961_vm3, %v3959_v26, %v3963_v24 }
 0xb17   : > { %3993 = vrot.lane.b32.xlu1 %v6893_v40, %s7256_s17  ;;  %4009 = vrot.lane.b32.xlu0 %v6893_v40, %s7267_s3 }
 0xb18   : > { %3999 = vrot.lane.b32.xlu2 %v6893_v40, %s7268_s15 }
 0xb1f   : > { %4081 = vrot.lane.b32.xlu1 %v6919_v12, %s7257_s16  ;;  %4075 = vrot.lane.b32.xlu0 %v6919_v12, %s7243_s26  ;;  %s7299_s26 = sld [smem:[#allocation25_spill]] }
 0xb20   : > { %4065 = vrot.lane.b32.xlu2 %v6919_v12, %s7262_s23  ;;  %s7289_s23 = sld [smem:[#allocation21_spill]] }
 0xb26   : > { %v3317_v11 = vld [vmem:[%s7289_s23] sm:$0xff]  ;;  %v3318_v54 = vld [vmem:[%s7289_s23 + $0x8] sm:$0xff]  ;;  %v3319_v39 = vld [vmem:[%s7289_s23 + $0x10] sm:$0xff] }
 0xb27   : > { %4059 = vrot.lane.b32.xlu1 %v6919_v12, %s7258_s11  ;;  %4049 = vrot.lane.b32.xlu0 %v6919_v12, %s7261_s18  ;;  %s4993_s18 = smov 126  }
 0xb28   : > { %4043 = vrot.lane.b32.xlu2 %v6919_v12, %s7225_s4 }
 0xb2f   : > { %4033 = vrot.lane.b32.xlu1 %v6919_v12, %s7213_s1  ;;  %4027 = vrot.lane.b32.xlu0 %v6919_v12, %s7259_s28  ;;  %s7296_s1 = smul.u32 24, %s7309_s10  ;;  %s7300_s28 = sld [smem:[#allocation26_spill]] }
 0xb30   : > { %4017 = vrot.lane.b32.xlu2 %v6919_v12, %s7260_s0  ;;  %s7301_s0 = sld [smem:[#allocation27_spill]] }
 0xb37   : > { %4011 = vrot.lane.b32.xlu1 %v6919_v12, %s7267_s3  ;;  %4001 = vrot.lane.b32.xlu0 %v6919_v12, %s7268_s15  ;;  %s7292_s3 = sld [smem:[#allocation18_spill]] }
 0xb38   : > { %3995 = vrot.lane.b32.xlu2 %v6919_v12, %s7256_s17 }
 0xb3f   : > { %3985 = vrot.lane.b32.xlu1 %v6919_v12, %s7242_s22  ;;  %3979 = vrot.lane.b32.xlu0 %v6919_v12, %s7269_s5 }
 0xb40   : > { %3977 = vrot.lane.b32.xlu2 %v6893_v40, %s7269_s5  ;;  %s1197_s5 = scalar_lea.vmem %s5182_s6, %s7296_s1 }
 0xb47   : > { %4091 = vrot.lane.b32.xlu1 %v6919_v12, %s7270_s8  ;;  %3983 = vrot.lane.b32.xlu0 %v6893_v40, %s7242_s22  ;;  %s7298_s22 = sld [smem:[#allocation22_spill]] }
 0xb48   : > { %4097 = vrot.lane.b32.xlu2 %v6919_v12, %s7266_s13 }
 0xb4f   : > { %4095 = vrot.lane.b32.xlu1 %v6893_v40, %s7266_s13  ;;  %4089 = vrot.lane.b32.xlu0 %v6893_v40, %s7270_s8  ;;  %s7294_s8 = sld [smem:[#allocation13_spill]]  ;;  %s7307_s13 = sshll.u32 %s7309_s10, 5 }
 0xb50   : > { %4107 = vperm.xlu2 %4866, %v3972_v55   ;;  %s1202_s17 = scalar_lea.vmem %s5187_s20, %s7307_s13 }
 0xb57   : > { %4112 = vperm.xlu1 %4864, %v3973_v35   ;;  %3322 = vperm.xlu0 %4865, %v3317_v11  }
 0xb58   : > { %3327 = vperm.xlu2 %4866, %v3318_v54  }
 0xb5a   : > { %v4074_v2 = vpop.permute.xlu2 %4073 }
 0xb5f   : > { %3332 = vperm.xlu1 %4864, %v3319_v39   ;;  %4117 = vperm.xlu0 %4865, %v3974_v21  }
 0xb62   : > { %v4048_v30 = vpop.permute.xlu2 %4047 }
 0xb6a   : > { %v4026_v22 = vpop.permute.xlu2 %4025 }
 0xb71   : > { %v4064_v44 = vpop.permute.xlu1 %4063  ;;  %v4080_v28 = vpop.permute.xlu0 %4079 }
 0xb72   : > { %v4000_v41 = vpop.permute.xlu2 %3999  ;;  %v4085_v62 = vsel %vm2491_vm9, %v4074_v2, %v4080_v28 }
 0xb73   : > { %v4087_v63 = vmul.f32 %v4085_v62, %v5884_v38 }
 0xb79   : > { %v4042_v5 = vpop.permute.xlu1 %4041  ;;  %v4058_v46 = vpop.permute.xlu0 %4057 }
 0xb7a   : > { %v4066_v15 = vpop.permute.xlu2 %4065  ;;  %v4069_v33 = vsel %vm2473_vm10, %v4058_v46, %v4064_v44  ;;  %v3968_v46 = vld [vmem:[%s7292_s3 + $0x10] sm:$0xff] }
 0xb7b   : > { %v4071_v1 = vmul.f32 %v4069_v33, %v5882_v31 }
 0xb81   : > { %v4016_v3 = vpop.permute.xlu1 %4015  ;;  %v4032_v10 = vpop.permute.xlu0 %4031 }
 0xb82   : > { %v4044_v47 = vpop.permute.xlu2 %4043  ;;  %v4037_v57 = vsel %vm1299_vm5, %v4026_v22, %v4032_v10  ;;  %v3971_v10 = vld [vmem:[%s7292_s3 + $0x28] sm:$0xff] }
 0xb83   : > { %v4039_v27 = vmul.f32 %v4037_v57, %v5870_v61 }
 0xb89   : > { %v3994_v60 = vpop.permute.xlu1 %3993  ;;  %v4010_v14 = vpop.permute.xlu0 %4009 }
 0xb8a   : > { %v4018_v7 = vpop.permute.xlu2 %4017  ;;  %v4005_v13 = vsel %vm2402_vm4, %v3994_v60, %v4000_v41  ;;  %v3967_v41 = vld [vmem:[%s7292_s3 + $0x8] sm:$0xff]  ;;  %v4187_v60 = vld [vmem:[%s7294_s8] sm:$0xff] }
 0xb8b   : > { %v4007_v26 = vmul.f32 %v4005_v13, %v5864_v6 }
 0xb91   : > { %v4082_v23 = vpop.permute.xlu1 %4081  ;;  %v4076_v29 = vpop.permute.xlu0 %4075 }
 0xb92   : > { %v4086_v4 = vsel %vm2491_vm9, %v4076_v29, %v4082_v23  ;;  %vm7291_vm9 = vmmov %vm7290_vm0  ;;  %v3996_v52 = vpop.permute.xlu2 %3995 }
 0xb93   : > { %v4088_v45 = vmul.f32 %v4086_v4, %v5884_v38  ;;  %v4053_v34 = vsel %vm7291_vm9, %v4042_v5, %v4048_v30  ;;  %v3966_v30 = vld [vmem:[%s7292_s3] sm:$0xff] }
 0xb94   : > { %v4055_v51 = vmul.f32 %v4053_v34, %v5886_v42 }
 0xb95   : > { %4129 = vmatpush.msrb.mxu3 %v4088_v45 }
 0xb97   : > { %4130 = vmatpush.msrb.mxu3 %v4087_v63 }
 0xb99   : > { %v4060_v17 = vpop.permute.xlu1 %4059  ;;  %v4050_v53 = vpop.permute.xlu0 %4049 }
 0xb9a   : > { %v4070_v50 = vsel %vm2473_vm10, %v4060_v17, %v4066_v15  ;;  %v4054_v36 = vsel %vm7290_vm0, %v4044_v47, %v4050_v53  ;;  %v4188_v15 = vld [vmem:[%s7294_s8 + $0x8] sm:$0xff] }
 0xb9b   : > { %v4072_v32 = vmul.f32 %v4070_v50, %v5882_v31  ;;  %v4056_v38 = vmul.f32 %v4054_v36, %v5886_v42  ;;  %v4021_v42 = vsel %vm2420_vm7, %v4010_v14, %v4016_v3  ;;  %v3969_v3 = vld [vmem:[%s7292_s3 + $0x18] sm:$0xff]  ;;  %4212 = vmatpush.msrb.mxu0 %v4188_v15 }
 0xb9c   : > { %v4023_v59 = vmul.f32 %v4021_v42, %v5872_v18 }
 0xb9d   : > { %4131 = vmatpush.msrb.mxu3 %v4072_v32  ;;  %4213 = vmatpush.msrb.mxu0 %v4187_v60 }
 0xb9f   : > { %4132 = vmatpush.msrb.mxu3 %v4071_v1 }
 0xba1   : > { %v4034_v25 = vpop.permute.xlu1 %4033  ;;  %v4028_v37 = vpop.permute.xlu0 %4027  ;;  %4133 = vmatpush.msrb.mxu3 %v4056_v38 }
 0xba2   : > { %v4038_v0 = vsel %vm1299_vm5, %v4028_v37, %v4034_v25 }
 0xba3   : > { %4134 = vmatpush.msrb.mxu3 %v4055_v51  ;;  %v4040_v31 = vmul.f32 %v4038_v0, %v5870_v61 }
 0xba5   : > { %4135 = vmatpush.msrb.mxu3 %v6919_v12 }
 0xba7   : > { %4136 = vmatpush.msrb.mxu3 %v6893_v40  ;;  %v3978_v40 = vpop.permute.xlu2 %3977 }
 0xba9   : > { %v4012_v56 = vpop.permute.xlu1 %4011  ;;  %v4002_v16 = vpop.permute.xlu0 %4001  ;;  %4137 = vmatpush.msrb.mxu3 %v4040_v31 }
 0xbaa   : > { %v4022_v43 = vsel %vm2420_vm7, %v4012_v56, %v4018_v7  ;;  %v4006_v58 = vsel %vm2402_vm4, %v3996_v52, %v4002_v16  ;;  %vm7293_vm7 = vcmask 89088  }
 0xbab   : > { %v4024_v19 = vmul.f32 %v4022_v43, %v5872_v18  ;;  %4138 = vmatpush.msrb.mxu3 %v4039_v27  ;;  %v4008_v61 = vmul.f32 %v4006_v58, %v5864_v6  ;;  %vm7295_vm10 = vmmov %vm7293_vm7 }
 0xbad   : > { %4139 = vmatpush.msrb.mxu3 %v4024_v19 }
 0xbaf   : > { %4140 = vmatpush.msrb.mxu3 %v4023_v59  ;;  %v4098_v18 = vpop.permute.xlu2 %4097 }
 0xbb1   : > { %v3986_v24 = vpop.permute.xlu1 %3985  ;;  %v3980_v12 = vpop.permute.xlu0 %3979  ;;  %4141 = vmatpush.msrb.mxu3 %v4008_v61 }
 0xbb2   : > { %v3990_v55 = vsel %vm2384_vm6, %v3980_v12, %v3986_v24 }
 0xbb3   : > { %v3992_v35 = vmul.f32 %v3990_v55, %v5866_v9  ;;  %4142 = vmatpush.msrb.mxu3 %v4007_v26 }
 0xbb5   : > { %4143 = vmatpush.msrb.mxu3 %v3992_v35 }
 0xbb7   : > { %v4108_v14 = vpop.permute.xlu2 %4107 }
 0xbb9   : > { %v4092_v11 = vpop.permute.xlu1 %4091  ;;  %v3984_v54 = vpop.permute.xlu0 %3983 }
 0xbba   : > { %v4102_v39 = vsel %vm7293_vm7, %v4092_v11, %v4098_v18  ;;  %v3989_v21 = vsel %vm2384_vm6, %v3978_v40, %v3984_v54 }
 0xbbb   : > { %v4104_v6 = vmul.f32 %v6755_v48, %v4102_v39  ;;  %v3991_v2 = vmul.f32 %v3989_v21, %v5866_v9  ;;  %v3970_v9 = vld [vmem:[%s7292_s3 + $0x20] sm:$0xff] }
 0xbbc   : > { %v4257_v39 = vld [vmem:[%s7298_s22] sm:$0xff] }
 0xbbd   : > { %4144 = vmatpush.msrb.mxu3 %v3991_v2  ;;  %4169 = vmatpush.msrb.mxu1 %v4104_v6  ;;  %v4258_v6 = vld [vmem:[%s7298_s22 + $0x8] sm:$0xff] }
 0xbbe   : > { %4145 = vmatmul.f32.vlgmr.msrb.gmra.mxu3 %v3966_v30  ;;  %v4313_v30 = vld [vmem:[%s7299_s26 + $0x10] sm:$0xff] }
 0xbbf   : > { %v3328_v7 = vpop.permute.xlu2 %3327 }
 0xbc0   : > { %v3366_v36 = vadd.f32 %v6889_v20, %v3328_v7  ;;  %v4372_v7 = vld [vmem:[%s7301_s0] sm:$0xff] }
 0xbc1   : > { %v4096_v44 = vpop.permute.xlu1 %4095  ;;  %v4090_v28 = vpop.permute.xlu0 %4089 }
 0xbc2   : > { %v4101_v22 = vsel %vm7295_vm10, %v4090_v28, %v4096_v44  ;;  %v4259_v44 = vld [vmem:[%s7298_s22 + $0x10] sm:$0xff]  ;;  %v4312_v28 = vld [vmem:[%s7299_s26 + $0x8] sm:$0xff] }
 0xbc3   : > { %v4103_v5 = vmul.f32 %v6755_v48, %v4101_v22  ;;  %v4314_v22 = vld [vmem:[%s7299_s26 + $0x18] sm:$0xff] }
 0xbc5   : > { %4170 = vmatpush.msrb.mxu1 %v4103_v5 }
 0xbc6   : > { %4148 = vmatmul.f32.gmra.mxu3 %v3968_v46  ;;  %4754 = vmatmul.msk.f32.vlgmr.msrb.gmra.mxu1 %vm2365_vm2, %v3967_v41  ;;  %v4311_v46 = vld [vmem:[%s7299_s26] sm:$0xff] }
 0xbc9   : > { %v3323_v23 = vpop.permute.xlu0 %3322  ;;  %v4113_v17 = vpop.permute.xlu1 %4112 }
 0xbca   : > { %v3363_v4 = vadd.f32 %v6887_v8, %v3323_v23 }
 0xbce   : > { %4151 = vmatmul.f32.gmra.mxu3 %v3970_v9  ;;  %4755 = vmatmul.msk.f32.gmra.mxu1 %vm2365_vm2, %v3969_v3 }
 0xbd1   : > { %v4118_v38 = vpop.permute.xlu0 %4117  ;;  %v3333_v8 = vpop.permute.xlu1 %3332 }
 0xbd2   : > { %v3369_v0 = vadd.f32 %v6891_v49, %v3333_v8 }
 0xbd6   : > { %4756 = vmatmul.msk.f32.gmra.mxu1 %vm2365_vm2, %v3971_v10 }
 0xc41   : > { %v4146_v48 = vpop.f32.mrf.mxu3 }
 0xc42   : > { %v4147_v47 = vadd.f32 %v4146_v48, %v4108_v14 }
 0xc43   : > { %v4172_v29 = vpop.f32.mrf.mxu1 }
 0xc44   : > { %v4173_v62 = vadd.f32 %v4172_v29, %v4147_v47  ;;  %v4260_v47 = vld [vmem:[%s7298_s22 + $0x18] sm:$0xff] }
 0xc46   : > { %v4181_v45 = vmul.f32 0.1, %v4173_v62 }
 0xc48   : > { %v4184_v63 = vadd.f32 %v4181_v45, %v3363_v4  ;;  %v4368_v4 = vld [vmem:[%s7300_s28] sm:$0xff] }
 0xc49   : > { %v4149_v53 = vpop.f32.mrf.mxu3 }
 0xc4a   : > { %v4150_v33 = vadd.f32 %v4149_v53, %v4113_v17  ;;  %4757 = vmatmul.msk.f32.vlgmr.msrb.gmra.mxu0 %vm2365_vm2, %v4184_v63  ;;  %v4369_v63 = vld [vmem:[%s7300_s28 + $0x8] sm:$0xff]  ;;  %v4370_v17 = vld [vmem:[%s7300_s28 + $0x10] sm:$0xff]  ;;  %v4371_v53 = vld [vmem:[%s7300_s28 + $0x18] sm:$0xff] }
 0xc4b   : > { %v4175_v50 = vpop.f32.mrf.mxu1 }
 0xc4c   : > { %v4176_v32 = vadd.f32 %v4175_v50, %v4150_v33 }
 0xc4e   : > { %v4182_v1 = vmul.f32 0.1, %v4176_v32 }
 0xc50   : > { %v4185_v34 = vadd.f32 %v4182_v1, %v3366_v36 }
 0xc51   : > { %v4152_v51 = vpop.f32.mrf.mxu3 }
 0xc52   : > { %v4153_v25 = vadd.f32 %v4152_v51, %v4118_v38  ;;  %4758 = vmatmul.msk.f32.gmra.mxu0 %vm2365_vm2, %v4185_v34 }
 0xc53   : > { %v4178_v37 = vpop.f32.mrf.mxu1 }
 0xc54   : > { %v4179_v52 = vadd.f32 %v4178_v37, %v4153_v25  ;;  %v4373_v25 = vld [vmem:[%s7301_s0 + $0x8] sm:$0xff] }
 0xc56   : > { %v4183_v57 = vmul.f32 0.1, %v4179_v52 }
 0xc58   : > { %v4186_v31 = vadd.f32 %v4183_v57, %v3369_v0 }
 0xc5a   : > { %4759 = vmatmul.msk.f32.gmra.mxu0 %vm2365_vm2, %v4186_v31  ;;  %vm4265_vm2 = vcmask 785408  }
 0xcc7   : > { %v4215_v27 = vpop.f32.mrf.mxu0 }
 0xcc8   : > { %4224 = vst.msk [vmem:[%s1197_s5] sm:$0xff] %vm2402_vm4, %v4215_v27  ;;  %4248 = vrot.lane.b32.xlu0 %v4215_v27, %s7258_s11 }
 0xccf   : > { %v4218_v20 = vpop.f32.mrf.mxu0 }
 0xcd0   : > { %4225 = vst.msk [vmem:[%s1197_s5 + $0x8] sm:$0xff] %vm2402_vm4, %v4218_v20 }
 0xcd7   : > { %v4221_v56 = vpop.f32.mrf.mxu0 }
 0xcd8   : > { %4226 = vst.msk [vmem:[%s1197_s5 + $0x10] sm:$0xff] %vm2402_vm4, %v4221_v56  ;;  %v4877_v16 = vpack.i.bf16 %v4218_v20, %v4221_v56 }
 0xcda   : > { %4878 = vrot.lane.b32.xlu0 %v4877_v16, %s7225_s4  ;;  %4873 = vrot.lane.b32.xlu1 %v4877_v16, %s4993_s18 }
 0xcdb   : > { %4868 = vrot.lane.b32.xlu2 %v4877_v16, %s7258_s11  ;;  %s7302_s11 = sld [smem:[#allocation23_spill]] }
 0xce1   : > { %v4261_v50 = vld [vmem:[%s7302_s11] sm:$0xff]  ;;  %v4262_v8 = vld [vmem:[%s7302_s11 + $0x8] sm:$0xff] }
 0xce2   : > { %4230 = vrot.lane.b32.xlu1 %v4215_v27, %s7225_s4  ;;  %s7297_s4 = sld [smem:[#allocation24_spill]] }
 0xce3   : > { %4239 = vrot.lane.b32.xlu2 %v4215_v27, %s4993_s18 }
 0xce8   : > { %v4307_v55 = vld [vmem:[%s7297_s4] sm:$0xff]  ;;  %v4308_v35 = vld [vmem:[%s7297_s4 + $0x8] sm:$0xff]  ;;  %v4309_v18 = vld [vmem:[%s7297_s4 + $0x10] sm:$0xff] }
 0xce9   : > { %v4310_v11 = vld [vmem:[%s7297_s4 + $0x18] sm:$0xff] }
 0xd35   : > { %v4869_v49 = vpop.permute.xlu2 %4868 }
 0xd36   : > { %v4870_v42 = vunpack.i.l.bf16 %v4869_v49  ;;  %v4871_v43 = vunpack.i.h.bf16 %v4869_v49 }
 0xd38   : > { %4282 = vmatpush.msra.mxu1 %v4870_v42  ;;  %4331 = vmatpush.msra.mxu0 %v4870_v42 }
 0xd3a   : > { %4283 = vmatpush.msra.mxu1 %v4871_v43  ;;  %4332 = vmatpush.msra.mxu0 %v4871_v43  ;;  %v4249_v19 = vpop.permute.xlu0 %4248 }
 0xd3c   : > { %4284 = vmatpush.msra.mxu1 %v4249_v19  ;;  %4333 = vmatpush.msra.mxu0 %v4249_v19 }
 0xd3d   : > { %v4240_v61 = vpop.permute.xlu2 %4239 }
 0xd4c   : > { %v4874_v58 = vpop.permute.xlu1 %4873  ;;  %v4879_v40 = vpop.permute.xlu0 %4878 }
 0xd4d   : > { %v4875_v59 = vunpack.i.l.bf16 %v4874_v58  ;;  %v4876_v13 = vunpack.i.h.bf16 %v4874_v58  ;;  %v4880_v26 = vunpack.i.l.bf16 %v4879_v40  ;;  %v4881_v24 = vunpack.i.h.bf16 %v4879_v40  ;;  %v4375_v58 = vld [vmem:[%s7301_s0 + $0x18] sm:$0xff] }
 0xd4f   : > { %4285 = vmatpush.msra.mxu1 %v4875_v59  ;;  %4334 = vmatpush.msra.mxu0 %v4875_v59  ;;  %v4264_v59 = vld [vmem:[%s7302_s11 + $0x18] sm:$0xff] }
 0xd51   : > { %4286 = vmatpush.msra.mxu1 %v4876_v13  ;;  %4335 = vmatpush.msra.mxu0 %v4876_v13 }
 0xd53   : > { %4287 = vmatpush.msra.mxu1 %v4240_v61  ;;  %4336 = vmatpush.msra.mxu0 %v4240_v61 }
 0xd54   : > { %v4231_v12 = vpop.permute.xlu1 %4230 }
 0xd55   : > { %4288 = vmatpush.msra.mxu1 %v4880_v26  ;;  %4337 = vmatpush.msra.mxu0 %v4880_v26 }
 0xd57   : > { %4289 = vmatpush.msra.mxu1 %v4881_v24  ;;  %4338 = vmatpush.msra.mxu0 %v4881_v24 }
 0xd59   : > { %4290 = vmatpush.msra.mxu1 %v4231_v12  ;;  %4339 = vmatpush.msra.mxu0 %v4231_v12 }
 0xd5b   : > { %4291 = vmatpush.msra.mxu1 %v4221_v56  ;;  %4340 = vmatpush.msra.mxu0 %v4221_v56  ;;  %v4263_v56 = vld [vmem:[%s7302_s11 + $0x10] sm:$0xff] }
 0xd5d   : > { %4292 = vmatpush.msra.mxu1 %v4218_v20  ;;  %4341 = vmatpush.msra.mxu0 %v4218_v20  ;;  %v4374_v20 = vld [vmem:[%s7301_s0 + $0x10] sm:$0xff] }
 0xd5f   : > { %4293 = vmatpush.msra.mxu1 %v4215_v27  ;;  %4342 = vmatpush.msra.mxu0 %v4215_v27 }
 0xd60   : > { %4764 = vmatmul.msk.f32.vlgmr.msra.gmra.mxu0 %vm4265_vm2, %v4307_v55  ;;  %4760 = vmatmul.msk.f32.vlgmr.msra.gmra.mxu1 %vm4265_vm2, %v4257_v39 }
 0xd68   : > { %4765 = vmatmul.msk.f32.gmra.mxu0 %vm4265_vm2, %v4308_v35  ;;  %4761 = vmatmul.msk.f32.gmra.mxu1 %vm4265_vm2, %v4258_v6 }
 0xd70   : > { %4766 = vmatmul.msk.f32.gmra.mxu0 %vm4265_vm2, %v4309_v18  ;;  %4762 = vmatmul.msk.f32.gmra.mxu1 %vm4265_vm2, %v4259_v44 }
 0xd78   : > { %4767 = vmatmul.msk.f32.gmra.mxu0 %vm4265_vm2, %v4310_v11  ;;  %4763 = vmatmul.msk.f32.gmra.mxu1 %vm4265_vm2, %v4260_v47 }
 0xddd   : > { %v4344_v54 = vpop.f32.mrf.mxu0  ;;  %v4295_v33 = vpop.f32.mrf.mxu1 }
 0xdde   : > { %v4345_v10 = vadd.f32 %v4344_v54, %v4311_v46  ;;  %v4296_v1 = vadd.f32 %v4295_v33, %v4261_v50 }
 0xde0   : > { %v4360_v23 = vmul.f32 0.2, %v4345_v10  ;;  %vm4356_vm15 = vcmp.gt.f32.partialorder %v4345_v10, 0.0 }
 0xde2   : > { %v4364_v45 = vsel %vm4356_vm15, %v4345_v10, %v4360_v23 }
 0xde5   : > { %v4347_v21 = vpop.f32.mrf.mxu0  ;;  %v4298_v34 = vpop.f32.mrf.mxu1 }
 0xde6   : > { %v4348_v9 = vadd.f32 %v4347_v21, %v4312_v28  ;;  %v4299_v0 = vadd.f32 %v4298_v34, %v4262_v8 }
 0xde8   : > { %v4361_v14 = vmul.f32 0.2, %v4348_v9  ;;  %vm4357_vm13 = vcmp.gt.f32.partialorder %v4348_v9, 0.0 }
 0xdea   : > { %v4365_v62 = vsel %vm4357_vm13, %v4348_v9, %v4361_v14 }
 0xded   : > { %v4350_v2 = vpop.f32.mrf.mxu0  ;;  %v4301_v31 = vpop.f32.mrf.mxu1 }
 0xdee   : > { %v4351_v5 = vadd.f32 %v4350_v2, %v4313_v30  ;;  %v4302_v42 = vadd.f32 %v4301_v31, %v4263_v56 }
 0xdf0   : > { %v4362_v15 = vmul.f32 0.2, %v4351_v5  ;;  %vm4358_vm6 = vcmp.gt.f32.partialorder %v4351_v5, 0.0 }
 0xdf2   : > { %v4366_v29 = vsel %vm4358_vm6, %v4351_v5, %v4362_v15 }
 0xdf5   : > { %v4353_v41 = vpop.f32.mrf.mxu0  ;;  %v4304_v13 = vpop.f32.mrf.mxu1 }
 0xdf6   : > { %v4354_v3 = vadd.f32 %v4353_v41, %v4314_v22  ;;  %v4305_v26 = vadd.f32 %v4304_v13, %v4264_v59 }
 0xdf8   : > { %vm4359_vm4 = vcmp.gt.f32.partialorder %v4354_v3, 0.0  ;;  %v4363_v60 = vmul.f32 0.2, %v4354_v3 }
 0xdfa   : > { %v4367_v48 = vsel %vm4359_vm4, %v4354_v3, %v4363_v60 }
 0xdfb   : > { %4400 = vmatpush.msrb.mxu2 %v4367_v48 }
 0xdfd   : > { %4401 = vmatpush.msrb.mxu2 %v4366_v29 }
 0xdff   : > { %4402 = vmatpush.msrb.mxu2 %v4365_v62 }
 0xe01   : > { %4403 = vmatpush.msrb.mxu2 %v4364_v45 }
 0xe02   : > { %4768 = vmatmul.msk.f32.vlgmr.msrb.gmra.mxu2 %vm7303_vm8, %v4368_v4 }
 0xe0a   : > { %4769 = vmatmul.msk.f32.gmra.mxu2 %vm7304_vm14, %v4369_v63 }
 0xe12   : > { %4770 = vmatmul.msk.f32.gmra.mxu2 %vm7305_vm12, %v4370_v17 }
 0xe1a   : > { %4771 = vmatmul.msk.f32.gmra.mxu2 %vm7306_vm11, %v4371_v53 }
 0xe85   : > { %v4405_v32 = vpop.f32.mrf.mxu2 }
 0xe86   : > { %v4406_v36 = vadd.f32 %v4405_v32, %v4372_v7 }
 0xe88   : > { %v4417_v38 = vmul.f32 0.1, %v4406_v36 }
 0xe8a   : > { %v4421_v51 = vadd.f32 %v4417_v38, %v4296_v1 }
 0xe8c   : > { %4425 = vst.msk [vmem:[%s1202_s17] sm:$0xff] %vm1299_vm5, %v4421_v51 }
 0xe8d   : > { %v4408_v37 = vpop.f32.mrf.mxu2 }
 0xe8e   : > { %v4409_v52 = vadd.f32 %v4408_v37, %v4373_v25 }
 0xe90   : > { %v4418_v57 = vmul.f32 0.1, %v4409_v52 }
 0xe92   : > { %v4422_v27 = vadd.f32 %v4418_v57, %v4299_v0 }
 0xe94   : > { %4426 = vst.msk [vmem:[%s1202_s17 + $0x8] sm:$0xff] %vm1299_vm5, %v4422_v27 }
 0xe95   : > { %v4411_v16 = vpop.f32.mrf.mxu2 }
 0xe96   : > { %v4412_v49 = vadd.f32 %v4411_v16, %v4374_v20 }
 0xe98   : > { %v4419_v43 = vmul.f32 0.1, %v4412_v49 }
 0xe9a   : > { %v4423_v19 = vadd.f32 %v4419_v43, %v4302_v42 }
 0xe9c   : > { %4427 = vst.msk [vmem:[%s1202_s17 + $0x10] sm:$0xff] %vm1299_vm5, %v4423_v19 }
 0xe9d   : > { %v4414_v40 = vpop.f32.mrf.mxu2 }
 0xe9e   : > { %v4415_v61 = vadd.f32 %v4414_v40, %v4375_v58 }
 0xea0   : > { %v4420_v24 = vmul.f32 0.1, %v4415_v61 }
 0xea2   : > { %v4424_v12 = vadd.f32 %v4420_v24, %v4305_v26 }
 0xea4   : > { %4428 = vst.msk [vmem:[%s1202_s17 + $0x18] sm:$0xff] %vm1299_vm5, %v4424_v12 }
 0xea5 PF: > { %s86_s7 = sadd.s32 1, %s4915_s7  }
 0xea6   : > { %p83_p4 = scmp.ge.s32.totalorder %s86_s7, 4  }
 0xea8   :  { %85 = sbr.rel (!%p83_p4) target bundleno = 72 (0x48), region = 278 }

</bundles_post_ra>
